<compile_context>
chip_gen: v6e
topology: v6e:2x2x1
jax: 0.10.0
libtpu: 0.0.40
codegen_flags: <defaults>
</compile_context>

<pallas_src>
import math

import jax
import jax.numpy as jnp
from jax import lax
from jax.experimental import pallas as pl
from jax.experimental.pallas import tpu as pltpu


def _sum_all(a):
    # (B, A) -> (1, 1) full reduction, staged per axis for clean Mosaic lowering.
    return jnp.sum(jnp.sum(a, axis=1, keepdims=True), axis=0, keepdims=True)


def _make_rits_kernel(T, B, A, H):
    inv_T = 1.0 / float(T)

    def kernel(x_ref, m_ref, d_ref,
               wxd_ref, bx_ref,                      # temp_decay_x (diag folded)
               wh_t_ref, bh_ref,                     # temp_decay_h (pre-transposed)
               whr_t_ref, bhr_ref,                   # hist_reg     (pre-transposed)
               wf_t_ref, bf_ref,                     # feat_reg     (mask folded + transposed)
               wwg_t_ref, wwm_t_ref, bwc_ref,        # weight_combine (split, transposed)
               wihc_t_ref, wihm_t_ref, whh_t_ref, blstm_ref,  # LSTMCell (split, transposed)
               imp_ref, loss_ref):
        f32 = jnp.float32

        # ---- Hoist parameter loads and bias broadcasts out of the time loop. ----
        wh_t = wh_t_ref[...]
        whr_t = whr_t_ref[...]
        wf_t = wf_t_ref[...]
        wwg_t = wwg_t_ref[...]
        wwm_t = wwm_t_ref[...]
        wihc_t = wihc_t_ref[...]
        wihm_t = wihm_t_ref[...]
        whh_t = whh_t_ref[...]

        wxd = jnp.broadcast_to(wxd_ref[...], (B, A))
        bx = jnp.broadcast_to(bx_ref[...], (B, A))
        bh = jnp.broadcast_to(bh_ref[...], (B, H))
        bhr = jnp.broadcast_to(bhr_ref[...], (B, A))
        bf = jnp.broadcast_to(bf_ref[...], (B, A))
        bwc = jnp.broadcast_to(bwc_ref[...], (B, A))
        blstm = jnp.broadcast_to(blstm_ref[...], (B, 4 * H))

        def step(t, carry):
            h_prev, c_prev, loss = carry

            x = x_ref[t]
            x = jnp.where(jnp.isnan(x), jnp.zeros_like(x), x)   # torch.where(isnan, 0, values)
            m = m_ref[t]
            d = d_ref[t]

            # gamma_h = exp(-relu(d @ Wh.T + bh))
            gamma_h = jnp.exp(-jnp.maximum(
                jnp.dot(d, wh_t, preferred_element_type=f32) + bh, 0.0))
            # gamma_x = exp(-relu(d * diag(Wx) + bx))   (diag mask folded in wrapper)
            gamma_x = jnp.exp(-jnp.maximum(d * wxd + bx, 0.0))

            h = h_prev * gamma_h
            x_h = jnp.dot(h, whr_t, preferred_element_type=f32) + bhr

            x_c = m * x + (1.0 - m) * x_h
            # FeatureRegression: z_h = x_c @ (W * (1 - eye)).T + b
            z_h = jnp.dot(x_c, wf_t, preferred_element_type=f32) + bf

            # alpha = Linear(cat([gamma_x, m])) split into two matmuls (no concat).
            alpha = (jnp.dot(gamma_x, wwg_t, preferred_element_type=f32)
                     + jnp.dot(m, wwm_t, preferred_element_type=f32)
                     + bwc)
            c_h = alpha * z_h + (1.0 - alpha) * x_h
            c_c = m * x + (1.0 - m) * c_h
            imp_ref[t] = c_c.astype(imp_ref.dtype)

            # Fused masked-L1: one numerator reduction, one sum(m) reduction,
            # one EUP reciprocal (instead of 4 reductions + 3 divides).
            err = (jnp.abs(x - x_h) + jnp.abs(x - z_h) + jnp.abs(x - c_h)) * m
            sum_m = _sum_all(m)
            num = _sum_all(err)
            safe_den = jnp.where(sum_m != 0.0, sum_m, 1.0)
            loss_t = jnp.where(sum_m != 0.0,
                               num * pl.reciprocal(safe_den, approx=True),
                               0.0)

            # LSTMCell with inputs = cat([c_c, m]) split into K-split matmuls.
            # Gate order: i, f, g, o.
            gates = (jnp.dot(c_c, wihc_t, preferred_element_type=f32)
                     + jnp.dot(m, wihm_t, preferred_element_type=f32)
                     + jnp.dot(h, whh_t, preferred_element_type=f32)
                     + blstm)
            i_g = jax.nn.sigmoid(gates[:, 0 * H:1 * H])
            f_g = jax.nn.sigmoid(gates[:, 1 * H:2 * H])
            g_g = jnp.tanh(gates[:, 2 * H:3 * H])
            o_g = jax.nn.sigmoid(gates[:, 3 * H:4 * H])
            c_new = f_g * c_prev + i_g * g_g
            h_new = o_g * jnp.tanh(c_new)
            return h_new, c_new, loss + loss_t

        h0 = jnp.zeros((B, H), f32)
        c0 = jnp.zeros((B, H), f32)
        loss0 = jnp.zeros((1, 1), f32)
        _, _, loss = lax.fori_loop(0, T, step, (h0, c0, loss0), unroll=True)
        loss_ref[...] = (loss * inv_T).astype(loss_ref.dtype)

    return kernel


def rits_forward(values, masks, deltas, params):
    """Fused BRITS-RITS forward. values/masks/deltas: (B, T, A) float32.
    Returns (loss scalar, imputations (B, T, A))."""
    B, T, A = values.shape
    H = params["lstm_W_hh"].shape[1]
    f32 = jnp.float32
    eye = jnp.eye(A, dtype=f32)

    # Time-major so the kernel indexes one (B, A) tile per step off the leading axis.
    v_t = jnp.transpose(values, (1, 0, 2)).astype(f32)
    m_t = jnp.transpose(masks, (1, 0, 2)).astype(f32)
    d_t = jnp.transpose(deltas, (1, 0, 2)).astype(f32)

    # Fold masks into weights; pre-transpose everything (MXU-natural (m,k)x(k,n)).
    wxd = jnp.diag(params["td_x_W"]).reshape(1, A).astype(f32)
    bx = params["td_x_b"].reshape(1, A).astype(f32)
    wh_t = params["td_h_W"].T.astype(f32)                     # (A, H)
    bh = params["td_h_b"].reshape(1, H).astype(f32)
    whr_t = params["hist_W"].T.astype(f32)                    # (H, A)
    bhr = params["hist_b"].reshape(1, A).astype(f32)
    wf_t = (params["feat_W"] * (1.0 - eye)).T.astype(f32)     # (A, A), zero diag
    bf = params["feat_b"].reshape(1, A).astype(f32)
    wwg_t = params["wc_W"][:, :A].T.astype(f32)               # (A, A)
    wwm_t = params["wc_W"][:, A:].T.astype(f32)               # (A, A)
    bwc = params["wc_b"].reshape(1, A).astype(f32)
    wihc_t = params["lstm_W_ih"][:, :A].T.astype(f32)         # (A, 4H)
    wihm_t = params["lstm_W_ih"][:, A:].T.astype(f32)         # (A, 4H)
    whh_t = params["lstm_W_hh"].T.astype(f32)                 # (H, 4H)
    blstm = (params["lstm_b_ih"] + params["lstm_b_hh"]).reshape(1, 4 * H).astype(f32)

    param_arrays = [wxd, bx, wh_t, bh, whr_t, bhr, wf_t, bf,
                    wwg_t, wwm_t, bwc, wihc_t, wihm_t, whh_t, blstm]

    # Single kernel invocation: every array is one full-extent block (one DMA in,
    # one DMA out); the time loop lives inside the kernel body.
    data_spec = pl.BlockSpec((T, B, A), lambda i: (0, 0, 0))
    param_specs = [pl.BlockSpec(p.shape, lambda i: (0, 0)) for p in param_arrays]

    imp_t, loss11 = pl.pallas_call(
        _make_rits_kernel(T, B, A, H),
        grid=(1,),
        in_specs=[data_spec, data_spec, data_spec] + param_specs,
        out_specs=(
            pl.BlockSpec((T, B, A), lambda i: (0, 0, 0)),   # imputations (T, B, A)
            pl.BlockSpec((1, 1), lambda i: (0, 0)),         # loss
        ),
        out_shape=(
            jax.ShapeDtypeStruct((T, B, A), f32),
            jax.ShapeDtypeStruct((1, 1), f32),
        ),
        compiler_params=pltpu.CompilerParams(
            dimension_semantics=("arbitrary",)),
    )(v_t, m_t, d_t, *param_arrays)

    imputations = jnp.transpose(imp_t, (1, 0, 2))
    return loss11[0, 0], imputations


def reference_forward(values, masks, deltas, p):
    """Pure-JAX mirror of the PyTorch Model.forward."""
    B, T, A = values.shape
    H = p["lstm_W_hh"].shape[1]
    values = jnp.where(jnp.isnan(values), 0.0, values)
    eye = jnp.eye(A, dtype=jnp.float32)
    feat_W_m = p["feat_W"] * (1.0 - eye)
    td_x_W_m = p["td_x_W"] * eye
    h = jnp.zeros((B, H), jnp.float32)
    c = jnp.zeros((B, H), jnp.float32)
    x_loss = jnp.float32(0.0)
    imps = []
    for t in range(T):
        x = values[:, t, :]; m = masks[:, t, :]; d = deltas[:, t, :]
        gamma_h = jnp.exp(-jnp.maximum(d @ p["td_h_W"].T + p["td_h_b"], 0.0))
        gamma_x = jnp.exp(-jnp.maximum(d @ td_x_W_m.T + p["td_x_b"], 0.0))
        h = h * gamma_h
        x_h = h @ p["hist_W"].T + p["hist_b"]
        sm = jnp.sum(m)
        den = jnp.where(sm != 0, sm, 1.0)

        def term(pred):
            return jnp.where(sm != 0, jnp.sum(jnp.abs(x - pred) * m) / den, 0.0)

        x_loss = x_loss + term(x_h)
        x_c = m * x + (1.0 - m) * x_h
        z_h = x_c @ feat_W_m.T + p["feat_b"]
        x_loss = x_loss + term(z_h)
        alpha = jnp.concatenate([gamma_x, m], axis=1) @ p["wc_W"].T + p["wc_b"]
        c_h = alpha * z_h + (1.0 - alpha) * x_h
        x_loss = x_loss + term(c_h)
        c_c = m * x + (1.0 - m) * c_h
        inputs = jnp.concatenate([c_c, m], axis=1)
        gates = inputs @ p["lstm_W_ih"].T + p["lstm_b_ih"] + h @ p["lstm_W_hh"].T + p["lstm_b_hh"]
        i_g = jax.nn.sigmoid(gates[:, :H])
        f_g = jax.nn.sigmoid(gates[:, H:2 * H])
        g_g = jnp.tanh(gates[:, 2 * H:3 * H])
        o_g = jax.nn.sigmoid(gates[:, 3 * H:])
        c = f_g * c + i_g * g_g
        h = o_g * jnp.tanh(c)
        imps.append(c_c[:, None, :])
    return x_loss / T, jnp.concatenate(imps, axis=1)


if __name__ == "__main__":
    key = jax.random.PRNGKey(0)
    B, T, A, H = 8, 6, 4, 32   # batch, time steps, attributes, rnn_hid_size
    keys = jax.random.split(key, 18)

    def uni(k, shape, stdv):
        return jax.random.uniform(k, shape, jnp.float32, minval=-stdv, maxval=stdv)

    s_h = 1.0 / math.sqrt(H)
    s_a = 1.0 / math.sqrt(A)

    params = {
        "td_h_W": uni(keys[0], (H, A), s_h), "td_h_b": uni(keys[1], (H,), s_h),
        "td_x_W": uni(keys[2], (A, A), s_a), "td_x_b": uni(keys[3], (A,), s_a),
        "hist_W": uni(keys[4], (A, H), s_h), "hist_b": uni(keys[5], (A,), s_h),
        "feat_W": uni(keys[6], (A, A), s_a), "feat_b": uni(keys[7], (A,), s_a),
        "wc_W": uni(keys[8], (A, 2 * A), s_a), "wc_b": uni(keys[9], (A,), s_a),
        "lstm_W_ih": uni(keys[10], (4 * H, 2 * A), s_h),
        "lstm_W_hh": uni(keys[11], (4 * H, H), s_h),
        "lstm_b_ih": uni(keys[12], (4 * H,), s_h),
        "lstm_b_hh": uni(keys[13], (4 * H,), s_h),
    }

    values = jax.random.normal(keys[14], (B, T, A), jnp.float32)
    masks = (jax.random.uniform(keys[15], (B, T, A)) < 0.7).astype(jnp.float32)
    deltas = jax.random.uniform(keys[16], (B, T, A), jnp.float32, minval=0.0, maxval=3.0)
    # Exercise the NaN-replacement path (missing observation).
    values = values.at[0, 0, 0].set(jnp.nan)
    masks = masks.at[0, 0, 0].set(0.0)

    loss, imps = rits_forward(values, masks, deltas, params)
    loss = jax.block_until_ready(loss)
    imps = jax.block_until_ready(imps)

    ref_loss, ref_imps = reference_forward(values, masks, deltas, params)

    assert imps.shape == (B, T, A)
    assert bool(jnp.isfinite(loss))
    assert jnp.allclose(imps, ref_imps, atol=1e-3, rtol=1e-3), "imputations mismatch"
    assert jnp.allclose(loss, ref_loss, atol=1e-3, rtol=1e-3), "loss mismatch"

    # TODO(synk): run_on_batch (backward + optimizer step) is training-loop host code,
    # not part of the forward kernel.
    print("KERNEL_OK")
</pallas_src>

<mosaic_0001>
module attributes {stable_mosaic.version = 11 : i64} {
  func.func @kernel(%arg0: i32, %arg1: memref<6x8x4xf32, #tpu.memory_space<vmem>>, %arg2: memref<6x8x4xf32, #tpu.memory_space<vmem>>, %arg3: memref<6x8x4xf32, #tpu.memory_space<vmem>>, %arg4: memref<1x4xf32, #tpu.memory_space<vmem>>, %arg5: memref<1x4xf32, #tpu.memory_space<vmem>>, %arg6: memref<4x32xf32, #tpu.memory_space<vmem>>, %arg7: memref<1x32xf32, #tpu.memory_space<vmem>>, %arg8: memref<32x4xf32, #tpu.memory_space<vmem>>, %arg9: memref<1x4xf32, #tpu.memory_space<vmem>>, %arg10: memref<4x4xf32, #tpu.memory_space<vmem>>, %arg11: memref<1x4xf32, #tpu.memory_space<vmem>>, %arg12: memref<4x4xf32, #tpu.memory_space<vmem>>, %arg13: memref<4x4xf32, #tpu.memory_space<vmem>>, %arg14: memref<1x4xf32, #tpu.memory_space<vmem>>, %arg15: memref<4x128xf32, #tpu.memory_space<vmem>>, %arg16: memref<4x128xf32, #tpu.memory_space<vmem>>, %arg17: memref<32x128xf32, #tpu.memory_space<vmem>>, %arg18: memref<1x128xf32, #tpu.memory_space<vmem>>, %arg19: memref<6x8x4xf32, #tpu.memory_space<vmem>>, %arg20: memref<1x1xf32, #tpu.memory_space<vmem>>) attributes {dimension_semantics = [#tpu.dimension_semantics<arbitrary>], iteration_bounds = array<i64: 1>, scalar_prefetch = 0 : i64, scratch_operands = 0 : i64, tpu.core_type = #tpu.core_type<tc>, window_params = [{pipeline_mode = #tpu.pipeline_mode<synchronous>, transform_indices = @transform_0, window_bounds = array<i64: 6, 8, 4>}, {pipeline_mode = #tpu.pipeline_mode<synchronous>, transform_indices = @transform_1, window_bounds = array<i64: 6, 8, 4>}, {pipeline_mode = #tpu.pipeline_mode<synchronous>, transform_indices = @transform_2, window_bounds = array<i64: 6, 8, 4>}, {pipeline_mode = #tpu.pipeline_mode<synchronous>, transform_indices = @transform_3, window_bounds = array<i64: 1, 4>}, {pipeline_mode = #tpu.pipeline_mode<synchronous>, transform_indices = @transform_4, window_bounds = array<i64: 1, 4>}, {pipeline_mode = #tpu.pipeline_mode<synchronous>, transform_indices = @transform_5, window_bounds = array<i64: 4, 32>}, {pipeline_mode = #tpu.pipeline_mode<synchronous>, transform_indices = @transform_6, window_bounds = array<i64: 1, 32>}, {pipeline_mode = #tpu.pipeline_mode<synchronous>, transform_indices = @transform_7, window_bounds = array<i64: 32, 4>}, {pipeline_mode = #tpu.pipeline_mode<synchronous>, transform_indices = @transform_8, window_bounds = array<i64: 1, 4>}, {pipeline_mode = #tpu.pipeline_mode<synchronous>, transform_indices = @transform_9, window_bounds = array<i64: 4, 4>}, {pipeline_mode = #tpu.pipeline_mode<synchronous>, transform_indices = @transform_10, window_bounds = array<i64: 1, 4>}, {pipeline_mode = #tpu.pipeline_mode<synchronous>, transform_indices = @transform_11, window_bounds = array<i64: 4, 4>}, {pipeline_mode = #tpu.pipeline_mode<synchronous>, transform_indices = @transform_12, window_bounds = array<i64: 4, 4>}, {pipeline_mode = #tpu.pipeline_mode<synchronous>, transform_indices = @transform_13, window_bounds = array<i64: 1, 4>}, {pipeline_mode = #tpu.pipeline_mode<synchronous>, transform_indices = @transform_14, window_bounds = array<i64: 4, 128>}, {pipeline_mode = #tpu.pipeline_mode<synchronous>, transform_indices = @transform_15, window_bounds = array<i64: 4, 128>}, {pipeline_mode = #tpu.pipeline_mode<synchronous>, transform_indices = @transform_16, window_bounds = array<i64: 32, 128>}, {pipeline_mode = #tpu.pipeline_mode<synchronous>, transform_indices = @transform_17, window_bounds = array<i64: 1, 128>}, {pipeline_mode = #tpu.pipeline_mode<synchronous>, transform_indices = @transform_18, window_bounds = array<i64: 6, 8, 4>}, {pipeline_mode = #tpu.pipeline_mode<synchronous>, transform_indices = @transform_19, window_bounds = array<i64: 1, 1>}]} {
    %c0 = arith.constant 0 : index
    %c0_0 = arith.constant 0 : index
    %0 = vector.load %arg6[%c0, %c0_0] : memref<4x32xf32, #tpu.memory_space<vmem>>, vector<4x32xf32>
    %c0_1 = arith.constant 0 : index
    %c0_2 = arith.constant 0 : index
    %1 = vector.load %arg8[%c0_1, %c0_2] : memref<32x4xf32, #tpu.memory_space<vmem>>, vector<32x4xf32>
    %c0_3 = arith.constant 0 : index
    %c0_4 = arith.constant 0 : index
    %2 = vector.load %arg10[%c0_3, %c0_4] : memref<4x4xf32, #tpu.memory_space<vmem>>, vector<4x4xf32>
    %c0_5 = arith.constant 0 : index
    %c0_6 = arith.constant 0 : index
    %3 = vector.load %arg12[%c0_5, %c0_6] : memref<4x4xf32, #tpu.memory_space<vmem>>, vector<4x4xf32>
    %c0_7 = arith.constant 0 : index
    %c0_8 = arith.constant 0 : index
    %4 = vector.load %arg13[%c0_7, %c0_8] : memref<4x4xf32, #tpu.memory_space<vmem>>, vector<4x4xf32>
    %c0_9 = arith.constant 0 : index
    %c0_10 = arith.constant 0 : index
    %5 = vector.load %arg15[%c0_9, %c0_10] : memref<4x128xf32, #tpu.memory_space<vmem>>, vector<4x128xf32>
    %c0_11 = arith.constant 0 : index
    %c0_12 = arith.constant 0 : index
    %6 = vector.load %arg16[%c0_11, %c0_12] : memref<4x128xf32, #tpu.memory_space<vmem>>, vector<4x128xf32>
    %c0_13 = arith.constant 0 : index
    %c0_14 = arith.constant 0 : index
    %7 = vector.load %arg17[%c0_13, %c0_14] : memref<32x128xf32, #tpu.memory_space<vmem>>, vector<32x128xf32>
    %c0_15 = arith.constant 0 : index
    %c0_16 = arith.constant 0 : index
    %8 = vector.load %arg4[%c0_15, %c0_16] : memref<1x4xf32, #tpu.memory_space<vmem>>, vector<1x4xf32>
    %9 = vector.shape_cast %8 : vector<1x4xf32> to vector<1x4xf32>
    %10 = vector.broadcast %9 : vector<1x4xf32> to vector<8x4xf32>
    %c0_17 = arith.constant 0 : index
    %c0_18 = arith.constant 0 : index
    %11 = vector.load %arg5[%c0_17, %c0_18] : memref<1x4xf32, #tpu.memory_space<vmem>>, vector<1x4xf32>
    %12 = vector.shape_cast %11 : vector<1x4xf32> to vector<1x4xf32>
    %13 = vector.broadcast %12 : vector<1x4xf32> to vector<8x4xf32>
    %c0_19 = arith.constant 0 : index
    %c0_20 = arith.constant 0 : index
    %14 = vector.load %arg7[%c0_19, %c0_20] : memref<1x32xf32, #tpu.memory_space<vmem>>, vector<1x32xf32>
    %15 = vector.shape_cast %14 : vector<1x32xf32> to vector<1x32xf32>
    %16 = vector.broadcast %15 : vector<1x32xf32> to vector<8x32xf32>
    %c0_21 = arith.constant 0 : index
    %c0_22 = arith.constant 0 : index
    %17 = vector.load %arg9[%c0_21, %c0_22] : memref<1x4xf32, #tpu.memory_space<vmem>>, vector<1x4xf32>
    %18 = vector.shape_cast %17 : vector<1x4xf32> to vector<1x4xf32>
    %19 = vector.broadcast %18 : vector<1x4xf32> to vector<8x4xf32>
    %c0_23 = arith.constant 0 : index
    %c0_24 = arith.constant 0 : index
    %20 = vector.load %arg11[%c0_23, %c0_24] : memref<1x4xf32, #tpu.memory_space<vmem>>, vector<1x4xf32>
    %21 = vector.shape_cast %20 : vector<1x4xf32> to vector<1x4xf32>
    %22 = vector.broadcast %21 : vector<1x4xf32> to vector<8x4xf32>
    %c0_25 = arith.constant 0 : index
    %c0_26 = arith.constant 0 : index
    %23 = vector.load %arg14[%c0_25, %c0_26] : memref<1x4xf32, #tpu.memory_space<vmem>>, vector<1x4xf32>
    %24 = vector.shape_cast %23 : vector<1x4xf32> to vector<1x4xf32>
    %25 = vector.broadcast %24 : vector<1x4xf32> to vector<8x4xf32>
    %c0_27 = arith.constant 0 : index
    %c0_28 = arith.constant 0 : index
    %26 = vector.load %arg18[%c0_27, %c0_28] : memref<1x128xf32, #tpu.memory_space<vmem>>, vector<1x128xf32>
    %27 = vector.shape_cast %26 : vector<1x128xf32> to vector<1x128xf32>
    %28 = vector.broadcast %27 : vector<1x128xf32> to vector<8x128xf32>
    %cst = arith.constant 0.000000e+00 : f32
    %29 = vector.broadcast %cst : f32 to vector<8x32xf32>
    %cst_29 = arith.constant 0.000000e+00 : f32
    %30 = vector.broadcast %cst_29 : f32 to vector<8x32xf32>
    %cst_30 = arith.constant 0.000000e+00 : f32
    %31 = vector.broadcast %cst_30 : f32 to vector<1x1xf32>
    %c0_i32 = arith.constant 0 : i32
    %32 = arith.index_cast %c0_i32 : i32 to index
    %c0_31 = arith.constant 0 : index
    %c0_32 = arith.constant 0 : index
    %33 = vector.load %arg1[%32, %c0_31, %c0_32] : memref<6x8x4xf32, #tpu.memory_space<vmem>>, vector<1x8x4xf32>
    %34 = vector.shape_cast %33 : vector<1x8x4xf32> to vector<8x4xf32>
    %35 = arith.cmpf one, %34, %34 : vector<8x4xf32>
    %cst_33 = arith.constant 0.000000e+00 : f32
    %36 = vector.broadcast %cst_33 : f32 to vector<8x4xf32>
    %37 = arith.select %35, %36, %34 : vector<8x4xi1>, vector<8x4xf32>
    %38 = arith.index_cast %c0_i32 : i32 to index
    %c0_34 = arith.constant 0 : index
    %c0_35 = arith.constant 0 : index
    %39 = vector.load %arg2[%38, %c0_34, %c0_35] : memref<6x8x4xf32, #tpu.memory_space<vmem>>, vector<1x8x4xf32>
    %40 = vector.shape_cast %39 : vector<1x8x4xf32> to vector<8x4xf32>
    %41 = arith.index_cast %c0_i32 : i32 to index
    %c0_36 = arith.constant 0 : index
    %c0_37 = arith.constant 0 : index
    %42 = vector.load %arg3[%41, %c0_36, %c0_37] : memref<6x8x4xf32, #tpu.memory_space<vmem>>, vector<1x8x4xf32>
    %43 = vector.shape_cast %42 : vector<1x8x4xf32> to vector<8x4xf32>
    %cst_38 = arith.constant dense<0.000000e+00> : vector<8x32xf32>
    %44 = tpu.matmul %43, %0, %cst_38 {dimension_numbers = #tpu.dot_dimension_numbers<[1], [0], [0], [1], [0, 0, 1, 1], [], []>} : vector<8x4xf32>, vector<4x32xf32>, vector<8x32xf32> -> vector<8x32xf32>
    %45 = arith.addf %44, %16 : vector<8x32xf32>
    %cst_39 = arith.constant 0.000000e+00 : f32
    %46 = vector.broadcast %cst_39 : f32 to vector<8x32xf32>
    %47 = arith.maximumf %45, %46 : vector<8x32xf32>
    %cst_40 = arith.constant 0.000000e+00 : f32
    %48 = vector.broadcast %cst_40 : f32 to vector<8x32xf32>
    %49 = arith.subf %48, %47 : vector<8x32xf32>
    %50 = math.exp %49 : vector<8x32xf32>
    %51 = arith.mulf %43, %10 : vector<8x4xf32>
    %52 = arith.addf %51, %13 : vector<8x4xf32>
    %cst_41 = arith.constant 0.000000e+00 : f32
    %53 = vector.broadcast %cst_41 : f32 to vector<8x4xf32>
    %54 = arith.maximumf %52, %53 : vector<8x4xf32>
    %cst_42 = arith.constant 0.000000e+00 : f32
    %55 = vector.broadcast %cst_42 : f32 to vector<8x4xf32>
    %56 = arith.subf %55, %54 : vector<8x4xf32>
    %57 = math.exp %56 : vector<8x4xf32>
    %58 = arith.mulf %29, %50 : vector<8x32xf32>
    %cst_43 = arith.constant dense<0.000000e+00> : vector<8x4xf32>
    %59 = tpu.matmul %58, %1, %cst_43 {dimension_numbers = #tpu.dot_dimension_numbers<[1], [0], [0], [1], [0, 0, 1, 1], [], []>} : vector<8x32xf32>, vector<32x4xf32>, vector<8x4xf32> -> vector<8x4xf32>
    %60 = arith.addf %59, %19 : vector<8x4xf32>
    %61 = arith.mulf %40, %37 : vector<8x4xf32>
    %cst_44 = arith.constant 1.000000e+00 : f32
    %62 = vector.broadcast %cst_44 : f32 to vector<8x4xf32>
    %63 = arith.subf %62, %40 : vector<8x4xf32>
    %64 = arith.mulf %63, %60 : vector<8x4xf32>
    %65 = arith.addf %61, %64 : vector<8x4xf32>
    %cst_45 = arith.constant dense<0.000000e+00> : vector<8x4xf32>
    %66 = tpu.matmul %65, %2, %cst_45 {dimension_numbers = #tpu.dot_dimension_numbers<[1], [0], [0], [1], [0, 0, 1, 1], [], []>} : vector<8x4xf32>, vector<4x4xf32>, vector<8x4xf32> -> vector<8x4xf32>
    %67 = arith.addf %66, %22 : vector<8x4xf32>
    %cst_46 = arith.constant dense<0.000000e+00> : vector<8x4xf32>
    %68 = tpu.matmul %57, %3, %cst_46 {dimension_numbers = #tpu.dot_dimension_numbers<[1], [0], [0], [1], [0, 0, 1, 1], [], []>} : vector<8x4xf32>, vector<4x4xf32>, vector<8x4xf32> -> vector<8x4xf32>
    %cst_47 = arith.constant dense<0.000000e+00> : vector<8x4xf32>
    %69 = tpu.matmul %40, %4, %cst_47 {dimension_numbers = #tpu.dot_dimension_numbers<[1], [0], [0], [1], [0, 0, 1, 1], [], []>} : vector<8x4xf32>, vector<4x4xf32>, vector<8x4xf32> -> vector<8x4xf32>
    %70 = arith.addf %68, %69 : vector<8x4xf32>
    %71 = arith.addf %70, %25 : vector<8x4xf32>
    %72 = arith.mulf %71, %67 : vector<8x4xf32>
    %cst_48 = arith.constant 1.000000e+00 : f32
    %73 = vector.broadcast %cst_48 : f32 to vector<8x4xf32>
    %74 = arith.subf %73, %71 : vector<8x4xf32>
    %75 = arith.mulf %74, %60 : vector<8x4xf32>
    %76 = arith.addf %72, %75 : vector<8x4xf32>
    %77 = arith.mulf %40, %37 : vector<8x4xf32>
    %cst_49 = arith.constant 1.000000e+00 : f32
    %78 = vector.broadcast %cst_49 : f32 to vector<8x4xf32>
    %79 = arith.subf %78, %40 : vector<8x4xf32>
    %80 = arith.mulf %79, %76 : vector<8x4xf32>
    %81 = arith.addf %77, %80 : vector<8x4xf32>
    %82 = arith.index_cast %c0_i32 : i32 to index
    %c0_50 = arith.constant 0 : index
    %c0_51 = arith.constant 0 : index
    %83 = vector.load %arg19[%82, %c0_50, %c0_51] : memref<6x8x4xf32, #tpu.memory_space<vmem>>, vector<1x8x4xf32>
    %84 = vector.shape_cast %83 : vector<1x8x4xf32> to vector<8x4xf32>
    %85 = vector.shape_cast %81 : vector<8x4xf32> to vector<1x8x4xf32>
    tpu.vector_store %arg19[%82, %c0_50, %c0_51], %85 {strides = array<i32>} : memref<6x8x4xf32, #tpu.memory_space<vmem>>, vector<1x8x4xf32>,
    %86 = arith.subf %37, %60 : vector<8x4xf32>
    %87 = math.absf %86 : vector<8x4xf32>
    %88 = arith.subf %37, %67 : vector<8x4xf32>
    %89 = math.absf %88 : vector<8x4xf32>
    %90 = arith.addf %87, %89 : vector<8x4xf32>
    %91 = arith.subf %37, %76 : vector<8x4xf32>
    %92 = math.absf %91 : vector<8x4xf32>
    %93 = arith.addf %90, %92 : vector<8x4xf32>
    %94 = arith.mulf %93, %40 : vector<8x4xf32>
    %cst_52 = arith.constant dense<0.000000e+00> : vector<8xf32>
    %95 = vector.multi_reduction <add>, %40, %cst_52 [1] : vector<8x4xf32> to vector<8xf32>
    %96 = vector.shape_cast %95 : vector<8xf32> to vector<8x1xf32>
    %cst_53 = arith.constant dense<0.000000e+00> : vector<1xf32>
    %97 = vector.multi_reduction <add>, %96, %cst_53 [0] : vector<8x1xf32> to vector<1xf32>
    %98 = vector.shape_cast %97 : vector<1xf32> to vector<1x1xf32>
    %cst_54 = arith.constant dense<0.000000e+00> : vector<8xf32>
    %99 = vector.multi_reduction <add>, %94, %cst_54 [1] : vector<8x4xf32> to vector<8xf32>
    %100 = vector.shape_cast %99 : vector<8xf32> to vector<8x1xf32>
    %cst_55 = arith.constant dense<0.000000e+00> : vector<1xf32>
    %101 = vector.multi_reduction <add>, %100, %cst_55 [0] : vector<8x1xf32> to vector<1xf32>
    %102 = vector.shape_cast %101 : vector<1xf32> to vector<1x1xf32>
    %cst_56 = arith.constant 0.000000e+00 : f32
    %103 = vector.broadcast %cst_56 : f32 to vector<1x1xf32>
    %104 = arith.cmpf one, %98, %103 : vector<1x1xf32>
    %cst_57 = arith.constant 1.000000e+00 : f32
    %105 = vector.broadcast %cst_57 : f32 to vector<1x1xf32>
    %106 = arith.select %104, %98, %105 : vector<1x1xi1>, vector<1x1xf32>
    %cst_58 = arith.constant 0.000000e+00 : f32
    %107 = vector.broadcast %cst_58 : f32 to vector<1x1xf32>
    %108 = arith.cmpf one, %98, %107 : vector<1x1xf32>
    %109 = tpu.reciprocal %106 {approx = true} : vector<1x1xf32> -> vector<1x1xf32>
    %110 = arith.mulf %102, %109 : vector<1x1xf32>
    %cst_59 = arith.constant 0.000000e+00 : f32
    %111 = vector.broadcast %cst_59 : f32 to vector<1x1xf32>
    %112 = arith.select %108, %110, %111 : vector<1x1xi1>, vector<1x1xf32>
    %cst_60 = arith.constant dense<0.000000e+00> : vector<8x128xf32>
    %113 = tpu.matmul %81, %5, %cst_60 {dimension_numbers = #tpu.dot_dimension_numbers<[1], [0], [0], [1], [0, 0, 1, 1], [], []>} : vector<8x4xf32>, vector<4x128xf32>, vector<8x128xf32> -> vector<8x128xf32>
    %cst_61 = arith.constant dense<0.000000e+00> : vector<8x128xf32>
    %114 = tpu.matmul %40, %6, %cst_61 {dimension_numbers = #tpu.dot_dimension_numbers<[1], [0], [0], [1], [0, 0, 1, 1], [], []>} : vector<8x4xf32>, vector<4x128xf32>, vector<8x128xf32> -> vector<8x128xf32>
    %115 = arith.addf %113, %114 : vector<8x128xf32>
    %cst_62 = arith.constant dense<0.000000e+00> : vector<8x128xf32>
    %116 = tpu.matmul %58, %7, %cst_62 {dimension_numbers = #tpu.dot_dimension_numbers<[1], [0], [0], [1], [0, 0, 1, 1], [], []>} : vector<8x32xf32>, vector<32x128xf32>, vector<8x128xf32> -> vector<8x128xf32>
    %117 = arith.addf %115, %116 : vector<8x128xf32>
    %118 = arith.addf %117, %28 : vector<8x128xf32>
    %119 = vector.extract_strided_slice %118 {offsets = [0, 0], sizes = [8, 32], strides = [1, 1]} : vector<8x128xf32> to vector<8x32xf32>
    %120 = arith.negf %119 : vector<8x32xf32>
    %121 = math.exp %120 : vector<8x32xf32>
    %cst_63 = arith.constant 1.000000e+00 : f32
    %122 = vector.broadcast %cst_63 : f32 to vector<8x32xf32>
    %123 = arith.addf %122, %121 : vector<8x32xf32>
    %124 = arith.divf %122, %123 : vector<8x32xf32>
    %125 = vector.extract_strided_slice %118 {offsets = [0, 32], sizes = [8, 32], strides = [1, 1]} : vector<8x128xf32> to vector<8x32xf32>
    %126 = arith.negf %125 : vector<8x32xf32>
    %127 = math.exp %126 : vector<8x32xf32>
    %cst_64 = arith.constant 1.000000e+00 : f32
    %128 = vector.broadcast %cst_64 : f32 to vector<8x32xf32>
    %129 = arith.addf %128, %127 : vector<8x32xf32>
    %130 = arith.divf %128, %129 : vector<8x32xf32>
    %131 = vector.extract_strided_slice %118 {offsets = [0, 64], sizes = [8, 32], strides = [1, 1]} : vector<8x128xf32> to vector<8x32xf32>
    %132 = math.tanh %131 : vector<8x32xf32>
    %133 = vector.extract_strided_slice %118 {offsets = [0, 96], sizes = [8, 32], strides = [1, 1]} : vector<8x128xf32> to vector<8x32xf32>
    %134 = arith.negf %133 : vector<8x32xf32>
    %135 = math.exp %134 : vector<8x32xf32>
    %cst_65 = arith.constant 1.000000e+00 : f32
    %136 = vector.broadcast %cst_65 : f32 to vector<8x32xf32>
    %137 = arith.addf %136, %135 : vector<8x32xf32>
    %138 = arith.divf %136, %137 : vector<8x32xf32>
    %139 = arith.mulf %130, %30 : vector<8x32xf32>
    %140 = arith.mulf %124, %132 : vector<8x32xf32>
    %141 = arith.addf %139, %140 : vector<8x32xf32>
    %142 = math.tanh %141 : vector<8x32xf32>
    %143 = arith.mulf %138, %142 : vector<8x32xf32>
    %144 = arith.addf %31, %112 : vector<1x1xf32>
    %c1_i32 = arith.constant 1 : i32
    %145 = arith.index_cast %c1_i32 : i32 to index
    %c0_66 = arith.constant 0 : index
    %c0_67 = arith.constant 0 : index
    %146 = vector.load %arg1[%145, %c0_66, %c0_67] : memref<6x8x4xf32, #tpu.memory_space<vmem>>, vector<1x8x4xf32>
    %147 = vector.shape_cast %146 : vector<1x8x4xf32> to vector<8x4xf32>
    %148 = arith.cmpf one, %147, %147 : vector<8x4xf32>
    %cst_68 = arith.constant 0.000000e+00 : f32
    %149 = vector.broadcast %cst_68 : f32 to vector<8x4xf32>
    %150 = arith.select %148, %149, %147 : vector<8x4xi1>, vector<8x4xf32>
    %151 = arith.index_cast %c1_i32 : i32 to index
    %c0_69 = arith.constant 0 : index
    %c0_70 = arith.constant 0 : index
    %152 = vector.load %arg2[%151, %c0_69, %c0_70] : memref<6x8x4xf32, #tpu.memory_space<vmem>>, vector<1x8x4xf32>
    %153 = vector.shape_cast %152 : vector<1x8x4xf32> to vector<8x4xf32>
    %154 = arith.index_cast %c1_i32 : i32 to index
    %c0_71 = arith.constant 0 : index
    %c0_72 = arith.constant 0 : index
    %155 = vector.load %arg3[%154, %c0_71, %c0_72] : memref<6x8x4xf32, #tpu.memory_space<vmem>>, vector<1x8x4xf32>
    %156 = vector.shape_cast %155 : vector<1x8x4xf32> to vector<8x4xf32>
    %cst_73 = arith.constant dense<0.000000e+00> : vector<8x32xf32>
    %157 = tpu.matmul %156, %0, %cst_73 {dimension_numbers = #tpu.dot_dimension_numbers<[1], [0], [0], [1], [0, 0, 1, 1], [], []>} : vector<8x4xf32>, vector<4x32xf32>, vector<8x32xf32> -> vector<8x32xf32>
    %158 = arith.addf %157, %16 : vector<8x32xf32>
    %cst_74 = arith.constant 0.000000e+00 : f32
    %159 = vector.broadcast %cst_74 : f32 to vector<8x32xf32>
    %160 = arith.maximumf %158, %159 : vector<8x32xf32>
    %cst_75 = arith.constant 0.000000e+00 : f32
    %161 = vector.broadcast %cst_75 : f32 to vector<8x32xf32>
    %162 = arith.subf %161, %160 : vector<8x32xf32>
    %163 = math.exp %162 : vector<8x32xf32>
    %164 = arith.mulf %156, %10 : vector<8x4xf32>
    %165 = arith.addf %164, %13 : vector<8x4xf32>
    %cst_76 = arith.constant 0.000000e+00 : f32
    %166 = vector.broadcast %cst_76 : f32 to vector<8x4xf32>
    %167 = arith.maximumf %165, %166 : vector<8x4xf32>
    %cst_77 = arith.constant 0.000000e+00 : f32
    %168 = vector.broadcast %cst_77 : f32 to vector<8x4xf32>
    %169 = arith.subf %168, %167 : vector<8x4xf32>
    %170 = math.exp %169 : vector<8x4xf32>
    %171 = arith.mulf %143, %163 : vector<8x32xf32>
    %cst_78 = arith.constant dense<0.000000e+00> : vector<8x4xf32>
    %172 = tpu.matmul %171, %1, %cst_78 {dimension_numbers = #tpu.dot_dimension_numbers<[1], [0], [0], [1], [0, 0, 1, 1], [], []>} : vector<8x32xf32>, vector<32x4xf32>, vector<8x4xf32> -> vector<8x4xf32>
    %173 = arith.addf %172, %19 : vector<8x4xf32>
    %174 = arith.mulf %153, %150 : vector<8x4xf32>
    %cst_79 = arith.constant 1.000000e+00 : f32
    %175 = vector.broadcast %cst_79 : f32 to vector<8x4xf32>
    %176 = arith.subf %175, %153 : vector<8x4xf32>
    %177 = arith.mulf %176, %173 : vector<8x4xf32>
    %178 = arith.addf %174, %177 : vector<8x4xf32>
    %cst_80 = arith.constant dense<0.000000e+00> : vector<8x4xf32>
    %179 = tpu.matmul %178, %2, %cst_80 {dimension_numbers = #tpu.dot_dimension_numbers<[1], [0], [0], [1], [0, 0, 1, 1], [], []>} : vector<8x4xf32>, vector<4x4xf32>, vector<8x4xf32> -> vector<8x4xf32>
    %180 = arith.addf %179, %22 : vector<8x4xf32>
    %cst_81 = arith.constant dense<0.000000e+00> : vector<8x4xf32>
    %181 = tpu.matmul %170, %3, %cst_81 {dimension_numbers = #tpu.dot_dimension_numbers<[1], [0], [0], [1], [0, 0, 1, 1], [], []>} : vector<8x4xf32>, vector<4x4xf32>, vector<8x4xf32> -> vector<8x4xf32>
    %cst_82 = arith.constant dense<0.000000e+00> : vector<8x4xf32>
    %182 = tpu.matmul %153, %4, %cst_82 {dimension_numbers = #tpu.dot_dimension_numbers<[1], [0], [0], [1], [0, 0, 1, 1], [], []>} : vector<8x4xf32>, vector<4x4xf32>, vector<8x4xf32> -> vector<8x4xf32>
    %183 = arith.addf %181, %182 : vector<8x4xf32>
    %184 = arith.addf %183, %25 : vector<8x4xf32>
    %185 = arith.mulf %184, %180 : vector<8x4xf32>
    %cst_83 = arith.constant 1.000000e+00 : f32
    %186 = vector.broadcast %cst_83 : f32 to vector<8x4xf32>
    %187 = arith.subf %186, %184 : vector<8x4xf32>
    %188 = arith.mulf %187, %173 : vector<8x4xf32>
    %189 = arith.addf %185, %188 : vector<8x4xf32>
    %190 = arith.mulf %153, %150 : vector<8x4xf32>
    %cst_84 = arith.constant 1.000000e+00 : f32
    %191 = vector.broadcast %cst_84 : f32 to vector<8x4xf32>
    %192 = arith.subf %191, %153 : vector<8x4xf32>
    %193 = arith.mulf %192, %189 : vector<8x4xf32>
    %194 = arith.addf %190, %193 : vector<8x4xf32>
    %195 = arith.index_cast %c1_i32 : i32 to index
    %c0_85 = arith.constant 0 : index
    %c0_86 = arith.constant 0 : index
    %196 = vector.load %arg19[%195, %c0_85, %c0_86] : memref<6x8x4xf32, #tpu.memory_space<vmem>>, vector<1x8x4xf32>
    %197 = vector.shape_cast %196 : vector<1x8x4xf32> to vector<8x4xf32>
    %198 = vector.shape_cast %194 : vector<8x4xf32> to vector<1x8x4xf32>
    tpu.vector_store %arg19[%195, %c0_85, %c0_86], %198 {strides = array<i32>} : memref<6x8x4xf32, #tpu.memory_space<vmem>>, vector<1x8x4xf32>,
    %199 = arith.subf %150, %173 : vector<8x4xf32>
    %200 = math.absf %199 : vector<8x4xf32>
    %201 = arith.subf %150, %180 : vector<8x4xf32>
    %202 = math.absf %201 : vector<8x4xf32>
    %203 = arith.addf %200, %202 : vector<8x4xf32>
    %204 = arith.subf %150, %189 : vector<8x4xf32>
    %205 = math.absf %204 : vector<8x4xf32>
    %206 = arith.addf %203, %205 : vector<8x4xf32>
    %207 = arith.mulf %206, %153 : vector<8x4xf32>
    %cst_87 = arith.constant dense<0.000000e+00> : vector<8xf32>
    %208 = vector.multi_reduction <add>, %153, %cst_87 [1] : vector<8x4xf32> to vector<8xf32>
    %209 = vector.shape_cast %208 : vector<8xf32> to vector<8x1xf32>
    %cst_88 = arith.constant dense<0.000000e+00> : vector<1xf32>
    %210 = vector.multi_reduction <add>, %209, %cst_88 [0] : vector<8x1xf32> to vector<1xf32>
    %211 = vector.shape_cast %210 : vector<1xf32> to vector<1x1xf32>
    %cst_89 = arith.constant dense<0.000000e+00> : vector<8xf32>
    %212 = vector.multi_reduction <add>, %207, %cst_89 [1] : vector<8x4xf32> to vector<8xf32>
    %213 = vector.shape_cast %212 : vector<8xf32> to vector<8x1xf32>
    %cst_90 = arith.constant dense<0.000000e+00> : vector<1xf32>
    %214 = vector.multi_reduction <add>, %213, %cst_90 [0] : vector<8x1xf32> to vector<1xf32>
    %215 = vector.shape_cast %214 : vector<1xf32> to vector<1x1xf32>
    %cst_91 = arith.constant 0.000000e+00 : f32
    %216 = vector.broadcast %cst_91 : f32 to vector<1x1xf32>
    %217 = arith.cmpf one, %211, %216 : vector<1x1xf32>
    %cst_92 = arith.constant 1.000000e+00 : f32
    %218 = vector.broadcast %cst_92 : f32 to vector<1x1xf32>
    %219 = arith.select %217, %211, %218 : vector<1x1xi1>, vector<1x1xf32>
    %cst_93 = arith.constant 0.000000e+00 : f32
    %220 = vector.broadcast %cst_93 : f32 to vector<1x1xf32>
    %221 = arith.cmpf one, %211, %220 : vector<1x1xf32>
    %222 = tpu.reciprocal %219 {approx = true} : vector<1x1xf32> -> vector<1x1xf32>
    %223 = arith.mulf %215, %222 : vector<1x1xf32>
    %cst_94 = arith.constant 0.000000e+00 : f32
    %224 = vector.broadcast %cst_94 : f32 to vector<1x1xf32>
    %225 = arith.select %221, %223, %224 : vector<1x1xi1>, vector<1x1xf32>
    %cst_95 = arith.constant dense<0.000000e+00> : vector<8x128xf32>
    %226 = tpu.matmul %194, %5, %cst_95 {dimension_numbers = #tpu.dot_dimension_numbers<[1], [0], [0], [1], [0, 0, 1, 1], [], []>} : vector<8x4xf32>, vector<4x128xf32>, vector<8x128xf32> -> vector<8x128xf32>
    %cst_96 = arith.constant dense<0.000000e+00> : vector<8x128xf32>
    %227 = tpu.matmul %153, %6, %cst_96 {dimension_numbers = #tpu.dot_dimension_numbers<[1], [0], [0], [1], [0, 0, 1, 1], [], []>} : vector<8x4xf32>, vector<4x128xf32>, vector<8x128xf32> -> vector<8x128xf32>
    %228 = arith.addf %226, %227 : vector<8x128xf32>
    %cst_97 = arith.constant dense<0.000000e+00> : vector<8x128xf32>
    %229 = tpu.matmul %171, %7, %cst_97 {dimension_numbers = #tpu.dot_dimension_numbers<[1], [0], [0], [1], [0, 0, 1, 1], [], []>} : vector<8x32xf32>, vector<32x128xf32>, vector<8x128xf32> -> vector<8x128xf32>
    %230 = arith.addf %228, %229 : vector<8x128xf32>
    %231 = arith.addf %230, %28 : vector<8x128xf32>
    %232 = vector.extract_strided_slice %231 {offsets = [0, 0], sizes = [8, 32], strides = [1, 1]} : vector<8x128xf32> to vector<8x32xf32>
    %233 = arith.negf %232 : vector<8x32xf32>
    %234 = math.exp %233 : vector<8x32xf32>
    %cst_98 = arith.constant 1.000000e+00 : f32
    %235 = vector.broadcast %cst_98 : f32 to vector<8x32xf32>
    %236 = arith.addf %235, %234 : vector<8x32xf32>
    %237 = arith.divf %235, %236 : vector<8x32xf32>
    %238 = vector.extract_strided_slice %231 {offsets = [0, 32], sizes = [8, 32], strides = [1, 1]} : vector<8x128xf32> to vector<8x32xf32>
    %239 = arith.negf %238 : vector<8x32xf32>
    %240 = math.exp %239 : vector<8x32xf32>
    %cst_99 = arith.constant 1.000000e+00 : f32
    %241 = vector.broadcast %cst_99 : f32 to vector<8x32xf32>
    %242 = arith.addf %241, %240 : vector<8x32xf32>
    %243 = arith.divf %241, %242 : vector<8x32xf32>
    %244 = vector.extract_strided_slice %231 {offsets = [0, 64], sizes = [8, 32], strides = [1, 1]} : vector<8x128xf32> to vector<8x32xf32>
    %245 = math.tanh %244 : vector<8x32xf32>
    %246 = vector.extract_strided_slice %231 {offsets = [0, 96], sizes = [8, 32], strides = [1, 1]} : vector<8x128xf32> to vector<8x32xf32>
    %247 = arith.negf %246 : vector<8x32xf32>
    %248 = math.exp %247 : vector<8x32xf32>
    %cst_100 = arith.constant 1.000000e+00 : f32
    %249 = vector.broadcast %cst_100 : f32 to vector<8x32xf32>
    %250 = arith.addf %249, %248 : vector<8x32xf32>
    %251 = arith.divf %249, %250 : vector<8x32xf32>
    %252 = arith.mulf %243, %141 : vector<8x32xf32>
    %253 = arith.mulf %237, %245 : vector<8x32xf32>
    %254 = arith.addf %252, %253 : vector<8x32xf32>
    %255 = math.tanh %254 : vector<8x32xf32>
    %256 = arith.mulf %251, %255 : vector<8x32xf32>
    %257 = arith.addf %144, %225 : vector<1x1xf32>
    %c2_i32 = arith.constant 2 : i32
    %258 = arith.index_cast %c2_i32 : i32 to index
    %c0_101 = arith.constant 0 : index
    %c0_102 = arith.constant 0 : index
    %259 = vector.load %arg1[%258, %c0_101, %c0_102] : memref<6x8x4xf32, #tpu.memory_space<vmem>>, vector<1x8x4xf32>
    %260 = vector.shape_cast %259 : vector<1x8x4xf32> to vector<8x4xf32>
    %261 = arith.cmpf one, %260, %260 : vector<8x4xf32>
    %cst_103 = arith.constant 0.000000e+00 : f32
    %262 = vector.broadcast %cst_103 : f32 to vector<8x4xf32>
    %263 = arith.select %261, %262, %260 : vector<8x4xi1>, vector<8x4xf32>
    %264 = arith.index_cast %c2_i32 : i32 to index
    %c0_104 = arith.constant 0 : index
    %c0_105 = arith.constant 0 : index
    %265 = vector.load %arg2[%264, %c0_104, %c0_105] : memref<6x8x4xf32, #tpu.memory_space<vmem>>, vector<1x8x4xf32>
    %266 = vector.shape_cast %265 : vector<1x8x4xf32> to vector<8x4xf32>
    %267 = arith.index_cast %c2_i32 : i32 to index
    %c0_106 = arith.constant 0 : index
    %c0_107 = arith.constant 0 : index
    %268 = vector.load %arg3[%267, %c0_106, %c0_107] : memref<6x8x4xf32, #tpu.memory_space<vmem>>, vector<1x8x4xf32>
    %269 = vector.shape_cast %268 : vector<1x8x4xf32> to vector<8x4xf32>
    %cst_108 = arith.constant dense<0.000000e+00> : vector<8x32xf32>
    %270 = tpu.matmul %269, %0, %cst_108 {dimension_numbers = #tpu.dot_dimension_numbers<[1], [0], [0], [1], [0, 0, 1, 1], [], []>} : vector<8x4xf32>, vector<4x32xf32>, vector<8x32xf32> -> vector<8x32xf32>
    %271 = arith.addf %270, %16 : vector<8x32xf32>
    %cst_109 = arith.constant 0.000000e+00 : f32
    %272 = vector.broadcast %cst_109 : f32 to vector<8x32xf32>
    %273 = arith.maximumf %271, %272 : vector<8x32xf32>
    %cst_110 = arith.constant 0.000000e+00 : f32
    %274 = vector.broadcast %cst_110 : f32 to vector<8x32xf32>
    %275 = arith.subf %274, %273 : vector<8x32xf32>
    %276 = math.exp %275 : vector<8x32xf32>
    %277 = arith.mulf %269, %10 : vector<8x4xf32>
    %278 = arith.addf %277, %13 : vector<8x4xf32>
    %cst_111 = arith.constant 0.000000e+00 : f32
    %279 = vector.broadcast %cst_111 : f32 to vector<8x4xf32>
    %280 = arith.maximumf %278, %279 : vector<8x4xf32>
    %cst_112 = arith.constant 0.000000e+00 : f32
    %281 = vector.broadcast %cst_112 : f32 to vector<8x4xf32>
    %282 = arith.subf %281, %280 : vector<8x4xf32>
    %283 = math.exp %282 : vector<8x4xf32>
    %284 = arith.mulf %256, %276 : vector<8x32xf32>
    %cst_113 = arith.constant dense<0.000000e+00> : vector<8x4xf32>
    %285 = tpu.matmul %284, %1, %cst_113 {dimension_numbers = #tpu.dot_dimension_numbers<[1], [0], [0], [1], [0, 0, 1, 1], [], []>} : vector<8x32xf32>, vector<32x4xf32>, vector<8x4xf32> -> vector<8x4xf32>
    %286 = arith.addf %285, %19 : vector<8x4xf32>
    %287 = arith.mulf %266, %263 : vector<8x4xf32>
    %cst_114 = arith.constant 1.000000e+00 : f32
    %288 = vector.broadcast %cst_114 : f32 to vector<8x4xf32>
    %289 = arith.subf %288, %266 : vector<8x4xf32>
    %290 = arith.mulf %289, %286 : vector<8x4xf32>
    %291 = arith.addf %287, %290 : vector<8x4xf32>
    %cst_115 = arith.constant dense<0.000000e+00> : vector<8x4xf32>
    %292 = tpu.matmul %291, %2, %cst_115 {dimension_numbers = #tpu.dot_dimension_numbers<[1], [0], [0], [1], [0, 0, 1, 1], [], []>} : vector<8x4xf32>, vector<4x4xf32>, vector<8x4xf32> -> vector<8x4xf32>
    %293 = arith.addf %292, %22 : vector<8x4xf32>
    %cst_116 = arith.constant dense<0.000000e+00> : vector<8x4xf32>
    %294 = tpu.matmul %283, %3, %cst_116 {dimension_numbers = #tpu.dot_dimension_numbers<[1], [0], [0], [1], [0, 0, 1, 1], [], []>} : vector<8x4xf32>, vector<4x4xf32>, vector<8x4xf32> -> vector<8x4xf32>
    %cst_117 = arith.constant dense<0.000000e+00> : vector<8x4xf32>
    %295 = tpu.matmul %266, %4, %cst_117 {dimension_numbers = #tpu.dot_dimension_numbers<[1], [0], [0], [1], [0, 0, 1, 1], [], []>} : vector<8x4xf32>, vector<4x4xf32>, vector<8x4xf32> -> vector<8x4xf32>
    %296 = arith.addf %294, %295 : vector<8x4xf32>
    %297 = arith.addf %296, %25 : vector<8x4xf32>
    %298 = arith.mulf %297, %293 : vector<8x4xf32>
    %cst_118 = arith.constant 1.000000e+00 : f32
    %299 = vector.broadcast %cst_118 : f32 to vector<8x4xf32>
    %300 = arith.subf %299, %297 : vector<8x4xf32>
    %301 = arith.mulf %300, %286 : vector<8x4xf32>
    %302 = arith.addf %298, %301 : vector<8x4xf32>
    %303 = arith.mulf %266, %263 : vector<8x4xf32>
    %cst_119 = arith.constant 1.000000e+00 : f32
    %304 = vector.broadcast %cst_119 : f32 to vector<8x4xf32>
    %305 = arith.subf %304, %266 : vector<8x4xf32>
    %306 = arith.mulf %305, %302 : vector<8x4xf32>
    %307 = arith.addf %303, %306 : vector<8x4xf32>
    %308 = arith.index_cast %c2_i32 : i32 to index
    %c0_120 = arith.constant 0 : index
    %c0_121 = arith.constant 0 : index
    %309 = vector.load %arg19[%308, %c0_120, %c0_121] : memref<6x8x4xf32, #tpu.memory_space<vmem>>, vector<1x8x4xf32>
    %310 = vector.shape_cast %309 : vector<1x8x4xf32> to vector<8x4xf32>
    %311 = vector.shape_cast %307 : vector<8x4xf32> to vector<1x8x4xf32>
    tpu.vector_store %arg19[%308, %c0_120, %c0_121], %311 {strides = array<i32>} : memref<6x8x4xf32, #tpu.memory_space<vmem>>, vector<1x8x4xf32>,
    %312 = arith.subf %263, %286 : vector<8x4xf32>
    %313 = math.absf %312 : vector<8x4xf32>
    %314 = arith.subf %263, %293 : vector<8x4xf32>
    %315 = math.absf %314 : vector<8x4xf32>
    %316 = arith.addf %313, %315 : vector<8x4xf32>
    %317 = arith.subf %263, %302 : vector<8x4xf32>
    %318 = math.absf %317 : vector<8x4xf32>
    %319 = arith.addf %316, %318 : vector<8x4xf32>
    %320 = arith.mulf %319, %266 : vector<8x4xf32>
    %cst_122 = arith.constant dense<0.000000e+00> : vector<8xf32>
    %321 = vector.multi_reduction <add>, %266, %cst_122 [1] : vector<8x4xf32> to vector<8xf32>
    %322 = vector.shape_cast %321 : vector<8xf32> to vector<8x1xf32>
    %cst_123 = arith.constant dense<0.000000e+00> : vector<1xf32>
    %323 = vector.multi_reduction <add>, %322, %cst_123 [0] : vector<8x1xf32> to vector<1xf32>
    %324 = vector.shape_cast %323 : vector<1xf32> to vector<1x1xf32>
    %cst_124 = arith.constant dense<0.000000e+00> : vector<8xf32>
    %325 = vector.multi_reduction <add>, %320, %cst_124 [1] : vector<8x4xf32> to vector<8xf32>
    %326 = vector.shape_cast %325 : vector<8xf32> to vector<8x1xf32>
    %cst_125 = arith.constant dense<0.000000e+00> : vector<1xf32>
    %327 = vector.multi_reduction <add>, %326, %cst_125 [0] : vector<8x1xf32> to vector<1xf32>
    %328 = vector.shape_cast %327 : vector<1xf32> to vector<1x1xf32>
    %cst_126 = arith.constant 0.000000e+00 : f32
    %329 = vector.broadcast %cst_126 : f32 to vector<1x1xf32>
    %330 = arith.cmpf one, %324, %329 : vector<1x1xf32>
    %cst_127 = arith.constant 1.000000e+00 : f32
    %331 = vector.broadcast %cst_127 : f32 to vector<1x1xf32>
    %332 = arith.select %330, %324, %331 : vector<1x1xi1>, vector<1x1xf32>
    %cst_128 = arith.constant 0.000000e+00 : f32
    %333 = vector.broadcast %cst_128 : f32 to vector<1x1xf32>
    %334 = arith.cmpf one, %324, %333 : vector<1x1xf32>
    %335 = tpu.reciprocal %332 {approx = true} : vector<1x1xf32> -> vector<1x1xf32>
    %336 = arith.mulf %328, %335 : vector<1x1xf32>
    %cst_129 = arith.constant 0.000000e+00 : f32
    %337 = vector.broadcast %cst_129 : f32 to vector<1x1xf32>
    %338 = arith.select %334, %336, %337 : vector<1x1xi1>, vector<1x1xf32>
    %cst_130 = arith.constant dense<0.000000e+00> : vector<8x128xf32>
    %339 = tpu.matmul %307, %5, %cst_130 {dimension_numbers = #tpu.dot_dimension_numbers<[1], [0], [0], [1], [0, 0, 1, 1], [], []>} : vector<8x4xf32>, vector<4x128xf32>, vector<8x128xf32> -> vector<8x128xf32>
    %cst_131 = arith.constant dense<0.000000e+00> : vector<8x128xf32>
    %340 = tpu.matmul %266, %6, %cst_131 {dimension_numbers = #tpu.dot_dimension_numbers<[1], [0], [0], [1], [0, 0, 1, 1], [], []>} : vector<8x4xf32>, vector<4x128xf32>, vector<8x128xf32> -> vector<8x128xf32>
    %341 = arith.addf %339, %340 : vector<8x128xf32>
    %cst_132 = arith.constant dense<0.000000e+00> : vector<8x128xf32>
    %342 = tpu.matmul %284, %7, %cst_132 {dimension_numbers = #tpu.dot_dimension_numbers<[1], [0], [0], [1], [0, 0, 1, 1], [], []>} : vector<8x32xf32>, vector<32x128xf32>, vector<8x128xf32> -> vector<8x128xf32>
    %343 = arith.addf %341, %342 : vector<8x128xf32>
    %344 = arith.addf %343, %28 : vector<8x128xf32>
    %345 = vector.extract_strided_slice %344 {offsets = [0, 0], sizes = [8, 32], strides = [1, 1]} : vector<8x128xf32> to vector<8x32xf32>
    %346 = arith.negf %345 : vector<8x32xf32>
    %347 = math.exp %346 : vector<8x32xf32>
    %cst_133 = arith.constant 1.000000e+00 : f32
    %348 = vector.broadcast %cst_133 : f32 to vector<8x32xf32>
    %349 = arith.addf %348, %347 : vector<8x32xf32>
    %350 = arith.divf %348, %349 : vector<8x32xf32>
    %351 = vector.extract_strided_slice %344 {offsets = [0, 32], sizes = [8, 32], strides = [1, 1]} : vector<8x128xf32> to vector<8x32xf32>
    %352 = arith.negf %351 : vector<8x32xf32>
    %353 = math.exp %352 : vector<8x32xf32>
    %cst_134 = arith.constant 1.000000e+00 : f32
    %354 = vector.broadcast %cst_134 : f32 to vector<8x32xf32>
    %355 = arith.addf %354, %353 : vector<8x32xf32>
    %356 = arith.divf %354, %355 : vector<8x32xf32>
    %357 = vector.extract_strided_slice %344 {offsets = [0, 64], sizes = [8, 32], strides = [1, 1]} : vector<8x128xf32> to vector<8x32xf32>
    %358 = math.tanh %357 : vector<8x32xf32>
    %359 = vector.extract_strided_slice %344 {offsets = [0, 96], sizes = [8, 32], strides = [1, 1]} : vector<8x128xf32> to vector<8x32xf32>
    %360 = arith.negf %359 : vector<8x32xf32>
    %361 = math.exp %360 : vector<8x32xf32>
    %cst_135 = arith.constant 1.000000e+00 : f32
    %362 = vector.broadcast %cst_135 : f32 to vector<8x32xf32>
    %363 = arith.addf %362, %361 : vector<8x32xf32>
    %364 = arith.divf %362, %363 : vector<8x32xf32>
    %365 = arith.mulf %356, %254 : vector<8x32xf32>
    %366 = arith.mulf %350, %358 : vector<8x32xf32>
    %367 = arith.addf %365, %366 : vector<8x32xf32>
    %368 = math.tanh %367 : vector<8x32xf32>
    %369 = arith.mulf %364, %368 : vector<8x32xf32>
    %370 = arith.addf %257, %338 : vector<1x1xf32>
    %c3_i32 = arith.constant 3 : i32
    %371 = arith.index_cast %c3_i32 : i32 to index
    %c0_136 = arith.constant 0 : index
    %c0_137 = arith.constant 0 : index
    %372 = vector.load %arg1[%371, %c0_136, %c0_137] : memref<6x8x4xf32, #tpu.memory_space<vmem>>, vector<1x8x4xf32>
    %373 = vector.shape_cast %372 : vector<1x8x4xf32> to vector<8x4xf32>
    %374 = arith.cmpf one, %373, %373 : vector<8x4xf32>
    %cst_138 = arith.constant 0.000000e+00 : f32
    %375 = vector.broadcast %cst_138 : f32 to vector<8x4xf32>
    %376 = arith.select %374, %375, %373 : vector<8x4xi1>, vector<8x4xf32>
    %377 = arith.index_cast %c3_i32 : i32 to index
    %c0_139 = arith.constant 0 : index
    %c0_140 = arith.constant 0 : index
    %378 = vector.load %arg2[%377, %c0_139, %c0_140] : memref<6x8x4xf32, #tpu.memory_space<vmem>>, vector<1x8x4xf32>
    %379 = vector.shape_cast %378 : vector<1x8x4xf32> to vector<8x4xf32>
    %380 = arith.index_cast %c3_i32 : i32 to index
    %c0_141 = arith.constant 0 : index
    %c0_142 = arith.constant 0 : index
    %381 = vector.load %arg3[%380, %c0_141, %c0_142] : memref<6x8x4xf32, #tpu.memory_space<vmem>>, vector<1x8x4xf32>
    %382 = vector.shape_cast %381 : vector<1x8x4xf32> to vector<8x4xf32>
    %cst_143 = arith.constant dense<0.000000e+00> : vector<8x32xf32>
    %383 = tpu.matmul %382, %0, %cst_143 {dimension_numbers = #tpu.dot_dimension_numbers<[1], [0], [0], [1], [0, 0, 1, 1], [], []>} : vector<8x4xf32>, vector<4x32xf32>, vector<8x32xf32> -> vector<8x32xf32>
    %384 = arith.addf %383, %16 : vector<8x32xf32>
    %cst_144 = arith.constant 0.000000e+00 : f32
    %385 = vector.broadcast %cst_144 : f32 to vector<8x32xf32>
    %386 = arith.maximumf %384, %385 : vector<8x32xf32>
    %cst_145 = arith.constant 0.000000e+00 : f32
    %387 = vector.broadcast %cst_145 : f32 to vector<8x32xf32>
    %388 = arith.subf %387, %386 : vector<8x32xf32>
    %389 = math.exp %388 : vector<8x32xf32>
    %390 = arith.mulf %382, %10 : vector<8x4xf32>
    %391 = arith.addf %390, %13 : vector<8x4xf32>
    %cst_146 = arith.constant 0.000000e+00 : f32
    %392 = vector.broadcast %cst_146 : f32 to vector<8x4xf32>
    %393 = arith.maximumf %391, %392 : vector<8x4xf32>
    %cst_147 = arith.constant 0.000000e+00 : f32
    %394 = vector.broadcast %cst_147 : f32 to vector<8x4xf32>
    %395 = arith.subf %394, %393 : vector<8x4xf32>
    %396 = math.exp %395 : vector<8x4xf32>
    %397 = arith.mulf %369, %389 : vector<8x32xf32>
    %cst_148 = arith.constant dense<0.000000e+00> : vector<8x4xf32>
    %398 = tpu.matmul %397, %1, %cst_148 {dimension_numbers = #tpu.dot_dimension_numbers<[1], [0], [0], [1], [0, 0, 1, 1], [], []>} : vector<8x32xf32>, vector<32x4xf32>, vector<8x4xf32> -> vector<8x4xf32>
    %399 = arith.addf %398, %19 : vector<8x4xf32>
    %400 = arith.mulf %379, %376 : vector<8x4xf32>
    %cst_149 = arith.constant 1.000000e+00 : f32
    %401 = vector.broadcast %cst_149 : f32 to vector<8x4xf32>
    %402 = arith.subf %401, %379 : vector<8x4xf32>
    %403 = arith.mulf %402, %399 : vector<8x4xf32>
    %404 = arith.addf %400, %403 : vector<8x4xf32>
    %cst_150 = arith.constant dense<0.000000e+00> : vector<8x4xf32>
    %405 = tpu.matmul %404, %2, %cst_150 {dimension_numbers = #tpu.dot_dimension_numbers<[1], [0], [0], [1], [0, 0, 1, 1], [], []>} : vector<8x4xf32>, vector<4x4xf32>, vector<8x4xf32> -> vector<8x4xf32>
    %406 = arith.addf %405, %22 : vector<8x4xf32>
    %cst_151 = arith.constant dense<0.000000e+00> : vector<8x4xf32>
    %407 = tpu.matmul %396, %3, %cst_151 {dimension_numbers = #tpu.dot_dimension_numbers<[1], [0], [0], [1], [0, 0, 1, 1], [], []>} : vector<8x4xf32>, vector<4x4xf32>, vector<8x4xf32> -> vector<8x4xf32>
    %cst_152 = arith.constant dense<0.000000e+00> : vector<8x4xf32>
    %408 = tpu.matmul %379, %4, %cst_152 {dimension_numbers = #tpu.dot_dimension_numbers<[1], [0], [0], [1], [0, 0, 1, 1], [], []>} : vector<8x4xf32>, vector<4x4xf32>, vector<8x4xf32> -> vector<8x4xf32>
    %409 = arith.addf %407, %408 : vector<8x4xf32>
    %410 = arith.addf %409, %25 : vector<8x4xf32>
    %411 = arith.mulf %410, %406 : vector<8x4xf32>
    %cst_153 = arith.constant 1.000000e+00 : f32
    %412 = vector.broadcast %cst_153 : f32 to vector<8x4xf32>
    %413 = arith.subf %412, %410 : vector<8x4xf32>
    %414 = arith.mulf %413, %399 : vector<8x4xf32>
    %415 = arith.addf %411, %414 : vector<8x4xf32>
    %416 = arith.mulf %379, %376 : vector<8x4xf32>
    %cst_154 = arith.constant 1.000000e+00 : f32
    %417 = vector.broadcast %cst_154 : f32 to vector<8x4xf32>
    %418 = arith.subf %417, %379 : vector<8x4xf32>
    %419 = arith.mulf %418, %415 : vector<8x4xf32>
    %420 = arith.addf %416, %419 : vector<8x4xf32>
    %421 = arith.index_cast %c3_i32 : i32 to index
    %c0_155 = arith.constant 0 : index
    %c0_156 = arith.constant 0 : index
    %422 = vector.load %arg19[%421, %c0_155, %c0_156] : memref<6x8x4xf32, #tpu.memory_space<vmem>>, vector<1x8x4xf32>
    %423 = vector.shape_cast %422 : vector<1x8x4xf32> to vector<8x4xf32>
    %424 = vector.shape_cast %420 : vector<8x4xf32> to vector<1x8x4xf32>
    tpu.vector_store %arg19[%421, %c0_155, %c0_156], %424 {strides = array<i32>} : memref<6x8x4xf32, #tpu.memory_space<vmem>>, vector<1x8x4xf32>,
    %425 = arith.subf %376, %399 : vector<8x4xf32>
    %426 = math.absf %425 : vector<8x4xf32>
    %427 = arith.subf %376, %406 : vector<8x4xf32>
    %428 = math.absf %427 : vector<8x4xf32>
    %429 = arith.addf %426, %428 : vector<8x4xf32>
    %430 = arith.subf %376, %415 : vector<8x4xf32>
    %431 = math.absf %430 : vector<8x4xf32>
    %432 = arith.addf %429, %431 : vector<8x4xf32>
    %433 = arith.mulf %432, %379 : vector<8x4xf32>
    %cst_157 = arith.constant dense<0.000000e+00> : vector<8xf32>
    %434 = vector.multi_reduction <add>, %379, %cst_157 [1] : vector<8x4xf32> to vector<8xf32>
    %435 = vector.shape_cast %434 : vector<8xf32> to vector<8x1xf32>
    %cst_158 = arith.constant dense<0.000000e+00> : vector<1xf32>
    %436 = vector.multi_reduction <add>, %435, %cst_158 [0] : vector<8x1xf32> to vector<1xf32>
    %437 = vector.shape_cast %436 : vector<1xf32> to vector<1x1xf32>
    %cst_159 = arith.constant dense<0.000000e+00> : vector<8xf32>
    %438 = vector.multi_reduction <add>, %433, %cst_159 [1] : vector<8x4xf32> to vector<8xf32>
    %439 = vector.shape_cast %438 : vector<8xf32> to vector<8x1xf32>
    %cst_160 = arith.constant dense<0.000000e+00> : vector<1xf32>
    %440 = vector.multi_reduction <add>, %439, %cst_160 [0] : vector<8x1xf32> to vector<1xf32>
    %441 = vector.shape_cast %440 : vector<1xf32> to vector<1x1xf32>
    %cst_161 = arith.constant 0.000000e+00 : f32
    %442 = vector.broadcast %cst_161 : f32 to vector<1x1xf32>
    %443 = arith.cmpf one, %437, %442 : vector<1x1xf32>
    %cst_162 = arith.constant 1.000000e+00 : f32
    %444 = vector.broadcast %cst_162 : f32 to vector<1x1xf32>
    %445 = arith.select %443, %437, %444 : vector<1x1xi1>, vector<1x1xf32>
    %cst_163 = arith.constant 0.000000e+00 : f32
    %446 = vector.broadcast %cst_163 : f32 to vector<1x1xf32>
    %447 = arith.cmpf one, %437, %446 : vector<1x1xf32>
    %448 = tpu.reciprocal %445 {approx = true} : vector<1x1xf32> -> vector<1x1xf32>
    %449 = arith.mulf %441, %448 : vector<1x1xf32>
    %cst_164 = arith.constant 0.000000e+00 : f32
    %450 = vector.broadcast %cst_164 : f32 to vector<1x1xf32>
    %451 = arith.select %447, %449, %450 : vector<1x1xi1>, vector<1x1xf32>
    %cst_165 = arith.constant dense<0.000000e+00> : vector<8x128xf32>
    %452 = tpu.matmul %420, %5, %cst_165 {dimension_numbers = #tpu.dot_dimension_numbers<[1], [0], [0], [1], [0, 0, 1, 1], [], []>} : vector<8x4xf32>, vector<4x128xf32>, vector<8x128xf32> -> vector<8x128xf32>
    %cst_166 = arith.constant dense<0.000000e+00> : vector<8x128xf32>
    %453 = tpu.matmul %379, %6, %cst_166 {dimension_numbers = #tpu.dot_dimension_numbers<[1], [0], [0], [1], [0, 0, 1, 1], [], []>} : vector<8x4xf32>, vector<4x128xf32>, vector<8x128xf32> -> vector<8x128xf32>
    %454 = arith.addf %452, %453 : vector<8x128xf32>
    %cst_167 = arith.constant dense<0.000000e+00> : vector<8x128xf32>
    %455 = tpu.matmul %397, %7, %cst_167 {dimension_numbers = #tpu.dot_dimension_numbers<[1], [0], [0], [1], [0, 0, 1, 1], [], []>} : vector<8x32xf32>, vector<32x128xf32>, vector<8x128xf32> -> vector<8x128xf32>
    %456 = arith.addf %454, %455 : vector<8x128xf32>
    %457 = arith.addf %456, %28 : vector<8x128xf32>
    %458 = vector.extract_strided_slice %457 {offsets = [0, 0], sizes = [8, 32], strides = [1, 1]} : vector<8x128xf32> to vector<8x32xf32>
    %459 = arith.negf %458 : vector<8x32xf32>
    %460 = math.exp %459 : vector<8x32xf32>
    %cst_168 = arith.constant 1.000000e+00 : f32
    %461 = vector.broadcast %cst_168 : f32 to vector<8x32xf32>
    %462 = arith.addf %461, %460 : vector<8x32xf32>
    %463 = arith.divf %461, %462 : vector<8x32xf32>
    %464 = vector.extract_strided_slice %457 {offsets = [0, 32], sizes = [8, 32], strides = [1, 1]} : vector<8x128xf32> to vector<8x32xf32>
    %465 = arith.negf %464 : vector<8x32xf32>
    %466 = math.exp %465 : vector<8x32xf32>
    %cst_169 = arith.constant 1.000000e+00 : f32
    %467 = vector.broadcast %cst_169 : f32 to vector<8x32xf32>
    %468 = arith.addf %467, %466 : vector<8x32xf32>
    %469 = arith.divf %467, %468 : vector<8x32xf32>
    %470 = vector.extract_strided_slice %457 {offsets = [0, 64], sizes = [8, 32], strides = [1, 1]} : vector<8x128xf32> to vector<8x32xf32>
    %471 = math.tanh %470 : vector<8x32xf32>
    %472 = vector.extract_strided_slice %457 {offsets = [0, 96], sizes = [8, 32], strides = [1, 1]} : vector<8x128xf32> to vector<8x32xf32>
    %473 = arith.negf %472 : vector<8x32xf32>
    %474 = math.exp %473 : vector<8x32xf32>
    %cst_170 = arith.constant 1.000000e+00 : f32
    %475 = vector.broadcast %cst_170 : f32 to vector<8x32xf32>
    %476 = arith.addf %475, %474 : vector<8x32xf32>
    %477 = arith.divf %475, %476 : vector<8x32xf32>
    %478 = arith.mulf %469, %367 : vector<8x32xf32>
    %479 = arith.mulf %463, %471 : vector<8x32xf32>
    %480 = arith.addf %478, %479 : vector<8x32xf32>
    %481 = math.tanh %480 : vector<8x32xf32>
    %482 = arith.mulf %477, %481 : vector<8x32xf32>
    %483 = arith.addf %370, %451 : vector<1x1xf32>
    %c4_i32 = arith.constant 4 : i32
    %484 = arith.index_cast %c4_i32 : i32 to index
    %c0_171 = arith.constant 0 : index
    %c0_172 = arith.constant 0 : index
    %485 = vector.load %arg1[%484, %c0_171, %c0_172] : memref<6x8x4xf32, #tpu.memory_space<vmem>>, vector<1x8x4xf32>
    %486 = vector.shape_cast %485 : vector<1x8x4xf32> to vector<8x4xf32>
    %487 = arith.cmpf one, %486, %486 : vector<8x4xf32>
    %cst_173 = arith.constant 0.000000e+00 : f32
    %488 = vector.broadcast %cst_173 : f32 to vector<8x4xf32>
    %489 = arith.select %487, %488, %486 : vector<8x4xi1>, vector<8x4xf32>
    %490 = arith.index_cast %c4_i32 : i32 to index
    %c0_174 = arith.constant 0 : index
    %c0_175 = arith.constant 0 : index
    %491 = vector.load %arg2[%490, %c0_174, %c0_175] : memref<6x8x4xf32, #tpu.memory_space<vmem>>, vector<1x8x4xf32>
    %492 = vector.shape_cast %491 : vector<1x8x4xf32> to vector<8x4xf32>
    %493 = arith.index_cast %c4_i32 : i32 to index
    %c0_176 = arith.constant 0 : index
    %c0_177 = arith.constant 0 : index
    %494 = vector.load %arg3[%493, %c0_176, %c0_177] : memref<6x8x4xf32, #tpu.memory_space<vmem>>, vector<1x8x4xf32>
    %495 = vector.shape_cast %494 : vector<1x8x4xf32> to vector<8x4xf32>
    %cst_178 = arith.constant dense<0.000000e+00> : vector<8x32xf32>
    %496 = tpu.matmul %495, %0, %cst_178 {dimension_numbers = #tpu.dot_dimension_numbers<[1], [0], [0], [1], [0, 0, 1, 1], [], []>} : vector<8x4xf32>, vector<4x32xf32>, vector<8x32xf32> -> vector<8x32xf32>
    %497 = arith.addf %496, %16 : vector<8x32xf32>
    %cst_179 = arith.constant 0.000000e+00 : f32
    %498 = vector.broadcast %cst_179 : f32 to vector<8x32xf32>
    %499 = arith.maximumf %497, %498 : vector<8x32xf32>
    %cst_180 = arith.constant 0.000000e+00 : f32
    %500 = vector.broadcast %cst_180 : f32 to vector<8x32xf32>
    %501 = arith.subf %500, %499 : vector<8x32xf32>
    %502 = math.exp %501 : vector<8x32xf32>
    %503 = arith.mulf %495, %10 : vector<8x4xf32>
    %504 = arith.addf %503, %13 : vector<8x4xf32>
    %cst_181 = arith.constant 0.000000e+00 : f32
    %505 = vector.broadcast %cst_181 : f32 to vector<8x4xf32>
    %506 = arith.maximumf %504, %505 : vector<8x4xf32>
    %cst_182 = arith.constant 0.000000e+00 : f32
    %507 = vector.broadcast %cst_182 : f32 to vector<8x4xf32>
    %508 = arith.subf %507, %506 : vector<8x4xf32>
    %509 = math.exp %508 : vector<8x4xf32>
    %510 = arith.mulf %482, %502 : vector<8x32xf32>
    %cst_183 = arith.constant dense<0.000000e+00> : vector<8x4xf32>
    %511 = tpu.matmul %510, %1, %cst_183 {dimension_numbers = #tpu.dot_dimension_numbers<[1], [0], [0], [1], [0, 0, 1, 1], [], []>} : vector<8x32xf32>, vector<32x4xf32>, vector<8x4xf32> -> vector<8x4xf32>
    %512 = arith.addf %511, %19 : vector<8x4xf32>
    %513 = arith.mulf %492, %489 : vector<8x4xf32>
    %cst_184 = arith.constant 1.000000e+00 : f32
    %514 = vector.broadcast %cst_184 : f32 to vector<8x4xf32>
    %515 = arith.subf %514, %492 : vector<8x4xf32>
    %516 = arith.mulf %515, %512 : vector<8x4xf32>
    %517 = arith.addf %513, %516 : vector<8x4xf32>
    %cst_185 = arith.constant dense<0.000000e+00> : vector<8x4xf32>
    %518 = tpu.matmul %517, %2, %cst_185 {dimension_numbers = #tpu.dot_dimension_numbers<[1], [0], [0], [1], [0, 0, 1, 1], [], []>} : vector<8x4xf32>, vector<4x4xf32>, vector<8x4xf32> -> vector<8x4xf32>
    %519 = arith.addf %518, %22 : vector<8x4xf32>
    %cst_186 = arith.constant dense<0.000000e+00> : vector<8x4xf32>
    %520 = tpu.matmul %509, %3, %cst_186 {dimension_numbers = #tpu.dot_dimension_numbers<[1], [0], [0], [1], [0, 0, 1, 1], [], []>} : vector<8x4xf32>, vector<4x4xf32>, vector<8x4xf32> -> vector<8x4xf32>
    %cst_187 = arith.constant dense<0.000000e+00> : vector<8x4xf32>
    %521 = tpu.matmul %492, %4, %cst_187 {dimension_numbers = #tpu.dot_dimension_numbers<[1], [0], [0], [1], [0, 0, 1, 1], [], []>} : vector<8x4xf32>, vector<4x4xf32>, vector<8x4xf32> -> vector<8x4xf32>
    %522 = arith.addf %520, %521 : vector<8x4xf32>
    %523 = arith.addf %522, %25 : vector<8x4xf32>
    %524 = arith.mulf %523, %519 : vector<8x4xf32>
    %cst_188 = arith.constant 1.000000e+00 : f32
    %525 = vector.broadcast %cst_188 : f32 to vector<8x4xf32>
    %526 = arith.subf %525, %523 : vector<8x4xf32>
    %527 = arith.mulf %526, %512 : vector<8x4xf32>
    %528 = arith.addf %524, %527 : vector<8x4xf32>
    %529 = arith.mulf %492, %489 : vector<8x4xf32>
    %cst_189 = arith.constant 1.000000e+00 : f32
    %530 = vector.broadcast %cst_189 : f32 to vector<8x4xf32>
    %531 = arith.subf %530, %492 : vector<8x4xf32>
    %532 = arith.mulf %531, %528 : vector<8x4xf32>
    %533 = arith.addf %529, %532 : vector<8x4xf32>
    %534 = arith.index_cast %c4_i32 : i32 to index
    %c0_190 = arith.constant 0 : index
    %c0_191 = arith.constant 0 : index
    %535 = vector.load %arg19[%534, %c0_190, %c0_191] : memref<6x8x4xf32, #tpu.memory_space<vmem>>, vector<1x8x4xf32>
    %536 = vector.shape_cast %535 : vector<1x8x4xf32> to vector<8x4xf32>
    %537 = vector.shape_cast %533 : vector<8x4xf32> to vector<1x8x4xf32>
    tpu.vector_store %arg19[%534, %c0_190, %c0_191], %537 {strides = array<i32>} : memref<6x8x4xf32, #tpu.memory_space<vmem>>, vector<1x8x4xf32>,
    %538 = arith.subf %489, %512 : vector<8x4xf32>
    %539 = math.absf %538 : vector<8x4xf32>
    %540 = arith.subf %489, %519 : vector<8x4xf32>
    %541 = math.absf %540 : vector<8x4xf32>
    %542 = arith.addf %539, %541 : vector<8x4xf32>
    %543 = arith.subf %489, %528 : vector<8x4xf32>
    %544 = math.absf %543 : vector<8x4xf32>
    %545 = arith.addf %542, %544 : vector<8x4xf32>
    %546 = arith.mulf %545, %492 : vector<8x4xf32>
    %cst_192 = arith.constant dense<0.000000e+00> : vector<8xf32>
    %547 = vector.multi_reduction <add>, %492, %cst_192 [1] : vector<8x4xf32> to vector<8xf32>
    %548 = vector.shape_cast %547 : vector<8xf32> to vector<8x1xf32>
    %cst_193 = arith.constant dense<0.000000e+00> : vector<1xf32>
    %549 = vector.multi_reduction <add>, %548, %cst_193 [0] : vector<8x1xf32> to vector<1xf32>
    %550 = vector.shape_cast %549 : vector<1xf32> to vector<1x1xf32>
    %cst_194 = arith.constant dense<0.000000e+00> : vector<8xf32>
    %551 = vector.multi_reduction <add>, %546, %cst_194 [1] : vector<8x4xf32> to vector<8xf32>
    %552 = vector.shape_cast %551 : vector<8xf32> to vector<8x1xf32>
    %cst_195 = arith.constant dense<0.000000e+00> : vector<1xf32>
    %553 = vector.multi_reduction <add>, %552, %cst_195 [0] : vector<8x1xf32> to vector<1xf32>
    %554 = vector.shape_cast %553 : vector<1xf32> to vector<1x1xf32>
    %cst_196 = arith.constant 0.000000e+00 : f32
    %555 = vector.broadcast %cst_196 : f32 to vector<1x1xf32>
    %556 = arith.cmpf one, %550, %555 : vector<1x1xf32>
    %cst_197 = arith.constant 1.000000e+00 : f32
    %557 = vector.broadcast %cst_197 : f32 to vector<1x1xf32>
    %558 = arith.select %556, %550, %557 : vector<1x1xi1>, vector<1x1xf32>
    %cst_198 = arith.constant 0.000000e+00 : f32
    %559 = vector.broadcast %cst_198 : f32 to vector<1x1xf32>
    %560 = arith.cmpf one, %550, %559 : vector<1x1xf32>
    %561 = tpu.reciprocal %558 {approx = true} : vector<1x1xf32> -> vector<1x1xf32>
    %562 = arith.mulf %554, %561 : vector<1x1xf32>
    %cst_199 = arith.constant 0.000000e+00 : f32
    %563 = vector.broadcast %cst_199 : f32 to vector<1x1xf32>
    %564 = arith.select %560, %562, %563 : vector<1x1xi1>, vector<1x1xf32>
    %cst_200 = arith.constant dense<0.000000e+00> : vector<8x128xf32>
    %565 = tpu.matmul %533, %5, %cst_200 {dimension_numbers = #tpu.dot_dimension_numbers<[1], [0], [0], [1], [0, 0, 1, 1], [], []>} : vector<8x4xf32>, vector<4x128xf32>, vector<8x128xf32> -> vector<8x128xf32>
    %cst_201 = arith.constant dense<0.000000e+00> : vector<8x128xf32>
    %566 = tpu.matmul %492, %6, %cst_201 {dimension_numbers = #tpu.dot_dimension_numbers<[1], [0], [0], [1], [0, 0, 1, 1], [], []>} : vector<8x4xf32>, vector<4x128xf32>, vector<8x128xf32> -> vector<8x128xf32>
    %567 = arith.addf %565, %566 : vector<8x128xf32>
    %cst_202 = arith.constant dense<0.000000e+00> : vector<8x128xf32>
    %568 = tpu.matmul %510, %7, %cst_202 {dimension_numbers = #tpu.dot_dimension_numbers<[1], [0], [0], [1], [0, 0, 1, 1], [], []>} : vector<8x32xf32>, vector<32x128xf32>, vector<8x128xf32> -> vector<8x128xf32>
    %569 = arith.addf %567, %568 : vector<8x128xf32>
    %570 = arith.addf %569, %28 : vector<8x128xf32>
    %571 = vector.extract_strided_slice %570 {offsets = [0, 0], sizes = [8, 32], strides = [1, 1]} : vector<8x128xf32> to vector<8x32xf32>
    %572 = arith.negf %571 : vector<8x32xf32>
    %573 = math.exp %572 : vector<8x32xf32>
    %cst_203 = arith.constant 1.000000e+00 : f32
    %574 = vector.broadcast %cst_203 : f32 to vector<8x32xf32>
    %575 = arith.addf %574, %573 : vector<8x32xf32>
    %576 = arith.divf %574, %575 : vector<8x32xf32>
    %577 = vector.extract_strided_slice %570 {offsets = [0, 32], sizes = [8, 32], strides = [1, 1]} : vector<8x128xf32> to vector<8x32xf32>
    %578 = arith.negf %577 : vector<8x32xf32>
    %579 = math.exp %578 : vector<8x32xf32>
    %cst_204 = arith.constant 1.000000e+00 : f32
    %580 = vector.broadcast %cst_204 : f32 to vector<8x32xf32>
    %581 = arith.addf %580, %579 : vector<8x32xf32>
    %582 = arith.divf %580, %581 : vector<8x32xf32>
    %583 = vector.extract_strided_slice %570 {offsets = [0, 64], sizes = [8, 32], strides = [1, 1]} : vector<8x128xf32> to vector<8x32xf32>
    %584 = math.tanh %583 : vector<8x32xf32>
    %585 = vector.extract_strided_slice %570 {offsets = [0, 96], sizes = [8, 32], strides = [1, 1]} : vector<8x128xf32> to vector<8x32xf32>
    %586 = arith.negf %585 : vector<8x32xf32>
    %587 = math.exp %586 : vector<8x32xf32>
    %cst_205 = arith.constant 1.000000e+00 : f32
    %588 = vector.broadcast %cst_205 : f32 to vector<8x32xf32>
    %589 = arith.addf %588, %587 : vector<8x32xf32>
    %590 = arith.divf %588, %589 : vector<8x32xf32>
    %591 = arith.mulf %582, %480 : vector<8x32xf32>
    %592 = arith.mulf %576, %584 : vector<8x32xf32>
    %593 = arith.addf %591, %592 : vector<8x32xf32>
    %594 = math.tanh %593 : vector<8x32xf32>
    %595 = arith.mulf %590, %594 : vector<8x32xf32>
    %596 = arith.addf %483, %564 : vector<1x1xf32>
    %c5_i32 = arith.constant 5 : i32
    %597 = arith.index_cast %c5_i32 : i32 to index
    %c0_206 = arith.constant 0 : index
    %c0_207 = arith.constant 0 : index
    %598 = vector.load %arg1[%597, %c0_206, %c0_207] : memref<6x8x4xf32, #tpu.memory_space<vmem>>, vector<1x8x4xf32>
    %599 = vector.shape_cast %598 : vector<1x8x4xf32> to vector<8x4xf32>
    %600 = arith.cmpf one, %599, %599 : vector<8x4xf32>
    %cst_208 = arith.constant 0.000000e+00 : f32
    %601 = vector.broadcast %cst_208 : f32 to vector<8x4xf32>
    %602 = arith.select %600, %601, %599 : vector<8x4xi1>, vector<8x4xf32>
    %603 = arith.index_cast %c5_i32 : i32 to index
    %c0_209 = arith.constant 0 : index
    %c0_210 = arith.constant 0 : index
    %604 = vector.load %arg2[%603, %c0_209, %c0_210] : memref<6x8x4xf32, #tpu.memory_space<vmem>>, vector<1x8x4xf32>
    %605 = vector.shape_cast %604 : vector<1x8x4xf32> to vector<8x4xf32>
    %606 = arith.index_cast %c5_i32 : i32 to index
    %c0_211 = arith.constant 0 : index
    %c0_212 = arith.constant 0 : index
    %607 = vector.load %arg3[%606, %c0_211, %c0_212] : memref<6x8x4xf32, #tpu.memory_space<vmem>>, vector<1x8x4xf32>
    %608 = vector.shape_cast %607 : vector<1x8x4xf32> to vector<8x4xf32>
    %cst_213 = arith.constant dense<0.000000e+00> : vector<8x32xf32>
    %609 = tpu.matmul %608, %0, %cst_213 {dimension_numbers = #tpu.dot_dimension_numbers<[1], [0], [0], [1], [0, 0, 1, 1], [], []>} : vector<8x4xf32>, vector<4x32xf32>, vector<8x32xf32> -> vector<8x32xf32>
    %610 = arith.addf %609, %16 : vector<8x32xf32>
    %cst_214 = arith.constant 0.000000e+00 : f32
    %611 = vector.broadcast %cst_214 : f32 to vector<8x32xf32>
    %612 = arith.maximumf %610, %611 : vector<8x32xf32>
    %cst_215 = arith.constant 0.000000e+00 : f32
    %613 = vector.broadcast %cst_215 : f32 to vector<8x32xf32>
    %614 = arith.subf %613, %612 : vector<8x32xf32>
    %615 = math.exp %614 : vector<8x32xf32>
    %616 = arith.mulf %608, %10 : vector<8x4xf32>
    %617 = arith.addf %616, %13 : vector<8x4xf32>
    %cst_216 = arith.constant 0.000000e+00 : f32
    %618 = vector.broadcast %cst_216 : f32 to vector<8x4xf32>
    %619 = arith.maximumf %617, %618 : vector<8x4xf32>
    %cst_217 = arith.constant 0.000000e+00 : f32
    %620 = vector.broadcast %cst_217 : f32 to vector<8x4xf32>
    %621 = arith.subf %620, %619 : vector<8x4xf32>
    %622 = math.exp %621 : vector<8x4xf32>
    %623 = arith.mulf %595, %615 : vector<8x32xf32>
    %cst_218 = arith.constant dense<0.000000e+00> : vector<8x4xf32>
    %624 = tpu.matmul %623, %1, %cst_218 {dimension_numbers = #tpu.dot_dimension_numbers<[1], [0], [0], [1], [0, 0, 1, 1], [], []>} : vector<8x32xf32>, vector<32x4xf32>, vector<8x4xf32> -> vector<8x4xf32>
    %625 = arith.addf %624, %19 : vector<8x4xf32>
    %626 = arith.mulf %605, %602 : vector<8x4xf32>
    %cst_219 = arith.constant 1.000000e+00 : f32
    %627 = vector.broadcast %cst_219 : f32 to vector<8x4xf32>
    %628 = arith.subf %627, %605 : vector<8x4xf32>
    %629 = arith.mulf %628, %625 : vector<8x4xf32>
    %630 = arith.addf %626, %629 : vector<8x4xf32>
    %cst_220 = arith.constant dense<0.000000e+00> : vector<8x4xf32>
    %631 = tpu.matmul %630, %2, %cst_220 {dimension_numbers = #tpu.dot_dimension_numbers<[1], [0], [0], [1], [0, 0, 1, 1], [], []>} : vector<8x4xf32>, vector<4x4xf32>, vector<8x4xf32> -> vector<8x4xf32>
    %632 = arith.addf %631, %22 : vector<8x4xf32>
    %cst_221 = arith.constant dense<0.000000e+00> : vector<8x4xf32>
    %633 = tpu.matmul %622, %3, %cst_221 {dimension_numbers = #tpu.dot_dimension_numbers<[1], [0], [0], [1], [0, 0, 1, 1], [], []>} : vector<8x4xf32>, vector<4x4xf32>, vector<8x4xf32> -> vector<8x4xf32>
    %cst_222 = arith.constant dense<0.000000e+00> : vector<8x4xf32>
    %634 = tpu.matmul %605, %4, %cst_222 {dimension_numbers = #tpu.dot_dimension_numbers<[1], [0], [0], [1], [0, 0, 1, 1], [], []>} : vector<8x4xf32>, vector<4x4xf32>, vector<8x4xf32> -> vector<8x4xf32>
    %635 = arith.addf %633, %634 : vector<8x4xf32>
    %636 = arith.addf %635, %25 : vector<8x4xf32>
    %637 = arith.mulf %636, %632 : vector<8x4xf32>
    %cst_223 = arith.constant 1.000000e+00 : f32
    %638 = vector.broadcast %cst_223 : f32 to vector<8x4xf32>
    %639 = arith.subf %638, %636 : vector<8x4xf32>
    %640 = arith.mulf %639, %625 : vector<8x4xf32>
    %641 = arith.addf %637, %640 : vector<8x4xf32>
    %642 = arith.mulf %605, %602 : vector<8x4xf32>
    %cst_224 = arith.constant 1.000000e+00 : f32
    %643 = vector.broadcast %cst_224 : f32 to vector<8x4xf32>
    %644 = arith.subf %643, %605 : vector<8x4xf32>
    %645 = arith.mulf %644, %641 : vector<8x4xf32>
    %646 = arith.addf %642, %645 : vector<8x4xf32>
    %647 = arith.index_cast %c5_i32 : i32 to index
    %c0_225 = arith.constant 0 : index
    %c0_226 = arith.constant 0 : index
    %648 = vector.load %arg19[%647, %c0_225, %c0_226] : memref<6x8x4xf32, #tpu.memory_space<vmem>>, vector<1x8x4xf32>
    %649 = vector.shape_cast %648 : vector<1x8x4xf32> to vector<8x4xf32>
    %650 = vector.shape_cast %646 : vector<8x4xf32> to vector<1x8x4xf32>
    tpu.vector_store %arg19[%647, %c0_225, %c0_226], %650 {strides = array<i32>} : memref<6x8x4xf32, #tpu.memory_space<vmem>>, vector<1x8x4xf32>,
    %651 = arith.subf %602, %625 : vector<8x4xf32>
    %652 = math.absf %651 : vector<8x4xf32>
    %653 = arith.subf %602, %632 : vector<8x4xf32>
    %654 = math.absf %653 : vector<8x4xf32>
    %655 = arith.addf %652, %654 : vector<8x4xf32>
    %656 = arith.subf %602, %641 : vector<8x4xf32>
    %657 = math.absf %656 : vector<8x4xf32>
    %658 = arith.addf %655, %657 : vector<8x4xf32>
    %659 = arith.mulf %658, %605 : vector<8x4xf32>
    %cst_227 = arith.constant dense<0.000000e+00> : vector<8xf32>
    %660 = vector.multi_reduction <add>, %605, %cst_227 [1] : vector<8x4xf32> to vector<8xf32>
    %661 = vector.shape_cast %660 : vector<8xf32> to vector<8x1xf32>
    %cst_228 = arith.constant dense<0.000000e+00> : vector<1xf32>
    %662 = vector.multi_reduction <add>, %661, %cst_228 [0] : vector<8x1xf32> to vector<1xf32>
    %663 = vector.shape_cast %662 : vector<1xf32> to vector<1x1xf32>
    %cst_229 = arith.constant dense<0.000000e+00> : vector<8xf32>
    %664 = vector.multi_reduction <add>, %659, %cst_229 [1] : vector<8x4xf32> to vector<8xf32>
    %665 = vector.shape_cast %664 : vector<8xf32> to vector<8x1xf32>
    %cst_230 = arith.constant dense<0.000000e+00> : vector<1xf32>
    %666 = vector.multi_reduction <add>, %665, %cst_230 [0] : vector<8x1xf32> to vector<1xf32>
    %667 = vector.shape_cast %666 : vector<1xf32> to vector<1x1xf32>
    %cst_231 = arith.constant 0.000000e+00 : f32
    %668 = vector.broadcast %cst_231 : f32 to vector<1x1xf32>
    %669 = arith.cmpf one, %663, %668 : vector<1x1xf32>
    %cst_232 = arith.constant 1.000000e+00 : f32
    %670 = vector.broadcast %cst_232 : f32 to vector<1x1xf32>
    %671 = arith.select %669, %663, %670 : vector<1x1xi1>, vector<1x1xf32>
    %cst_233 = arith.constant 0.000000e+00 : f32
    %672 = vector.broadcast %cst_233 : f32 to vector<1x1xf32>
    %673 = arith.cmpf one, %663, %672 : vector<1x1xf32>
    %674 = tpu.reciprocal %671 {approx = true} : vector<1x1xf32> -> vector<1x1xf32>
    %675 = arith.mulf %667, %674 : vector<1x1xf32>
    %cst_234 = arith.constant 0.000000e+00 : f32
    %676 = vector.broadcast %cst_234 : f32 to vector<1x1xf32>
    %677 = arith.select %673, %675, %676 : vector<1x1xi1>, vector<1x1xf32>
    %cst_235 = arith.constant dense<0.000000e+00> : vector<8x128xf32>
    %678 = tpu.matmul %646, %5, %cst_235 {dimension_numbers = #tpu.dot_dimension_numbers<[1], [0], [0], [1], [0, 0, 1, 1], [], []>} : vector<8x4xf32>, vector<4x128xf32>, vector<8x128xf32> -> vector<8x128xf32>
    %cst_236 = arith.constant dense<0.000000e+00> : vector<8x128xf32>
    %679 = tpu.matmul %605, %6, %cst_236 {dimension_numbers = #tpu.dot_dimension_numbers<[1], [0], [0], [1], [0, 0, 1, 1], [], []>} : vector<8x4xf32>, vector<4x128xf32>, vector<8x128xf32> -> vector<8x128xf32>
    %680 = arith.addf %678, %679 : vector<8x128xf32>
    %cst_237 = arith.constant dense<0.000000e+00> : vector<8x128xf32>
    %681 = tpu.matmul %623, %7, %cst_237 {dimension_numbers = #tpu.dot_dimension_numbers<[1], [0], [0], [1], [0, 0, 1, 1], [], []>} : vector<8x32xf32>, vector<32x128xf32>, vector<8x128xf32> -> vector<8x128xf32>
    %682 = arith.addf %680, %681 : vector<8x128xf32>
    %683 = arith.addf %682, %28 : vector<8x128xf32>
    %684 = vector.extract_strided_slice %683 {offsets = [0, 0], sizes = [8, 32], strides = [1, 1]} : vector<8x128xf32> to vector<8x32xf32>
    %685 = arith.negf %684 : vector<8x32xf32>
    %686 = math.exp %685 : vector<8x32xf32>
    %cst_238 = arith.constant 1.000000e+00 : f32
    %687 = vector.broadcast %cst_238 : f32 to vector<8x32xf32>
    %688 = arith.addf %687, %686 : vector<8x32xf32>
    %689 = arith.divf %687, %688 : vector<8x32xf32>
    %690 = vector.extract_strided_slice %683 {offsets = [0, 32], sizes = [8, 32], strides = [1, 1]} : vector<8x128xf32> to vector<8x32xf32>
    %691 = arith.negf %690 : vector<8x32xf32>
    %692 = math.exp %691 : vector<8x32xf32>
    %cst_239 = arith.constant 1.000000e+00 : f32
    %693 = vector.broadcast %cst_239 : f32 to vector<8x32xf32>
    %694 = arith.addf %693, %692 : vector<8x32xf32>
    %695 = arith.divf %693, %694 : vector<8x32xf32>
    %696 = vector.extract_strided_slice %683 {offsets = [0, 64], sizes = [8, 32], strides = [1, 1]} : vector<8x128xf32> to vector<8x32xf32>
    %697 = math.tanh %696 : vector<8x32xf32>
    %698 = vector.extract_strided_slice %683 {offsets = [0, 96], sizes = [8, 32], strides = [1, 1]} : vector<8x128xf32> to vector<8x32xf32>
    %699 = arith.negf %698 : vector<8x32xf32>
    %700 = math.exp %699 : vector<8x32xf32>
    %cst_240 = arith.constant 1.000000e+00 : f32
    %701 = vector.broadcast %cst_240 : f32 to vector<8x32xf32>
    %702 = arith.addf %701, %700 : vector<8x32xf32>
    %703 = arith.divf %701, %702 : vector<8x32xf32>
    %704 = arith.mulf %695, %593 : vector<8x32xf32>
    %705 = arith.mulf %689, %697 : vector<8x32xf32>
    %706 = arith.addf %704, %705 : vector<8x32xf32>
    %707 = math.tanh %706 : vector<8x32xf32>
    %708 = arith.mulf %703, %707 : vector<8x32xf32>
    %709 = arith.addf %596, %677 : vector<1x1xf32>
    %c6_i32 = arith.constant 6 : i32
    %cst_241 = arith.constant 0.166666672 : f32
    %710 = vector.broadcast %cst_241 : f32 to vector<1x1xf32>
    %711 = arith.mulf %709, %710 : vector<1x1xf32>
    %c0_242 = arith.constant 0 : index
    %c0_243 = arith.constant 0 : index
    %712 = vector.load %arg20[%c0_242, %c0_243] : memref<1x1xf32, #tpu.memory_space<vmem>>, vector<1x1xf32>
    tpu.vector_store %arg20[%c0_242, %c0_243], %711 {strides = array<i32>} : memref<1x1xf32, #tpu.memory_space<vmem>>, vector<1x1xf32>,
    return
  }
  func.func @transform_0(%arg0: i32) -> (i32, i32, i32) {
    %c0_i32 = arith.constant 0 : i32
    %c0_i32_0 = arith.constant 0 : i32
    %c0_i32_1 = arith.constant 0 : i32
    %c0_i32_2 = arith.constant 0 : i32
    return %c0_i32, %c0_i32_0, %c0_i32_1 : i32, i32, i32
  }
  func.func @transform_1(%arg0: i32) -> (i32, i32, i32) {
    %c0_i32 = arith.constant 0 : i32
    %c0_i32_0 = arith.constant 0 : i32
    %c0_i32_1 = arith.constant 0 : i32
    %c0_i32_2 = arith.constant 0 : i32
    return %c0_i32, %c0_i32_0, %c0_i32_1 : i32, i32, i32
  }
  func.func @transform_2(%arg0: i32) -> (i32, i32, i32) {
    %c0_i32 = arith.constant 0 : i32
    %c0_i32_0 = arith.constant 0 : i32
    %c0_i32_1 = arith.constant 0 : i32
    %c0_i32_2 = arith.constant 0 : i32
    return %c0_i32, %c0_i32_0, %c0_i32_1 : i32, i32, i32
  }
  func.func @transform_3(%arg0: i32) -> (i32, i32) {
    %c0_i32 = arith.constant 0 : i32
    %c0_i32_0 = arith.constant 0 : i32
    %c0_i32_1 = arith.constant 0 : i32
    return %c0_i32, %c0_i32_0 : i32, i32
  }
  func.func @transform_4(%arg0: i32) -> (i32, i32) {
    %c0_i32 = arith.constant 0 : i32
    %c0_i32_0 = arith.constant 0 : i32
    %c0_i32_1 = arith.constant 0 : i32
    return %c0_i32, %c0_i32_0 : i32, i32
  }
  func.func @transform_5(%arg0: i32) -> (i32, i32) {
    %c0_i32 = arith.constant 0 : i32
    %c0_i32_0 = arith.constant 0 : i32
    %c0_i32_1 = arith.constant 0 : i32
    return %c0_i32, %c0_i32_0 : i32, i32
  }
  func.func @transform_6(%arg0: i32) -> (i32, i32) {
    %c0_i32 = arith.constant 0 : i32
    %c0_i32_0 = arith.constant 0 : i32
    %c0_i32_1 = arith.constant 0 : i32
    return %c0_i32, %c0_i32_0 : i32, i32
  }
  func.func @transform_7(%arg0: i32) -> (i32, i32) {
    %c0_i32 = arith.constant 0 : i32
    %c0_i32_0 = arith.constant 0 : i32
    %c0_i32_1 = arith.constant 0 : i32
    return %c0_i32, %c0_i32_0 : i32, i32
  }
  func.func @transform_8(%arg0: i32) -> (i32, i32) {
    %c0_i32 = arith.constant 0 : i32
    %c0_i32_0 = arith.constant 0 : i32
    %c0_i32_1 = arith.constant 0 : i32
    return %c0_i32, %c0_i32_0 : i32, i32
  }
  func.func @transform_9(%arg0: i32) -> (i32, i32) {
    %c0_i32 = arith.constant 0 : i32
    %c0_i32_0 = arith.constant 0 : i32
    %c0_i32_1 = arith.constant 0 : i32
    return %c0_i32, %c0_i32_0 : i32, i32
  }
  func.func @transform_10(%arg0: i32) -> (i32, i32) {
    %c0_i32 = arith.constant 0 : i32
    %c0_i32_0 = arith.constant 0 : i32
    %c0_i32_1 = arith.constant 0 : i32
    return %c0_i32, %c0_i32_0 : i32, i32
  }
  func.func @transform_11(%arg0: i32) -> (i32, i32) {
    %c0_i32 = arith.constant 0 : i32
    %c0_i32_0 = arith.constant 0 : i32
    %c0_i32_1 = arith.constant 0 : i32
    return %c0_i32, %c0_i32_0 : i32, i32
  }
  func.func @transform_12(%arg0: i32) -> (i32, i32) {
    %c0_i32 = arith.constant 0 : i32
    %c0_i32_0 = arith.constant 0 : i32
    %c0_i32_1 = arith.constant 0 : i32
    return %c0_i32, %c0_i32_0 : i32, i32
  }
  func.func @transform_13(%arg0: i32) -> (i32, i32) {
    %c0_i32 = arith.constant 0 : i32
    %c0_i32_0 = arith.constant 0 : i32
    %c0_i32_1 = arith.constant 0 : i32
    return %c0_i32, %c0_i32_0 : i32, i32
  }
  func.func @transform_14(%arg0: i32) -> (i32, i32) {
    %c0_i32 = arith.constant 0 : i32
    %c0_i32_0 = arith.constant 0 : i32
    %c0_i32_1 = arith.constant 0 : i32
    return %c0_i32, %c0_i32_0 : i32, i32
  }
  func.func @transform_15(%arg0: i32) -> (i32, i32) {
    %c0_i32 = arith.constant 0 : i32
    %c0_i32_0 = arith.constant 0 : i32
    %c0_i32_1 = arith.constant 0 : i32
    return %c0_i32, %c0_i32_0 : i32, i32
  }
  func.func @transform_16(%arg0: i32) -> (i32, i32) {
    %c0_i32 = arith.constant 0 : i32
    %c0_i32_0 = arith.constant 0 : i32
    %c0_i32_1 = arith.constant 0 : i32
    return %c0_i32, %c0_i32_0 : i32, i32
  }
  func.func @transform_17(%arg0: i32) -> (i32, i32) {
    %c0_i32 = arith.constant 0 : i32
    %c0_i32_0 = arith.constant 0 : i32
    %c0_i32_1 = arith.constant 0 : i32
    return %c0_i32, %c0_i32_0 : i32, i32
  }
  func.func @transform_18(%arg0: i32) -> (i32, i32, i32) {
    %c0_i32 = arith.constant 0 : i32
    %c0_i32_0 = arith.constant 0 : i32
    %c0_i32_1 = arith.constant 0 : i32
    %c0_i32_2 = arith.constant 0 : i32
    return %c0_i32, %c0_i32_0, %c0_i32_1 : i32, i32, i32
  }
  func.func @transform_19(%arg0: i32) -> (i32, i32) {
    %c0_i32 = arith.constant 0 : i32
    %c0_i32_0 = arith.constant 0 : i32
    %c0_i32_1 = arith.constant 0 : i32
    return %c0_i32, %c0_i32_0 : i32, i32
  }
}

</mosaic_0001>

<bundles_post_ra>
// kernel: tpu_custom_call.1
= control target key start
LH: loop header
LB: loop body
LE: loop exit
PB: predicated region body
PF: predicated region fallthrough
CT: control target
= control target key end

     0   :  { %s5516_s0 = inlined_call_operand.vmem [shape: f32[6,8,4], index: 0, kind: input, shape index: {}]   ;;  %s5517_s1 = inlined_call_operand.vmem [shape: f32[6,8,4], index: 1, kind: input, shape index: {}]   ;;  %s5518_s2 = inlined_call_operand.vmem [shape: f32[6,8,4], index: 2, kind: input, shape index: {}]   ;;  %s5519_s3 = inlined_call_operand.vmem [shape: f32[1,4], index: 3, kind: input, shape index: {}]   ;;  %s5520_s4 = inlined_call_operand.vmem [shape: f32[1,4], index: 4, kind: input, shape index: {}]   ;;  %s5521_s5 = inlined_call_operand.vmem [shape: f32[4,32], index: 5, kind: input, shape index: {}]   ;;  %s5522_s6 = inlined_call_operand.vmem [shape: f32[1,32], index: 6, kind: input, shape index: {}]   ;;  %s5523_s7 = inlined_call_operand.vmem [shape: f32[32,4], index: 7, kind: input, shape index: {}]   ;;  %s5524_s8 = inlined_call_operand.vmem [shape: f32[1,4], index: 8, kind: input, shape index: {}]   ;;  %s5525_s9 = inlined_call_operand.vmem [shape: f32[4,4], index: 9, kind: input, shape index: {}]   ;;  %s5526_s10 = inlined_call_operand.vmem [shape: f32[1,4], index: 10, kind: input, shape index: {}]   ;;  %s5527_s11 = inlined_call_operand.vmem [shape: f32[4,4], index: 11, kind: input, shape index: {}]   ;;  %s5528_s12 = inlined_call_operand.vmem [shape: f32[4,4], index: 12, kind: input, shape index: {}]   ;;  %s5529_s13 = inlined_call_operand.vmem [shape: f32[1,4], index: 13, kind: input, shape index: {}]   ;;  %s5530_s14 = inlined_call_operand.vmem [shape: f32[4,128], index: 14, kind: input, shape index: {}]   ;;  %s5531_s15 = inlined_call_operand.vmem [shape: f32[4,128], index: 15, kind: input, shape index: {}]   ;;  %s5532_s16 = inlined_call_operand.vmem [shape: f32[32,128], index: 16, kind: input, shape index: {}]   ;;  %s5533_s17 = inlined_call_operand.vmem [shape: f32[1,128], index: 17, kind: input, shape index: {}]   ;;  %s5534_s18 = inlined_call_operand.vmem [shape: f32[6,8,4], index: 18, kind: output, shape index: {0}]   ;;  %s5535_s19 = inlined_call_operand.hbm [shape: f32[1,1], index: 19, kind: output, shape index: {1}]  }
   0x1   :  { %5540 = sst [smem:[#allocation5_spill]] %s5516_s0 }
   0x2   :  { %5541 = sst [smem:[#allocation6_spill]] %s5517_s1 }
   0x3   :  { %5542 = sst [smem:[#allocation7_spill]] %s5518_s2 }
   0x4   :  { %5543 = sst [smem:[#allocation8_spill]] %s5519_s3 }
   0x5   :  { %v4728_v0 = vld [vmem:[%s5521_s5] sm:$0xf]  ;;  %vm134_vm0 = vcmask 1043456   ;;  %s5544_s1 = sld [smem:[#allocation7_spill]]  ;;  %v4619_v2 = vmov 0.0   ;;  %vm4620_vm1 = vmmov 0  }
   0x6   :  { %4202 = vmatprep.subr.mxu0 %v4619_v2  ;;  %4204 = vmatprep.mubr.msk.f32.mxu0 %vm4620_vm1, %v4619_v2  ;;  %vm130_vm2 = vcmask 31744  }
   0x7   :  { %4203 = vmatpush3.msk.msra.mxu0 %vm134_vm0, %v4728_v0  ;;  %4207 = vmatprep.subr.mxu1 %v4619_v2 }
   0xb   :  { %v129_v1 = vld [vmem:[%s5544_s1] sm:$0xff] }
   0xc   :  { %25 = vsyncpa [#allocation3], 0  ;;  %4205 = vmatmul.mubr.msk.f32.vlgmr.msra.gmra.mxu0 %vm130_vm2, %v129_v1  ;;  %4215 = vmatprep.mubr.msk.f32.mxu1 %vm4620_vm1, %v4619_v2  ;;  %v4748_v3 = vld [vmem:[%s5523_s7 + $0x18] sm:$0xff]  ;;  %v4755_v4 = vld [vmem:[%s5523_s7 + $0x10] sm:$0xff]  ;;  %vm219_vm3 = vcmask 261120   ;;  %s5545_s20 = sld [smem:[#allocation8_spill]] }
   0xd   :  { %4218 = vmatprep.subr.mxu0 %v4619_v2  ;;  %4220 = vmatprep.mubr.msk.f32.mxu0 %vm4620_vm1, %v4619_v2  ;;  %v4762_v5 = vld [vmem:[%s5523_s7 + $0x8] sm:$0xff]  ;;  %v4769_v6 = vld [vmem:[%s5523_s7] sm:$0xff]  ;;  %s5546_s27 = sld [smem:[#allocation5_spill]]  ;;  %v4858_v39 = vld [vmem:[%s5532_s16 + $0x18] sm:$0xff]  ;;  %s4621_s2 = smov 64  }
   0xe   :  { %4208 = vmatpush3.msra.mxu1 %v4748_v3  ;;  %v4776_v7 = vld [vmem:[%s5522_s6] ss:$0 sm:$0xff]  ;;  %s5547_s0 = sld [smem:[#allocation6_spill]]  ;;  %v4865_v40 = vld [vmem:[%s5532_s16 + $0x10] sm:$0xff]  ;;  %v4874_v41 = vld [vmem:[%s5532_s16 + $0x8] sm:$0xff]  ;;  %s4622_s23 = smov 32  }
   0xf   :  { %4209 = vmatprep.subr.mxu1 %v4619_v2  ;;  %v4791_v18 = vld [vmem:[%s5520_s4] ss:$0 sm:$0xff]  ;;  %s4623_s24 = smov 96  }
  0x10   :  { %4210 = vmatpush3.msra.mxu1 %v4755_v4  ;;  %v4797_v23 = vld [vmem:[%s5525_s9] sm:$0xf] }
  0x11   :  { %4211 = vmatprep.subr.mxu1 %v4619_v2  ;;  %4219 = vmatpush3.msk.msra.mxu0 %vm134_vm0, %v4797_v23  ;;  %v4805_v25 = vld [vmem:[%s5527_s11] sm:$0xf] }
  0x12   :  { %4212 = vmatpush3.msra.mxu1 %v4762_v5  ;;  %v4785_v16 = vld [vmem:[%s5545_s20] ss:$0 sm:$0xff]  ;;  %4223 = vmatprep.subr.mxu0 %v4619_v2 }
  0x13   :  { %4213 = vmatprep.subr.mxu1 %v4619_v2  ;;  %v212_v17 = vmul.f32 %v4785_v16, %v129_v1  ;;  %v125_v26 = vld [vmem:[%s5546_s27] sm:$0xff] }
  0x14   :  { %4214 = vmatpush3.msra.mxu1 %v4769_v6  ;;  %vm126_vm4 = vcmp.ne.f32.partialorder %v125_v26, %v125_v26  ;;  %v4819_v27 = vld [vmem:[%s5547_s0] sm:$0xff] }
  0x15   :  { %4228 = vmatprep.subr.mxu1 %v4619_v2  ;;  %v213_v19 = vadd.f32 %v4791_v18, %v212_v17  ;;  %v4824_v28 = vld [vmem:[%s5524_s8] ss:$0 sm:$0xff]  ;;  %v4826_v29 = vsel %vm126_vm4, 0.0, %v125_v26  ;;  %v294_v30 = vsub.f32 1.0, %v4819_v27  ;;  %v3992_v17 = vld [vmem:[%s5544_s1 + $0x8] sm:$0xff] }
  0x16   :  { %v293_v33 = vmul.f32 %v4819_v27, %v4826_v29  ;;  %v4835_v37 = vld [vmem:[%s5528_s12] sm:$0xf] }
  0x17   :  { %v214_v20 = vmax.f32 %v213_v19, 0.0  ;;  %v4846_v38 = vld [vmem:[%s5531_s15] sm:$0xf] }
  0x18   :  { %v4881_v42 = vld [vmem:[%s5532_s16] sm:$0xff] }
  0x19   :  { %v215_v21 = vsub.f32 0.0, %v214_v20  ;;  %v4896_v45 = vld [vmem:[%s5530_s14] sm:$0xf] }
  0x1a   :  { %v4904_v47 = vld [vmem:[%s5526_s10] ss:$0 sm:$0xff] }
  0x1b   :  { %v216_v22 = vmul.f32 1.442695, %v215_v21  ;;  %v4909_v49 = vld [vmem:[%s5529_s13] ss:$0 sm:$0xff] }
  0x1c   :  { %v4945_v21 = vld [vmem:[%s5533_s17] ss:$0 sm:$0xff] }
  0xcc   :  { %v204_v8 = vpop.f32.mrf.mxu0 }
  0xcd   :  { %v205_v9 = vadd.f32 %v4776_v7, %v204_v8 }
  0xce   :  { %v4206_v10 = vpop.f32.mrf.mxu0 }
  0xcf   :  { %v208_v11 = vmax.f32 %v205_v9, 0.0 }
  0xd1   :  { %v209_v12 = vsub.f32 0.0, %v208_v11 }
  0xd3   :  { %v210_v13 = vmul.f32 1.442695, %v209_v12 }
  0xd5   :  { %4499 = vpow2.f32 %v210_v13 }
  0xd6   :  { %4501 = vpow2.f32 %v216_v22 }
  0xe2   :  { %v4500_v14 = vpop.eup %4499 }
  0xe3   :  { %v218_v15 = vmul.f32 0.0, %v4500_v14  ;;  %v4502_v24 = vpop.eup %4501 }
  0xe5   :  { %4216 = vmatmul.mubr.msk.f32.vlgmr.msra.gmra.mxu1 %vm219_vm3, %v218_v15 }
  0xe6   :  { %4230 = vmatprep.mubr.msk.f32.mxu1 %vm4620_vm1, %v4619_v2  ;;  %4229 = vmatpush3.msk.msra.mxu1 %vm134_vm0, %v4805_v25 }
  0xe7   :  { %4238 = vmatprep.subr.mxu1 %v4619_v2 }
  0xe9   :  { %4231 = vmatmul.mubr.msk.f32.vlgmr.msra.gmra.mxu1 %vm130_vm2, %v4502_v24 }
  0xea   :  { %4240 = vmatprep.mubr.msk.f32.mxu1 %vm4620_vm1, %v4619_v2  ;;  %4239 = vmatpush3.msk.msra.mxu1 %vm134_vm0, %v4896_v45 }
  0xeb   :  { %4254 = vmatprep.subr.mxu1 %v4619_v2 }
 0x1a5   :  { %v289_v31 = vpop.f32.mrf.mxu1 }
 0x1a6   :  { %v290_v32 = vadd.f32 %v4824_v28, %v289_v31 }
 0x1a7   :  { %v4217_v34 = vpop.f32.mrf.mxu1 }
 0x1a8   :  { %v295_v35 = vmul.f32 %v294_v30, %v290_v32  ;;  %v533_v59 = vsub.f32 %v4826_v29, %v290_v32 }
 0x1a9   :  { %v521_v43 = vpop.f32.mrf.mxu1 }
 0x1aa   :  { %v296_v36 = vadd.f32 %v295_v35, %v293_v33  ;;  %v534_v1 = vand.u32 2147483647, %v533_v59  ;;  %v896_v59 = vmul.f32 %v3992_v17, %v4785_v16 }
 0x1ab   :  { %v4232_v44 = vpop.f32.mrf.mxu1 }
 0x1ac   :  { %4221 = vmatmul.mubr.msk.f32.vlgmr.msra.gmra.mxu0 %vm130_vm2, %v296_v36 }
 0x1ad   :  { %4224 = vmatpush3.msk.msra.mxu0 %vm134_vm0, %v4835_v37  ;;  %4225 = vmatprep.mubr.msk.f32.mxu0 %vm4620_vm1, %v4619_v2 }
 0x1ae   :  { %4233 = vmatprep.subr.mxu0 %v4619_v2 }
 0x1b0   :  { %4226 = vmatmul.mubr.msk.f32.vlgmr.msra.gmra.mxu0 %vm130_vm2, %v4819_v27 }
 0x1b1   :  { %4234 = vmatpush3.msk.msra.mxu0 %vm134_vm0, %v4846_v38  ;;  %4235 = vmatprep.mubr.msk.f32.mxu0 %vm4620_vm1, %v4619_v2 }
 0x1b2   :  { %4243 = vmatprep.subr.mxu0 %v4619_v2 }
 0x1b4   :  { %4236 = vmatmul.mubr.msk.f32.vlgmr.msra.gmra.mxu0 %vm130_vm2, %v4819_v27 }
 0x1b5   :  { %4244 = vmatpush3.msra.mxu0 %v4858_v39  ;;  %4251 = vmatprep.mubr.msk.f32.mxu0 %vm4620_vm1, %v4619_v2 }
 0x1b6   :  { %4245 = vmatprep.subr.mxu0 %v4619_v2 }
 0x1b7   :  { %4246 = vmatpush3.msra.mxu0 %v4865_v40 }
 0x1b8   :  { %4247 = vmatprep.subr.mxu0 %v4619_v2 }
 0x1b9   :  { %4248 = vmatpush3.msra.mxu0 %v4874_v41 }
 0x1ba   :  { %4249 = vmatprep.subr.mxu0 %v4619_v2 }
 0x1bb   :  { %4250 = vmatpush3.msra.mxu0 %v4881_v42 }
 0x1bc   :  { %4252 = vmatmul.mubr.msk.f32.vlgmr.msra.gmra.mxu0 %vm219_vm3, %v218_v15  ;;  %4270 = vmatprep.subr.mxu0 %v4619_v2 }
 0x1bd   :  { %4271 = vmatpush3.msk.msra.mxu0 %vm134_vm0, %v4797_v23  ;;  %4272 = vmatprep.mubr.msk.f32.mxu0 %vm4620_vm1, %v4619_v2 }
 0x1be   :  { %4275 = vmatprep.subr.mxu0 %v4619_v2 }
 0x26c   :  { %v369_v46 = vpop.f32.mrf.mxu0 }
 0x26d   :  { %v370_v51 = vadd.f32 %v4904_v47, %v369_v46 }
 0x26e   :  { %v4222_v48 = vpop.f32.mrf.mxu0 }
 0x26f   :  { %v535_v56 = vsub.f32 %v4826_v29, %v370_v51 }
 0x270   :  { %v445_v50 = vpop.f32.mrf.mxu0 }
 0x271   :  { %v522_v52 = vadd.f32 %v521_v43, %v445_v50  ;;  %v536_v62 = vand.u32 2147483647, %v535_v56 }
 0x272   :  { %v4227_v53 = vpop.f32.mrf.mxu0 }
 0x273   :  { %v525_v54 = vadd.f32 %v4909_v49, %v522_v52  ;;  %v537_v11 = vadd.f32 %v536_v62, %v534_v1 }
 0x274   :  { %v634_v55 = vpop.f32.mrf.mxu0 }
 0x275   :  { %v527_v57 = vsub.f32 1.0, %v525_v54  ;;  %v526_v60 = vmul.f32 %v525_v54, %v370_v51 }
 0x276   :  { %v4237_v58 = vpop.f32.mrf.mxu0 }
 0x277   :  { %v528_v61 = vmul.f32 %v527_v57, %v290_v32 }
 0x279   :  { %v529_v63 = vadd.f32 %v528_v61, %v526_v60  ;;  %v897_v60 = vadd.f32 %v4791_v18, %v896_v59 }
 0x27b   :  { %v530_v8 = vmul.f32 %v529_v63, %v294_v30  ;;  %v538_v9 = vsub.f32 %v4826_v29, %v529_v63  ;;  %v898_v61 = vmax.f32 %v897_v60, 0.0 }
 0x27c   :  { %v780_v10 = vpop.f32.mrf.mxu0 }
 0x27d   :  { %v531_v12 = vadd.f32 %v530_v8, %v293_v33  ;;  %v539_v13 = vand.u32 2147483647, %v538_v9  ;;  %v899_v62 = vsub.f32 0.0, %v898_v61  ;;  %v3990_v9 = vld [vmem:[%s5546_s27 + $0x8] sm:$0xff] }
 0x27e   :  { %v4253_v14 = vpop.f32.mrf.mxu0  ;;  %vm813_vm5 = vcmp.ne.f32.partialorder %v3990_v9, %v3990_v9 }
 0x27f   :  { %532 = vst.msk [vmem:[%s5534_s18] sm:$0xff] %vm130_vm2, %v531_v12  ;;  %4241 = vmatmul.mubr.msk.f32.vlgmr.msra.gmra.mxu1 %vm130_vm2, %v531_v12  ;;  %v4921_v15 = vadd.f32 %v539_v13, %v537_v11  ;;  %v900_v63 = vmul.f32 1.442695, %v899_v62  ;;  %v814_v11 = vsel %vm813_vm5, 0.0, %v3990_v9 }
 0x280   :  { %4255 = vmatpush3.msk.msra.mxu1 %vm134_vm0, %v4728_v0  ;;  %4256 = vmatprep.mubr.msk.f32.mxu1 %vm4620_vm1, %v4619_v2 }
 0x281   :  { %4259 = vmatprep.subr.mxu1 %v4619_v2 }
 0x283   :  { %4257 = vmatmul.mubr.msk.f32.vlgmr.msra.gmra.mxu1 %vm130_vm2, %v3992_v17 }
 0x284   :  { %4260 = vmatpush3.msra.mxu1 %v4748_v3  ;;  %4267 = vmatprep.mubr.msk.f32.mxu1 %vm4620_vm1, %v4619_v2 }
 0x285   :  { %4261 = vmatprep.subr.mxu1 %v4619_v2 }
 0x286   :  { %4262 = vmatpush3.msra.mxu1 %v4755_v4 }
 0x287   :  { %4263 = vmatprep.subr.mxu1 %v4619_v2 }
 0x288   :  { %4264 = vmatpush3.msra.mxu1 %v4762_v5 }
 0x289   :  { %4265 = vmatprep.subr.mxu1 %v4619_v2 }
 0x28a   :  { %4266 = vmatpush3.msra.mxu1 %v4769_v6 }
 0x28b   :  { %4280 = vmatprep.subr.mxu1 %v4619_v2 }
 0x33f   :  { %v710_v19 = vpop.f32.mrf.mxu1 }
 0x340   :  { %v711_v20 = vadd.f32 %v710_v19, %v634_v55 }
 0x341   :  { %v4242_v22 = vpop.f32.mrf.mxu1 }
 0x342   :  { %v784_v24 = vadd.f32 %v780_v10, %v711_v20  ;;  %v4977_v10 = vld [vmem:[%s5547_s0 + $0x8] sm:$0xff] }
 0x343   :  { %v888_v29 = vpop.f32.mrf.mxu1  ;;  %v983_v12 = vsub.f32 1.0, %v4977_v10  ;;  %v982_v17 = vmul.f32 %v4977_v10, %v814_v11 }
 0x344   :  { %v785_v26 = vadd.f32 %v4945_v21, %v784_v24  ;;  %v889_v43 = vadd.f32 %v4776_v7, %v888_v29 }
 0x345   :  { %v4258_v30 = vpop.f32.mrf.mxu1 }
 0x346   :  { %4503 = vtanh.f32 %v785_v26  ;;  %v3989_v31 = vmul.f32 -1.442695, %v785_v26  ;;  %v892_v44 = vmax.f32 %v889_v43, 0.0 }
 0x348   :  { %4505 = vpow2.f32 %v3989_v31  ;;  %v893_v46 = vsub.f32 0.0, %v892_v44 }
 0x34a   :  { %v894_v51 = vmul.f32 1.442695, %v893_v46 }
 0x353   :  { %v4504_v27 = vpop.eup %4503 }
 0x354   :  { %795 = vrot.lane.b32.xlu0 %v4504_v27, %s4621_s2 }
 0x355   :  { %v4506_v32 = vpop.eup %4505 }
 0x356   :  { %v789_v33 = vadd.f32 1.0, %v4506_v32 }
 0x358   :  { %4507 = vrcp.f32 %v789_v33 }
 0x365   :  { %v4508_v34 = vpop.eup %4507 }
 0x366   :  { %v793_v48 = vmul.f32 0.0, %v4508_v34 }
 0x3c6   :  { %v796_v35 = vpop.permute.xlu0 %795 }
 0x3c7   :  { %v798_v36 = vmul.f32 %v4508_v34, %v796_v35 }
 0x3c9   :  { %800 = vrot.lane.b32.xlu0 %v798_v36, %s4622_s23 }
 0x43b   :  { %v801_v50 = vpop.permute.xlu0 %800 }
 0x43c   :  { %v4951_v52 = vadd.f32 %v801_v50, %v793_v48 }
 0x43e   :  { %4509 = vtanh.f32 %v4951_v52 }
 0x43f   :  { %4511 = vpow2.f32 %v894_v51 }
 0x440   :  { %4513 = vpow2.f32 %v900_v63  ;;  %v4011_v63 = vld [vmem:[%s5544_s1 + $0x10] sm:$0xff] }
 0x44b   :  { %v4510_v53 = vpop.eup %4509 }
 0x44c   :  { %806 = vrot.lane.b32.xlu1 %v4510_v53, %s4621_s2  ;;  %v4512_v54 = vpop.eup %4511 }
 0x44d   :  { %v4514_v8 = vpop.eup %4513 }
 0x450   :  { %903 = vrot.lane.b32.xlu1 %v4512_v54, %s4623_s24 }
 0x4be   :  { %v807_v55 = vpop.permute.xlu1 %806 }
 0x4bf   :  { %v809_v56 = vmul.f32 %v4508_v34, %v807_v55 }
 0x4c2   :  { %v904_v57 = vpop.permute.xlu1 %903 }
 0x4c3   :  { %v906_v58 = vmul.f32 %v904_v57, %v809_v56 }
 0x4c5   :  { %908 = vrot.lane.b32.xlu0 %v906_v58, %s4622_s23 }
 0x537   :  { %v909_v1 = vpop.permute.xlu0 %908 }
 0x538   :  { %4268 = vmatmul.mubr.msk.f32.vlgmr.msra.gmra.mxu1 %vm219_vm3, %v909_v1 }
 0x539   :  { %4281 = vmatpush3.msk.msra.mxu1 %vm134_vm0, %v4805_v25  ;;  %4282 = vmatprep.mubr.msk.f32.mxu1 %vm4620_vm1, %v4619_v2 }
 0x53a   :  { %4290 = vmatprep.subr.mxu1 %v4619_v2 }
 0x53c   :  { %4283 = vmatmul.mubr.msk.f32.vlgmr.msra.gmra.mxu1 %vm130_vm2, %v4514_v8 }
 0x53d   :  { %4291 = vmatpush3.msk.msra.mxu1 %vm134_vm0, %v4896_v45  ;;  %4292 = vmatprep.mubr.msk.f32.mxu1 %vm4620_vm1, %v4619_v2 }
 0x53e   :  { %4306 = vmatprep.subr.mxu1 %v4619_v2 }
 0x5f8   :  { %v978_v13 = vpop.f32.mrf.mxu1 }
 0x5f9   :  { %v979_v14 = vadd.f32 %v4824_v28, %v978_v13 }
 0x5fa   :  { %v4269_v19 = vpop.f32.mrf.mxu1 }
 0x5fb   :  { %v984_v20 = vmul.f32 %v983_v12, %v979_v14  ;;  %v1214_v46 = vsub.f32 %v814_v11, %v979_v14 }
 0x5fc   :  { %v1201_v24 = vpop.f32.mrf.mxu1 }
 0x5fd   :  { %v985_v22 = vadd.f32 %v984_v20, %v982_v17  ;;  %v1215_v54 = vand.u32 2147483647, %v1214_v46 }
 0x5fe   :  { %v4284_v26 = vpop.f32.mrf.mxu1 }
 0x5ff   :  { %4273 = vmatmul.mubr.msk.f32.vlgmr.msra.gmra.mxu0 %vm130_vm2, %v985_v22 }
 0x600   :  { %4276 = vmatpush3.msk.msra.mxu0 %vm134_vm0, %v4835_v37  ;;  %4277 = vmatprep.mubr.msk.f32.mxu0 %vm4620_vm1, %v4619_v2 }
 0x601   :  { %4285 = vmatprep.subr.mxu0 %v4619_v2 }
 0x603   :  { %4278 = vmatmul.mubr.msk.f32.vlgmr.msra.gmra.mxu0 %vm130_vm2, %v4977_v10 }
 0x604   :  { %4286 = vmatpush3.msk.msra.mxu0 %vm134_vm0, %v4846_v38  ;;  %4287 = vmatprep.mubr.msk.f32.mxu0 %vm4620_vm1, %v4619_v2 }
 0x605   :  { %4295 = vmatprep.subr.mxu0 %v4619_v2 }
 0x607   :  { %4288 = vmatmul.mubr.msk.f32.vlgmr.msra.gmra.mxu0 %vm130_vm2, %v4977_v10 }
 0x608   :  { %4296 = vmatpush3.msra.mxu0 %v4858_v39  ;;  %4303 = vmatprep.mubr.msk.f32.mxu0 %vm4620_vm1, %v4619_v2 }
 0x609   :  { %4297 = vmatprep.subr.mxu0 %v4619_v2 }
 0x60a   :  { %4298 = vmatpush3.msra.mxu0 %v4865_v40 }
 0x60b   :  { %4299 = vmatprep.subr.mxu0 %v4619_v2 }
 0x60c   :  { %4300 = vmatpush3.msra.mxu0 %v4874_v41 }
 0x60d   :  { %4301 = vmatprep.subr.mxu0 %v4619_v2 }
 0x60e   :  { %4302 = vmatpush3.msra.mxu0 %v4881_v42 }
 0x60f   :  { %4304 = vmatmul.mubr.msk.f32.vlgmr.msra.gmra.mxu0 %vm219_vm3, %v909_v1  ;;  %4322 = vmatprep.subr.mxu0 %v4619_v2 }
 0x610   :  { %4323 = vmatpush3.msk.msra.mxu0 %vm134_vm0, %v4797_v23  ;;  %4324 = vmatprep.mubr.msk.f32.mxu0 %vm4620_vm1, %v4619_v2 }
 0x611   :  { %4327 = vmatprep.subr.mxu0 %v4619_v2 }
 0x6bf   :  { %v1055_v27 = vpop.f32.mrf.mxu0 }
 0x6c0   :  { %v1056_v31 = vadd.f32 %v4904_v47, %v1055_v27 }
 0x6c1   :  { %v4274_v29 = vpop.f32.mrf.mxu0 }
 0x6c2   :  { %v1216_v36 = vsub.f32 %v814_v11, %v1056_v31 }
 0x6c3   :  { %v1128_v30 = vpop.f32.mrf.mxu0 }
 0x6c4   :  { %v1202_v32 = vadd.f32 %v1201_v24, %v1128_v30  ;;  %v1217_v51 = vand.u32 2147483647, %v1216_v36 }
 0x6c5   :  { %v4279_v33 = vpop.f32.mrf.mxu0 }
 0x6c6   :  { %v1205_v34 = vadd.f32 %v4909_v49, %v1202_v32  ;;  %v1218_v58 = vadd.f32 %v1217_v51, %v1215_v54  ;;  %v1571_v51 = vmul.f32 %v4011_v63, %v4785_v16 }
 0x6c7   :  { %v1312_v35 = vpop.f32.mrf.mxu0 }
 0x6c8   :  { %v1207_v43 = vsub.f32 1.0, %v1205_v34  ;;  %v1206_v48 = vmul.f32 %v1205_v34, %v1056_v31 }
 0x6c9   :  { %v4289_v44 = vpop.f32.mrf.mxu0 }
 0x6ca   :  { %v1208_v50 = vmul.f32 %v1207_v43, %v979_v14 }
 0x6cc   :  { %v1209_v53 = vadd.f32 %v1208_v50, %v1206_v48 }
 0x6ce   :  { %v1210_v55 = vmul.f32 %v1209_v53, %v983_v12  ;;  %v1219_v56 = vsub.f32 %v814_v11, %v1209_v53  ;;  %v1572_v53 = vadd.f32 %v4791_v18, %v1571_v51 }
 0x6cf   :  { %v1455_v57 = vpop.f32.mrf.mxu0 }
 0x6d0   :  { %v1211_v59 = vadd.f32 %v1210_v55, %v982_v17  ;;  %v1220_v60 = vand.u32 2147483647, %v1219_v56  ;;  %v1573_v54 = vmax.f32 %v1572_v53, 0.0 }
 0x6d1   :  { %v4305_v61 = vpop.f32.mrf.mxu0 }
 0x6d2   :  { %4002 = vst.msk [vmem:[%s5534_s18 + $0x8] sm:$0xff] %vm130_vm2, %v1211_v59  ;;  %4293 = vmatmul.mubr.msk.f32.vlgmr.msra.gmra.mxu1 %vm130_vm2, %v1211_v59  ;;  %v5020_v62 = vadd.f32 %v1220_v60, %v1218_v58  ;;  %v4009_v58 = vld [vmem:[%s5546_s27 + $0x10] sm:$0xff] }
 0x6d3   :  { %4307 = vmatpush3.msk.msra.mxu1 %vm134_vm0, %v4728_v0  ;;  %4308 = vmatprep.mubr.msk.f32.mxu1 %vm4620_vm1, %v4619_v2  ;;  %vm1488_vm6 = vcmp.ne.f32.partialorder %v4009_v58, %v4009_v58  ;;  %v5072_v59 = vld [vmem:[%s5547_s0 + $0x10] sm:$0xff] }
 0x6d4   :  { %4311 = vmatprep.subr.mxu1 %v4619_v2  ;;  %v1489_v60 = vsel %vm1488_vm6, 0.0, %v4009_v58  ;;  %v1658_v61 = vsub.f32 1.0, %v5072_v59 }
 0x6d6   :  { %4309 = vmatmul.mubr.msk.f32.vlgmr.msra.gmra.mxu1 %vm130_vm2, %v4011_v63 }
 0x6d7   :  { %4312 = vmatpush3.msra.mxu1 %v4748_v3  ;;  %4319 = vmatprep.mubr.msk.f32.mxu1 %vm4620_vm1, %v4619_v2 }
 0x6d8   :  { %4313 = vmatprep.subr.mxu1 %v4619_v2 }
 0x6d9   :  { %4314 = vmatpush3.msra.mxu1 %v4755_v4 }
 0x6da   :  { %4315 = vmatprep.subr.mxu1 %v4619_v2 }
 0x6db   :  { %4316 = vmatpush3.msra.mxu1 %v4762_v5 }
 0x6dc   :  { %4317 = vmatprep.subr.mxu1 %v4619_v2 }
 0x6dd   :  { %4318 = vmatpush3.msra.mxu1 %v4769_v6 }
 0x6de   :  { %4332 = vmatprep.subr.mxu1 %v4619_v2 }
 0x792   :  { %v1385_v1 = vpop.f32.mrf.mxu1 }
 0x793   :  { %v1386_v8 = vadd.f32 %v1385_v1, %v1312_v35 }
 0x794   :  { %v4294_v9 = vpop.f32.mrf.mxu1 }
 0x795   :  { %v1459_v11 = vadd.f32 %v1455_v57, %v1386_v8  ;;  %v1657_v8 = vmul.f32 %v5072_v59, %v1489_v60 }
 0x796   :  { %v1563_v14 = vpop.f32.mrf.mxu1 }
 0x797   :  { %v1460_v12 = vadd.f32 %v4945_v21, %v1459_v11  ;;  %v1564_v20 = vadd.f32 %v4776_v7, %v1563_v14 }
 0x798   :  { %v4310_v17 = vpop.f32.mrf.mxu1 }
 0x799   :  { %4515 = vtanh.f32 %v1460_v12  ;;  %v4008_v19 = vmul.f32 -1.442695, %v1460_v12  ;;  %v1567_v22 = vmax.f32 %v1564_v20, 0.0 }
 0x79b   :  { %4517 = vpow2.f32 %v4008_v19  ;;  %v1568_v27 = vsub.f32 0.0, %v1567_v22 }
 0x79d   :  { %v1569_v29 = vmul.f32 1.442695, %v1568_v27 }
 0x7a6   :  { %v4516_v13 = vpop.eup %4515 }
 0x7a7   :  { %1470 = vrot.lane.b32.xlu1 %v4516_v13, %s4621_s2 }
 0x7a8   :  { %v4518_v24 = vpop.eup %4517 }
 0x7a9   :  { %v1464_v26 = vadd.f32 1.0, %v4518_v24 }
 0x7ab   :  { %4519 = vrcp.f32 %v1464_v26 }
 0x7ac   :  { %4521 = vpow2.f32 %v1569_v29 }
 0x7b8   :  { %v4520_v30 = vpop.eup %4519 }
 0x7b9   :  { %v4522_v33 = vpop.eup %4521  ;;  %v1468_v34 = vmul.f32 %v4520_v30, %v4951_v52  ;;  %v1574_v52 = vsub.f32 0.0, %v1573_v54 }
 0x7bb   :  { %v1575_v55 = vmul.f32 1.442695, %v1574_v52 }
 0x819   :  { %v1471_v31 = vpop.permute.xlu1 %1470 }
 0x81a   :  { %v1473_v32 = vmul.f32 %v4520_v30, %v1471_v31 }
 0x81c   :  { %1475 = vrot.lane.b32.xlu0 %v1473_v32, %s4622_s23 }
 0x820   :  { %1578 = vrot.lane.b32.xlu0 %v4522_v33, %s4623_s24 }
 0x88e   :  { %v1476_v35 = vpop.permute.xlu0 %1475 }
 0x88f   :  { %v5047_v36 = vadd.f32 %v1476_v35, %v1468_v34 }
 0x891   :  { %4523 = vtanh.f32 %v5047_v36 }
 0x892   :  { %v1579_v46 = vpop.permute.xlu0 %1578  ;;  %4525 = vpow2.f32 %v1575_v55 }
 0x89e   :  { %v4524_v43 = vpop.eup %4523 }
 0x89f   :  { %1481 = vrot.lane.b32.xlu1 %v4524_v43, %s4621_s2  ;;  %v4526_v57 = vpop.eup %4525 }
 0x911   :  { %v1482_v44 = vpop.permute.xlu1 %1481 }
 0x912   :  { %v1484_v48 = vmul.f32 %v4520_v30, %v1482_v44 }
 0x914   :  { %v1581_v50 = vmul.f32 %v1579_v46, %v1484_v48 }
 0x916   :  { %1583 = vrot.lane.b32.xlu1 %v1581_v50, %s4622_s23 }
 0x988   :  { %v1584_v56 = vpop.permute.xlu1 %1583 }
 0x989   :  { %4320 = vmatmul.mubr.msk.f32.vlgmr.msra.gmra.mxu1 %vm219_vm3, %v1584_v56 }
 0x98a   :  { %4333 = vmatpush3.msk.msra.mxu1 %vm134_vm0, %v4805_v25  ;;  %4334 = vmatprep.mubr.msk.f32.mxu1 %vm4620_vm1, %v4619_v2 }
 0x98b   :  { %4342 = vmatprep.subr.mxu1 %v4619_v2 }
 0x98d   :  { %4335 = vmatmul.mubr.msk.f32.vlgmr.msra.gmra.mxu1 %vm130_vm2, %v4526_v57  ;;  %v4030_v57 = vld [vmem:[%s5544_s1 + $0x18] sm:$0xff] }
 0x98e   :  { %4343 = vmatpush3.msk.msra.mxu1 %vm134_vm0, %v4896_v45  ;;  %4344 = vmatprep.mubr.msk.f32.mxu1 %vm4620_vm1, %v4619_v2 }
 0x98f   :  { %4358 = vmatprep.subr.mxu1 %v4619_v2 }
 0xa49   :  { %v1653_v63 = vpop.f32.mrf.mxu1 }
 0xa4a   :  { %v1654_v1 = vadd.f32 %v4824_v28, %v1653_v63 }
 0xa4b   :  { %v4321_v9 = vpop.f32.mrf.mxu1 }
 0xa4c   :  { %v1659_v11 = vmul.f32 %v1658_v61, %v1654_v1  ;;  %v1889_v33 = vsub.f32 %v1489_v60, %v1654_v1 }
 0xa4d   :  { %v1876_v13 = vpop.f32.mrf.mxu1 }
 0xa4e   :  { %v1660_v12 = vadd.f32 %v1659_v11, %v1657_v8  ;;  %v1890_v46 = vand.u32 2147483647, %v1889_v33 }
 0xa4f   :  { %v4336_v14 = vpop.f32.mrf.mxu1 }
 0xa50   :  { %4325 = vmatmul.mubr.msk.f32.vlgmr.msra.gmra.mxu0 %vm130_vm2, %v1660_v12 }
 0xa51   :  { %4328 = vmatpush3.msk.msra.mxu0 %vm134_vm0, %v4835_v37  ;;  %4329 = vmatprep.mubr.msk.f32.mxu0 %vm4620_vm1, %v4619_v2 }
 0xa52   :  { %4337 = vmatprep.subr.mxu0 %v4619_v2 }
 0xa54   :  { %4330 = vmatmul.mubr.msk.f32.vlgmr.msra.gmra.mxu0 %vm130_vm2, %v5072_v59 }
 0xa55   :  { %4338 = vmatpush3.msk.msra.mxu0 %vm134_vm0, %v4846_v38  ;;  %4339 = vmatprep.mubr.msk.f32.mxu0 %vm4620_vm1, %v4619_v2 }
 0xa56   :  { %4347 = vmatprep.subr.mxu0 %v4619_v2 }
 0xa58   :  { %4340 = vmatmul.mubr.msk.f32.vlgmr.msra.gmra.mxu0 %vm130_vm2, %v5072_v59 }
 0xa59   :  { %4348 = vmatpush3.msra.mxu0 %v4858_v39  ;;  %4355 = vmatprep.mubr.msk.f32.mxu0 %vm4620_vm1, %v4619_v2 }
 0xa5a   :  { %4349 = vmatprep.subr.mxu0 %v4619_v2 }
 0xa5b   :  { %4350 = vmatpush3.msra.mxu0 %v4865_v40 }
 0xa5c   :  { %4351 = vmatprep.subr.mxu0 %v4619_v2 }
 0xa5d   :  { %4352 = vmatpush3.msra.mxu0 %v4874_v41 }
 0xa5e   :  { %4353 = vmatprep.subr.mxu0 %v4619_v2 }
 0xa5f   :  { %4354 = vmatpush3.msra.mxu0 %v4881_v42 }
 0xa60   :  { %4356 = vmatmul.mubr.msk.f32.vlgmr.msra.gmra.mxu0 %vm219_vm3, %v1584_v56  ;;  %4374 = vmatprep.subr.mxu0 %v4619_v2 }
 0xa61   :  { %4375 = vmatpush3.msk.msra.mxu0 %vm134_vm0, %v4797_v23  ;;  %4376 = vmatprep.mubr.msk.f32.mxu0 %vm4620_vm1, %v4619_v2 }
 0xa62   :  { %4379 = vmatprep.subr.mxu0 %v4619_v2 }
 0xb10   :  { %v1730_v17 = vpop.f32.mrf.mxu0 }
 0xb11   :  { %v1731_v22 = vadd.f32 %v4904_v47, %v1730_v17 }
 0xb12   :  { %v4326_v19 = vpop.f32.mrf.mxu0 }
 0xb13   :  { %v1891_v30 = vsub.f32 %v1489_v60, %v1731_v22 }
 0xb14   :  { %v1803_v20 = vpop.f32.mrf.mxu0 }
 0xb15   :  { %v1877_v24 = vadd.f32 %v1876_v13, %v1803_v20  ;;  %v1892_v43 = vand.u32 2147483647, %v1891_v30 }
 0xb16   :  { %v4331_v26 = vpop.f32.mrf.mxu0 }
 0xb17   :  { %v1880_v27 = vadd.f32 %v4909_v49, %v1877_v24  ;;  %v1893_v53 = vadd.f32 %v1892_v43, %v1890_v46 }
 0xb18   :  { %v1987_v29 = vpop.f32.mrf.mxu0 }
 0xb19   :  { %v1882_v31 = vsub.f32 1.0, %v1880_v27  ;;  %v1881_v34 = vmul.f32 %v1880_v27, %v1731_v22 }
 0xb1a   :  { %v4341_v32 = vpop.f32.mrf.mxu0 }
 0xb1b   :  { %v1883_v35 = vmul.f32 %v1882_v31, %v1654_v1 }
 0xb1d   :  { %v1884_v44 = vadd.f32 %v1883_v35, %v1881_v34  ;;  %v2246_v34 = vmul.f32 %v4030_v57, %v4785_v16  ;;  %v4028_v16 = vld [vmem:[%s5546_s27 + $0x18] sm:$0xff] }
 0xb1e   :  { %vm2163_vm7 = vcmp.ne.f32.partialorder %v4028_v16, %v4028_v16 }
 0xb1f   :  { %v1885_v48 = vmul.f32 %v1884_v44, %v1658_v61  ;;  %v1894_v50 = vsub.f32 %v1489_v60, %v1884_v44  ;;  %v2247_v35 = vadd.f32 %v4791_v18, %v2246_v34  ;;  %v5167_v18 = vld [vmem:[%s5547_s0 + $0x18] sm:$0xff] }
 0xb20   :  { %v2130_v51 = vpop.f32.mrf.mxu0 }
 0xb21   :  { %v1886_v54 = vadd.f32 %v1885_v48, %v1657_v8  ;;  %v1895_v52 = vand.u32 2147483647, %v1894_v50  ;;  %v2248_v43 = vmax.f32 %v2247_v35, 0.0  ;;  %v2333_v50 = vsub.f32 1.0, %v5167_v18 }
 0xb22   :  { %v4357_v55 = vpop.f32.mrf.mxu0 }
 0xb23   :  { %4021 = vst.msk [vmem:[%s5534_s18 + $0x10] sm:$0xff] %vm130_vm2, %v1886_v54  ;;  %4345 = vmatmul.mubr.msk.f32.vlgmr.msra.gmra.mxu1 %vm130_vm2, %v1886_v54  ;;  %v5115_v56 = vadd.f32 %v1895_v52, %v1893_v53 }
 0xb24   :  { %4359 = vmatpush3.msk.msra.mxu1 %vm134_vm0, %v4728_v0  ;;  %4360 = vmatprep.mubr.msk.f32.mxu1 %vm4620_vm1, %v4619_v2 }
 0xb25   :  { %4363 = vmatprep.subr.mxu1 %v4619_v2 }
 0xb27   :  { %4361 = vmatmul.mubr.msk.f32.vlgmr.msra.gmra.mxu1 %vm130_vm2, %v4030_v57 }
 0xb28   :  { %4364 = vmatpush3.msra.mxu1 %v4748_v3  ;;  %4371 = vmatprep.mubr.msk.f32.mxu1 %vm4620_vm1, %v4619_v2 }
 0xb29   :  { %4365 = vmatprep.subr.mxu1 %v4619_v2 }
 0xb2a   :  { %4366 = vmatpush3.msra.mxu1 %v4755_v4 }
 0xb2b   :  { %4367 = vmatprep.subr.mxu1 %v4619_v2 }
 0xb2c   :  { %4368 = vmatpush3.msra.mxu1 %v4762_v5 }
 0xb2d   :  { %4369 = vmatprep.subr.mxu1 %v4619_v2 }
 0xb2e   :  { %4370 = vmatpush3.msra.mxu1 %v4769_v6 }
 0xb2f   :  { %4384 = vmatprep.subr.mxu1 %v4619_v2 }
 0xbe3   :  { %v2060_v0 = vpop.f32.mrf.mxu1 }
 0xbe4   :  { %v2061_v58 = vadd.f32 %v2060_v0, %v1987_v29 }
 0xbe5   :  { %v4346_v3 = vpop.f32.mrf.mxu1 }
 0xbe6   :  { %v2134_v60 = vadd.f32 %v2130_v51, %v2061_v58 }
 0xbe7   :  { %v2238_v4 = vpop.f32.mrf.mxu1 }
 0xbe8   :  { %v2135_v61 = vadd.f32 %v4945_v21, %v2134_v60  ;;  %v2239_v9 = vadd.f32 %v4776_v7, %v2238_v4 }
 0xbe9   :  { %v4362_v1 = vpop.f32.mrf.mxu1 }
 0xbea   :  { %4527 = vtanh.f32 %v2135_v61  ;;  %v4027_v8 = vmul.f32 -1.442695, %v2135_v61  ;;  %v2242_v11 = vmax.f32 %v2239_v9, 0.0 }
 0xbec   :  { %4529 = vpow2.f32 %v4027_v8  ;;  %v2243_v14 = vsub.f32 0.0, %v2242_v11 }
 0xbee   :  { %v2244_v17 = vmul.f32 1.442695, %v2243_v14 }
 0xbf7   :  { %v4528_v63 = vpop.eup %4527 }
 0xbf8   :  { %2145 = vrot.lane.b32.xlu0 %v4528_v63, %s4621_s2 }
 0xbf9   :  { %v4530_v12 = vpop.eup %4529 }
 0xbfa   :  { %v2139_v13 = vadd.f32 1.0, %v4530_v12 }
 0xbfc   :  { %4531 = vrcp.f32 %v2139_v13 }
 0xbfd   :  { %4533 = vpow2.f32 %v2244_v17 }
 0xc09   :  { %v4532_v19 = vpop.eup %4531 }
 0xc0a   :  { %v4534_v24 = vpop.eup %4533  ;;  %v2143_v26 = vmul.f32 %v4532_v19, %v5047_v36  ;;  %v2249_v36 = vsub.f32 0.0, %v2248_v43 }
 0xc0c   :  { %v2250_v44 = vmul.f32 1.442695, %v2249_v36 }
 0xc6a   :  { %v2146_v20 = vpop.permute.xlu0 %2145 }
 0xc6b   :  { %v2148_v22 = vmul.f32 %v4532_v19, %v2146_v20 }
 0xc6d   :  { %2150 = vrot.lane.b32.xlu1 %v2148_v22, %s4622_s23  ;;  %v5215_v22 = vld [vmem:[%s5521_s5] sm:$0xf] }
 0xc71   :  { %2253 = vrot.lane.b32.xlu1 %v4534_v24, %s4623_s24  ;;  %v4049_v24 = vld [vmem:[%s5544_s1 + $0x20] sm:$0xff] }
 0xcdf   :  { %v2151_v27 = vpop.permute.xlu1 %2150 }
 0xce0   :  { %v5142_v29 = vadd.f32 %v2151_v27, %v2143_v26  ;;  %v5229_v26 = vld [vmem:[%s5523_s7 + $0x18] sm:$0xff]  ;;  %v5238_v27 = vld [vmem:[%s5523_s7 + $0x10] sm:$0xff] }
 0xce2   :  { %4535 = vtanh.f32 %v5142_v29 }
 0xce3   :  { %v2254_v31 = vpop.permute.xlu1 %2253  ;;  %4537 = vpow2.f32 %v2250_v44 }
 0xcef   :  { %v4536_v7 = vpop.eup %4535 }
 0xcf0   :  { %2156 = vrot.lane.b32.xlu0 %v4536_v7, %s4621_s2  ;;  %v4538_v48 = vpop.eup %4537 }
 0xd62   :  { %v2157_v30 = vpop.permute.xlu0 %2156 }
 0xd63   :  { %v2159_v32 = vmul.f32 %v4532_v19, %v2157_v30 }
 0xd65   :  { %v2256_v33 = vmul.f32 %v2254_v31, %v2159_v32 }
 0xd67   :  { %2258 = vrot.lane.b32.xlu0 %v2256_v33, %s4622_s23 }
 0xdd9   :  { %v2259_v46 = vpop.permute.xlu0 %2258 }
 0xdda   :  { %4372 = vmatmul.mubr.msk.f32.vlgmr.msra.gmra.mxu1 %vm219_vm3, %v2259_v46 }
 0xddb   :  { %4385 = vmatpush3.msk.msra.mxu1 %vm134_vm0, %v4805_v25  ;;  %4386 = vmatprep.mubr.msk.f32.mxu1 %vm4620_vm1, %v4619_v2  ;;  %v2164_v25 = vsel %vm2163_vm7, 0.0, %v4028_v16 }
 0xddc   :  { %4394 = vmatprep.subr.mxu1 %v4619_v2  ;;  %v2332_v54 = vmul.f32 %v5167_v18, %v2164_v25 }
 0xdde   :  { %4387 = vmatmul.mubr.msk.f32.vlgmr.msra.gmra.mxu1 %vm130_vm2, %v4538_v48 }
 0xddf   :  { %4395 = vmatpush3.msk.msra.mxu1 %vm134_vm0, %v4896_v45  ;;  %4396 = vmatprep.mubr.msk.f32.mxu1 %vm4620_vm1, %v4619_v2 }
 0xde0   :  { %4410 = vmatprep.subr.mxu1 %v4619_v2 }
 0xe9a   :  { %v2328_v51 = vpop.f32.mrf.mxu1 }
 0xe9b   :  { %v2329_v53 = vadd.f32 %v4824_v28, %v2328_v51 }
 0xe9c   :  { %v4373_v52 = vpop.f32.mrf.mxu1 }
 0xe9d   :  { %v2334_v55 = vmul.f32 %v2333_v50, %v2329_v53  ;;  %v2564_v63 = vsub.f32 %v2164_v25, %v2329_v53 }
 0xe9e   :  { %v2551_v28 = vpop.f32.mrf.mxu1 }
 0xe9f   :  { %v2335_v57 = vadd.f32 %v2334_v55, %v2332_v54  ;;  %v2565_v11 = vand.u32 2147483647, %v2564_v63  ;;  %v4047_v63 = vld [vmem:[%s5546_s27 + $0x20] sm:$0xff] }
 0xea0   :  { %vm2838_vm8 = vcmp.ne.f32.partialorder %v4047_v63, %v4047_v63 }
 0xea1   :  { %4377 = vmatmul.mubr.msk.f32.vlgmr.msra.gmra.mxu0 %vm130_vm2, %v2335_v57 }
 0xea2   :  { %4380 = vmatpush3.msk.msra.mxu0 %vm134_vm0, %v4835_v37  ;;  %4381 = vmatprep.mubr.msk.f32.mxu0 %vm4620_vm1, %v4619_v2  ;;  %v4388_v37 = vpop.f32.mrf.mxu1 }
 0xea3   :  { %4389 = vmatprep.subr.mxu0 %v4619_v2 }
 0xea5   :  { %4382 = vmatmul.mubr.msk.f32.vlgmr.msra.gmra.mxu0 %vm130_vm2, %v5167_v18 }
 0xea6   :  { %4390 = vmatpush3.msk.msra.mxu0 %vm134_vm0, %v4846_v38  ;;  %4391 = vmatprep.mubr.msk.f32.mxu0 %vm4620_vm1, %v4619_v2 }
 0xea7   :  { %4399 = vmatprep.subr.mxu0 %v4619_v2 }
 0xea9   :  { %4392 = vmatmul.mubr.msk.f32.vlgmr.msra.gmra.mxu0 %vm130_vm2, %v5167_v18 }
 0xeaa   :  { %4400 = vmatpush3.msra.mxu0 %v4858_v39  ;;  %4407 = vmatprep.mubr.msk.f32.mxu0 %vm4620_vm1, %v4619_v2 }
 0xeab   :  { %4401 = vmatprep.subr.mxu0 %v4619_v2 }
 0xeac   :  { %4402 = vmatpush3.msra.mxu0 %v4865_v40 }
 0xead   :  { %4403 = vmatprep.subr.mxu0 %v4619_v2 }
 0xeae   :  { %4404 = vmatpush3.msra.mxu0 %v4874_v41 }
 0xeaf   :  { %4405 = vmatprep.subr.mxu0 %v4619_v2 }
 0xeb0   :  { %4406 = vmatpush3.msra.mxu0 %v4881_v42 }
 0xeb1   :  { %4408 = vmatmul.mubr.msk.f32.vlgmr.msra.gmra.mxu0 %vm219_vm3, %v2259_v46  ;;  %4426 = vmatprep.subr.mxu0 %v4619_v2 }
 0xeb2   :  { %4427 = vmatpush3.msk.msra.mxu0 %vm134_vm0, %v4797_v23  ;;  %4428 = vmatprep.mubr.msk.f32.mxu0 %vm4620_vm1, %v4619_v2 }
 0xeb3   :  { %4431 = vmatprep.subr.mxu0 %v4619_v2 }
 0xf61   :  { %v2405_v38 = vpop.f32.mrf.mxu0 }
 0xf62   :  { %v2406_v41 = vadd.f32 %v4904_v47, %v2405_v38 }
 0xf63   :  { %v4378_v39 = vpop.f32.mrf.mxu0 }
 0xf64   :  { %v2566_v60 = vsub.f32 %v2164_v25, %v2406_v41 }
 0xf65   :  { %v2478_v40 = vpop.f32.mrf.mxu0 }
 0xf66   :  { %v2552_v42 = vadd.f32 %v2551_v28, %v2478_v40  ;;  %v2567_v8 = vand.u32 2147483647, %v2566_v60  ;;  %v5265_v40 = vld [vmem:[%s5545_s20] ss:$0 sm:$0xff] }
 0xf67   :  { %v4383_v0 = vpop.f32.mrf.mxu0 }
 0xf68   :  { %v2555_v58 = vadd.f32 %v4909_v49, %v2552_v42  ;;  %v2568_v17 = vadd.f32 %v2567_v8, %v2565_v11 }
 0xf69   :  { %v2662_v3 = vpop.f32.mrf.mxu0 }
 0xf6a   :  { %v2557_v61 = vsub.f32 1.0, %v2555_v58  ;;  %v2556_v4 = vmul.f32 %v2555_v58, %v2406_v41  ;;  %v5271_v41 = vld [vmem:[%s5520_s4] ss:$0 sm:$0xff] }
 0xf6b   :  { %v4393_v23 = vpop.f32.mrf.mxu0 }
 0xf6c   :  { %v2558_v1 = vmul.f32 %v2557_v61, %v2329_v53  ;;  %v5278_v23 = vld [vmem:[%s5527_s11] sm:$0xf] }
 0xf6e   :  { %v2559_v9 = vadd.f32 %v2558_v1, %v2556_v4  ;;  %v5297_v4 = vld [vmem:[%s5547_s0 + $0x20] sm:$0xff]  ;;  %v5299_v1 = vsel %vm2838_vm8, 0.0, %v4047_v63 }
 0xf6f   :  { %v3008_v8 = vsub.f32 1.0, %v5297_v4 }
 0xf70   :  { %v2560_v12 = vmul.f32 %v2559_v9, %v2333_v50  ;;  %v2569_v13 = vsub.f32 %v2164_v25, %v2559_v9  ;;  %v5305_v9 = vld [vmem:[%s5524_s8] ss:$0 sm:$0xff] }
 0xf71   :  { %v2805_v14 = vpop.f32.mrf.mxu0 }
 0xf72   :  { %v2561_v19 = vadd.f32 %v2560_v12, %v2332_v54  ;;  %v2570_v47 = vand.u32 2147483647, %v2569_v13  ;;  %v3007_v12 = vmul.f32 %v5297_v4, %v5299_v1 }
 0xf73   :  { %v4409_v20 = vpop.f32.mrf.mxu0 }
 0xf74   :  { %4040 = vst.msk [vmem:[%s5534_s18 + $0x18] sm:$0xff] %vm130_vm2, %v2561_v19  ;;  %4397 = vmatmul.mubr.msk.f32.vlgmr.msra.gmra.mxu1 %vm130_vm2, %v2561_v19  ;;  %v5210_v49 = vadd.f32 %v2570_v47, %v2568_v17  ;;  %v5314_v19 = vld [vmem:[%s5528_s12] sm:$0xf]  ;;  %v4585_v20 = vld [vmem:[%s5532_s16 + $0x18] sm:$0xff] }
 0xf75   :  { %4411 = vmatpush3.msk.msra.mxu1 %vm134_vm0, %v5215_v22  ;;  %4412 = vmatprep.mubr.msk.f32.mxu1 %vm4620_vm1, %v4619_v2  ;;  %v4584_v47 = vld [vmem:[%s5531_s15] sm:$0xf] }
 0xf76   :  { %4415 = vmatprep.subr.mxu1 %v4619_v2 }
 0xf78   :  { %4413 = vmatmul.mubr.msk.f32.vlgmr.msra.gmra.mxu1 %vm130_vm2, %v4049_v24 }
 0xf79   :  { %4416 = vmatpush3.msra.mxu1 %v5229_v26  ;;  %4423 = vmatprep.mubr.msk.f32.mxu1 %vm4620_vm1, %v4619_v2 }
 0xf7a   :  { %4417 = vmatprep.subr.mxu1 %v4619_v2 }
 0xf7b   :  { %4418 = vmatpush3.msra.mxu1 %v5238_v27 }
 0xf7c   :  { %4419 = vmatprep.subr.mxu1 %v4619_v2 }
 0xf7d   :  { %4420 = vmatpush3.msra.mxu1 %v4762_v5  ;;  %v5251_v5 = vld [vmem:[%s5522_s6] ss:$0 sm:$0xff] }
 0xf7e   :  { %4421 = vmatprep.subr.mxu1 %v4619_v2 }
 0xf7f   :  { %4422 = vmatpush3.msra.mxu1 %v4769_v6 }
 0xf80   :  { %4436 = vmatprep.subr.mxu1 %v4619_v2 }
0x1034   :  { %v2735_v7 = vpop.f32.mrf.mxu1 }
0x1035   :  { %v2736_v30 = vadd.f32 %v2735_v7, %v2662_v3  ;;  %v4587_v7 = vld [vmem:[%s5532_s16 + $0x8] sm:$0xff] }
0x1036   :  { %v4398_v31 = vpop.f32.mrf.mxu1 }
0x1037   :  { %v2809_v32 = vadd.f32 %v2805_v14, %v2736_v30  ;;  %v4588_v30 = vld [vmem:[%s5532_s16] sm:$0xff] }
0x1038   :  { %v2913_v35 = vpop.f32.mrf.mxu1  ;;  %v4589_v31 = vld [vmem:[%s5525_s9] sm:$0xf] }
0x1039   :  { %v2810_v33 = vadd.f32 %v4945_v21, %v2809_v32  ;;  %v2914_v6 = vadd.f32 %v5251_v5, %v2913_v35 }
0x103a   :  { %v4414_v43 = vpop.f32.mrf.mxu1 }
0x103b   :  { %4539 = vtanh.f32 %v2810_v33  ;;  %v4046_v36 = vmul.f32 -1.442695, %v2810_v33  ;;  %v2917_v44 = vmax.f32 %v2914_v6, 0.0 }
0x103d   :  { %4541 = vpow2.f32 %v4046_v36  ;;  %v2918_v16 = vsub.f32 0.0, %v2917_v44  ;;  %v5361_v36 = vld [vmem:[%s5526_s10] ss:$0 sm:$0xff] }
0x103f   :  { %v2919_v21 = vmul.f32 1.442695, %v2918_v16 }
0x1048   :  { %v4540_v34 = vpop.eup %4539 }
0x1049   :  { %2820 = vrot.lane.b32.xlu1 %v4540_v34, %s4621_s2 }
0x104a   :  { %v4542_v46 = vpop.eup %4541 }
0x104b   :  { %v2814_v48 = vadd.f32 1.0, %v4542_v46 }
0x104d   :  { %4543 = vrcp.f32 %v2814_v48  ;;  %v5367_v48 = vld [vmem:[%s5529_s13] ss:$0 sm:$0xff] }
0x104e   :  { %4545 = vpow2.f32 %v2919_v21 }
0x105a   :  { %v4544_v25 = vpop.eup %4543 }
0x105b   :  { %v4546_v53 = vpop.eup %4545  ;;  %v2818_v54 = vmul.f32 %v4544_v25, %v5142_v29  ;;  %v2921_v29 = vmul.f32 %v5265_v40, %v4049_v24  ;;  %v4586_v24 = vld [vmem:[%s5532_s16 + $0x10] sm:$0xff] }
0x105d   :  { %v2922_v42 = vadd.f32 %v5271_v41, %v2921_v29 }
0x105f   :  { %v2923_v0 = vmax.f32 %v2922_v42, 0.0 }
0x1061   :  { %v2924_v58 = vsub.f32 0.0, %v2923_v0 }
0x1063   :  { %v2925_v3 = vmul.f32 1.442695, %v2924_v58 }
0x10bb   :  { %v2821_v50 = vpop.permute.xlu1 %2820 }
0x10bc   :  { %v2823_v51 = vmul.f32 %v4544_v25, %v2821_v50 }
0x10be   :  { %2825 = vrot.lane.b32.xlu0 %v2823_v51, %s4622_s23 }
0x10c2   :  { %2928 = vrot.lane.b32.xlu0 %v4546_v53, %s4623_s24 }
0x1130   :  { %v2826_v52 = vpop.permute.xlu0 %2825 }
0x1131   :  { %v5257_v55 = vadd.f32 %v2826_v52, %v2818_v54 }
0x1133   :  { %4547 = vtanh.f32 %v5257_v55 }
0x1134   :  { %v2929_v37 = vpop.permute.xlu0 %2928  ;;  %4549 = vpow2.f32 %v2925_v3 }
0x1140   :  { %v4548_v57 = vpop.eup %4547 }
0x1141   :  { %2831 = vrot.lane.b32.xlu1 %v4548_v57, %s4621_s2  ;;  %v4550_v61 = vpop.eup %4549 }
0x11b3   :  { %v2832_v28 = vpop.permute.xlu1 %2831 }
0x11b4   :  { %v2834_v38 = vmul.f32 %v4544_v25, %v2832_v28 }
0x11b6   :  { %v2931_v39 = vmul.f32 %v2929_v37, %v2834_v38 }
0x11b8   :  { %2933 = vrot.lane.b32.xlu1 %v2931_v39, %s4622_s23 }
0x122a   :  { %v2934_v60 = vpop.permute.xlu1 %2933 }
0x122b   :  { %4424 = vmatmul.mubr.msk.f32.vlgmr.msra.gmra.mxu1 %vm219_vm3, %v2934_v60 }
0x122c   :  { %4437 = vmatpush3.msk.msra.mxu1 %vm134_vm0, %v5278_v23  ;;  %4438 = vmatprep.mubr.msk.f32.mxu1 %vm4620_vm1, %v4619_v2 }
0x122d   :  { %4446 = vmatprep.subr.mxu1 %v4619_v2 }
0x122f   :  { %4439 = vmatmul.mubr.msk.f32.vlgmr.msra.gmra.mxu1 %vm130_vm2, %v4550_v61  ;;  %v5385_v61 = vld [vmem:[%s5544_s1 + $0x28] sm:$0xff] }
0x1230   :  { %4447 = vmatpush3.msk.msra.mxu1 %vm134_vm0, %v4896_v45  ;;  %4448 = vmatprep.mubr.msk.f32.mxu1 %vm4620_vm1, %v4619_v2 }
0x1231   :  { %4462 = vmatprep.subr.mxu1 %v4619_v2 }
0x12eb   :  { %v3003_v45 = vpop.f32.mrf.mxu1 }
0x12ec   :  { %v3004_v11 = vadd.f32 %v5305_v9, %v3003_v45 }
0x12ed   :  { %v4425_v13 = vpop.f32.mrf.mxu1 }
0x12ee   :  { %v3009_v14 = vmul.f32 %v3008_v8, %v3004_v11  ;;  %v3239_v53 = vsub.f32 %v5299_v1, %v3004_v11 }
0x12ef   :  { %v3226_v32 = vpop.f32.mrf.mxu1 }
0x12f0   :  { %v3010_v17 = vadd.f32 %v3009_v14, %v3007_v12  ;;  %v3240_v37 = vand.u32 2147483647, %v3239_v53 }
0x12f1   :  { %v4440_v33 = vpop.f32.mrf.mxu1 }
0x12f2   :  { %4429 = vmatmul.mubr.msk.f32.vlgmr.msra.gmra.mxu0 %vm130_vm2, %v3010_v17 }
0x12f3   :  { %4432 = vmatpush3.msk.msra.mxu0 %vm134_vm0, %v5314_v19  ;;  %4433 = vmatprep.mubr.msk.f32.mxu0 %vm4620_vm1, %v4619_v2 }
0x12f4   :  { %4441 = vmatprep.subr.mxu0 %v4619_v2 }
0x12f6   :  { %4434 = vmatmul.mubr.msk.f32.vlgmr.msra.gmra.mxu0 %vm130_vm2, %v5297_v4 }
0x12f7   :  { %4442 = vmatpush3.msk.msra.mxu0 %vm134_vm0, %v4584_v47  ;;  %4443 = vmatprep.mubr.msk.f32.mxu0 %vm4620_vm1, %v4619_v2 }
0x12f8   :  { %4451 = vmatprep.subr.mxu0 %v4619_v2 }
0x12fa   :  { %4444 = vmatmul.mubr.msk.f32.vlgmr.msra.gmra.mxu0 %vm130_vm2, %v5297_v4 }
0x12fb   :  { %4452 = vmatpush3.msra.mxu0 %v4585_v20  ;;  %4459 = vmatprep.mubr.msk.f32.mxu0 %vm4620_vm1, %v4619_v2 }
0x12fc   :  { %4453 = vmatprep.subr.mxu0 %v4619_v2 }
0x12fd   :  { %4454 = vmatpush3.msra.mxu0 %v4586_v24 }
0x12fe   :  { %4455 = vmatprep.subr.mxu0 %v4619_v2 }
0x12ff   :  { %4456 = vmatpush3.msra.mxu0 %v4587_v7 }
0x1300   :  { %4457 = vmatprep.subr.mxu0 %v4619_v2 }
0x1301   :  { %4458 = vmatpush3.msra.mxu0 %v4588_v30 }
0x1302   :  { %4460 = vmatmul.mubr.msk.f32.vlgmr.msra.gmra.mxu0 %vm219_vm3, %v2934_v60  ;;  %4478 = vmatprep.subr.mxu0 %v4619_v2 }
0x1303   :  { %4479 = vmatpush3.msk.msra.mxu0 %vm134_vm0, %v4589_v31  ;;  %4480 = vmatprep.mubr.msk.f32.mxu0 %vm4620_vm1, %v4619_v2 }
0x1304   :  { %4483 = vmatprep.subr.mxu0 %v4619_v2 }
0x13b2   :  { %v3080_v34 = vpop.f32.mrf.mxu0 }
0x13b3   :  { %v3081_v6 = vadd.f32 %v5361_v36, %v3080_v34 }
0x13b4   :  { %v4430_v35 = vpop.f32.mrf.mxu0 }
0x13b5   :  { %v3241_v25 = vsub.f32 %v5299_v1, %v3081_v6 }
0x13b6   :  { %v3153_v43 = vpop.f32.mrf.mxu0 }
0x13b7   :  { %v3227_v44 = vadd.f32 %v3226_v32, %v3153_v43  ;;  %v3242_v57 = vand.u32 2147483647, %v3241_v25  ;;  %v4595_v43 = vld [vmem:[%s5547_s0] sm:$0xff] }
0x13b8   :  { %v4435_v46 = vpop.f32.mrf.mxu0 }
0x13b9   :  { %v3230_v16 = vadd.f32 %v5367_v48, %v3227_v44  ;;  %v3243_v42 = vadd.f32 %v3242_v57, %v3240_v37  ;;  %v1897_v46 = vmul.f32 %v5072_v59, %v5115_v56 }
0x13ba   :  { %v3337_v21 = vpop.f32.mrf.mxu0 }
0x13bb   :  { %v3232_v50 = vsub.f32 1.0, %v3230_v16  ;;  %v3231_v54 = vmul.f32 %v3230_v16, %v3081_v6  ;;  %v1222_v6 = vmul.f32 %v4977_v10, %v5020_v62  ;;  %v1907_v16 = vsel %vm130_vm2, %v1897_v46, 0.0 }
0x13bc   :  { %v4445_v51 = vpop.f32.mrf.mxu0 }
0x13bd   :  { %v3233_v52 = vmul.f32 %v3232_v50, %v3004_v11  ;;  %v4594_v11 = vld [vmem:[%s5533_s17] ss:$0 sm:$0xff]  ;;  %v1232_v44 = vsel %vm130_vm2, %v1222_v6, 0.0 }
0x13bf   :  { %v3234_v28 = vadd.f32 %v3233_v52, %v3231_v54 }
0x13c1   :  { %v3235_v38 = vmul.f32 %v3234_v28, %v3008_v8  ;;  %v3244_v39 = vsub.f32 %v5299_v1, %v3234_v28  ;;  %v541_v28 = vmul.f32 %v4595_v43, %v4921_v15  ;;  %v3248_v15 = vsel %vm130_vm2, %v5297_v4, 0.0 }
0x13c2   :  { %v3480_v29 = vpop.f32.mrf.mxu0 }
0x13c3   :  { %v3236_v0 = vadd.f32 %v3235_v38, %v3007_v12  ;;  %v3245_v58 = vand.u32 2147483647, %v3244_v39  ;;  %v551_v37 = vsel %vm130_vm2, %v541_v28, 0.0  ;;  %v1898_v39 = vsel %vm130_vm2, %v5072_v59, 0.0 }
0x13c4   :  { %v4461_v3 = vpop.f32.mrf.mxu0 }
0x13c5   :  { %4059 = vst.msk [vmem:[%s5534_s18 + $0x20] sm:$0xff] %vm130_vm2, %v3236_v0  ;;  %4449 = vmatmul.mubr.msk.f32.vlgmr.msra.gmra.mxu1 %vm130_vm2, %v3236_v0  ;;  %v3246_v60 = vadd.f32 %v3245_v58, %v3243_v42  ;;  %v3596_v42 = vmul.f32 %v5265_v40, %v5385_v61  ;;  %v4067_v40 = vld [vmem:[%s5547_s0 + $0x28] sm:$0xff] }
0x13c6   :  { %4463 = vmatpush3.msk.msra.mxu1 %vm134_vm0, %v5215_v22  ;;  %4464 = vmatprep.mubr.msk.f32.mxu1 %vm4620_vm1, %v4619_v2  ;;  %v4592_v22 = vld [vmem:[%s5523_s7 + $0x8] sm:$0xff] }
0x13c7   :  { %4467 = vmatprep.subr.mxu1 %v4619_v2  ;;  %v3247_v50 = vmul.f32 %v5297_v4, %v3246_v60  ;;  %v3597_v0 = vadd.f32 %v5271_v41, %v3596_v42  ;;  %v3683_v4 = vsub.f32 1.0, %v4067_v40 }
0x13c9   :  { %4465 = vmatmul.mubr.msk.f32.vlgmr.msra.gmra.mxu1 %vm130_vm2, %v5385_v61  ;;  %v3257_v10 = vsel %vm130_vm2, %v3247_v50, 0.0  ;;  %v3598_v58 = vmax.f32 %v3597_v0, 0.0 }
0x13ca   :  { %4468 = vmatpush3.msra.mxu1 %v5229_v26  ;;  %4475 = vmatprep.mubr.msk.f32.mxu1 %vm4620_vm1, %v4619_v2  ;;  %v4593_v26 = vld [vmem:[%s5523_s7] sm:$0xff] }
0x13cb   :  { %4469 = vmatprep.subr.mxu1 %v4619_v2  ;;  %v3599_v3 = vsub.f32 0.0, %v3598_v58 }
0x13cc   :  { %4470 = vmatpush3.msra.mxu1 %v5238_v27 }
0x13cd   :  { %4471 = vmatprep.subr.mxu1 %v4619_v2  ;;  %v3600_v60 = vmul.f32 1.442695, %v3599_v3 }
0x13ce   :  { %4472 = vmatpush3.msra.mxu1 %v4592_v22 }
0x13cf   :  { %4473 = vmatprep.subr.mxu1 %v4619_v2 }
0x13d0   :  { %4474 = vmatpush3.msra.mxu1 %v4593_v26 }
0x13d1   :  { %4488 = vmatprep.subr.mxu1 %v4619_v2 }
0x1485   :  { %v3410_v63 = vpop.f32.mrf.mxu1 }
0x1486   :  { %v3411_v1 = vadd.f32 %v3410_v63, %v3337_v21  ;;  %v2572_v21 = vmul.f32 %v5167_v18, %v5210_v49 }
0x1487   :  { %v4450_v8 = vpop.f32.mrf.mxu1 }
0x1488   :  { %v3484_v27 = vadd.f32 %v3480_v29, %v3411_v1  ;;  %v2582_v25 = vsel %vm130_vm2, %v2572_v21, 0.0  ;;  %v2573_v29 = vsel %vm130_vm2, %v5167_v18, 0.0  ;;  %v4066_v18 = vld [vmem:[%s5546_s27 + $0x28] sm:$0xff] }
0x1489   :  { %v3588_v45 = vpop.f32.mrf.mxu1  ;;  %vm3513_vm9 = vcmp.ne.f32.partialorder %v4066_v18, %v4066_v18 }
0x148a   :  { %v3485_v12 = vadd.f32 %v4594_v11, %v3484_v27  ;;  %v3589_v47 = vadd.f32 %v5251_v5, %v3588_v45  ;;  %v542_v5 = vsel %vm130_vm2, %v4595_v43, 0.0  ;;  %v3514_v41 = vsel %vm3513_vm9, 0.0, %v4066_v18 }
0x148b   :  { %v4466_v13 = vpop.f32.mrf.mxu1  ;;  %v3923_v27 = vsel %vm130_vm2, %v4067_v40, 0.0 }
0x148c   :  { %4551 = vtanh.f32 %v3485_v12  ;;  %v4065_v17 = vmul.f32 -1.442695, %v3485_v12  ;;  %v3592_v20 = vmax.f32 %v3589_v47, 0.0 }
0x148e   :  { %4553 = vpow2.f32 %v4065_v17  ;;  %v3593_v30 = vsub.f32 0.0, %v3592_v20 }
0x1490   :  { %v3594_v31 = vmul.f32 1.442695, %v3593_v30 }
0x1499   :  { %v4552_v14 = vpop.eup %4551 }
0x149a   :  { %3495 = vrot.lane.b32.xlu0 %v4552_v14, %s4621_s2 }
0x149b   :  { %v4554_v24 = vpop.eup %4553 }
0x149c   :  { %v3489_v7 = vadd.f32 1.0, %v4554_v24 }
0x149e   :  { %4555 = vrcp.f32 %v3489_v7 }
0x149f   :  { %4557 = vpow2.f32 %v3594_v31 }
0x14ab   :  { %v4556_v32 = vpop.eup %4555 }
0x14ac   :  { %v4558_v35 = vpop.eup %4557  ;;  %v3493_v62 = vmul.f32 %v4556_v32, %v5257_v55  ;;  %v4596_v55 = vld [vmem:[%s5547_s0 + $0x8] sm:$0xff] }
0x14ad   :  { %v1223_v38 = vsel %vm130_vm2, %v4596_v55, 0.0 }
0x150c   :  { %v3496_v33 = vpop.permute.xlu0 %3495 }
0x150d   :  { %v3498_v34 = vmul.f32 %v4556_v32, %v3496_v33 }
0x150f   :  { %3500 = vrot.lane.b32.xlu1 %v3498_v34, %s4622_s23 }
0x1513   :  { %3603 = vrot.lane.b32.xlu1 %v4558_v35, %s4623_s24 }
0x1537   :  { %543 = vadd.xlane.f32.xlu1 %v542_v5 }
0x153b   :  { %1233 = vadd.xlane.f32.xlu1 %v1232_v44 }
0x153f   :  { %1908 = vadd.xlane.f32.xlu1 %v1907_v16 }
0x1543   :  { %2583 = vadd.xlane.f32.xlu1 %v2582_v25 }
0x1547   :  { %3258 = vadd.xlane.f32.xlu1 %v3257_v10 }
0x1581   :  { %v3501_v51 = vpop.permute.xlu1 %3500 }
0x1582   :  { %v3503_v53 = vadd.f32 %v3501_v51, %v3493_v62 }
0x1584   :  { %4559 = vtanh.f32 %v3503_v53 }
0x1585   :  { %v3604_v49 = vpop.permute.xlu1 %3603  ;;  %4561 = vpow2.f32 %v3600_v60 }
0x1591   :  { %v4560_v56 = vpop.eup %4559 }
0x1592   :  { %3506 = vrot.lane.b32.xlu0 %v4560_v56, %s4621_s2  ;;  %v4562_v59 = vpop.eup %4561 }
0x15c0   :  { %v544_v50 = vpop.xlane.xlu1 %543 }
0x15c1   :  { %v545_v62 = vrot.slane %v544_v50, 4 }
0x1604   :  { %v3507_v54 = vpop.permute.xlu0 %3506 }
0x1605   :  { %v3509_v52 = vmul.f32 %v4556_v32, %v3507_v54 }
0x1607   :  { %v3606_v57 = vmul.f32 %v3604_v49, %v3509_v52  ;;  %v546_v52 = vadd.f32 %v545_v62, %v544_v50 }
0x1609   :  { %3608 = vrot.lane.b32.xlu0 %v3606_v57, %s4622_s23  ;;  %v547_v55 = vrot.slane %v546_v52, 2 }
0x160b   :  { %v548_v58 = vadd.f32 %v547_v55, %v546_v52 }
0x1628   :  { %552 = vadd.xlane.f32.xlu0 %v551_v37 }
0x162c   :  { %1224 = vadd.xlane.f32.xlu0 %v1223_v38  ;;  %v1234_v38 = vpop.xlane.xlu1 %1233 }
0x1630   :  { %1899 = vadd.xlane.f32.xlu0 %v1898_v39 }
0x1634   :  { %2574 = vadd.xlane.f32.xlu0 %v2573_v29 }
0x1638   :  { %3249 = vadd.xlane.f32.xlu0 %v3248_v15 }
0x163c   :  { %3924 = vadd.xlane.f32.xlu0 %v3923_v27 }
0x167b   :  { %v3609_v22 = vpop.permute.xlu0 %3608 }
0x167c   :  { %4476 = vmatmul.mubr.msk.f32.vlgmr.msra.gmra.mxu1 %vm219_vm3, %v3609_v22 }
0x167d   :  { %4489 = vmatpush3.msk.msra.mxu1 %vm134_vm0, %v5278_v23  ;;  %4490 = vmatprep.mubr.msk.f32.mxu1 %vm4620_vm1, %v4619_v2  ;;  %v3682_v23 = vmul.f32 %v4067_v40, %v3514_v41 }
0x1680   :  { %4491 = vmatmul.mubr.msk.f32.vlgmr.msra.gmra.mxu1 %vm130_vm2, %v4562_v59  ;;  %v1909_v59 = vpop.xlane.xlu1 %1908 }
0x16b1   :  { %v553_v46 = vpop.xlane.xlu0 %552 }
0x16b5   :  { %v1225_v16 = vpop.xlane.xlu0 %1224 }
0x16b6   :  { %v1226_v10 = vrot.slane %v1225_v16, 4 }
0x16b8   :  { %v1227_v56 = vadd.f32 %v1226_v10, %v1225_v16 }
0x16b9   :  { %v1900_v21 = vpop.xlane.xlu0 %1899 }
0x16ba   :  { %v1901_v51 = vrot.slane %v1900_v21, 4  ;;  %v1228_v28 = vrot.slane %v1227_v56, 2 }
0x16bc   :  { %v1902_v49 = vadd.f32 %v1901_v51, %v1900_v21  ;;  %v1229_v42 = vadd.f32 %v1228_v28, %v1227_v56 }
0x16bd   :  { %v2575_v25 = vpop.xlane.xlu0 %2574 }
0x16be   :  { %v2576_v54 = vrot.slane %v2575_v25, 4  ;;  %v1903_v39 = vrot.slane %v1902_v49, 2  ;;  %v1230_v18 = vrot.slane %v1229_v42, 1 }
0x16c0   :  { %v2577_v37 = vadd.f32 %v2576_v54, %v2575_v25  ;;  %v1904_v3 = vadd.f32 %v1903_v39, %v1902_v49 }
0x16c1   :  { %v3250_v53 = vpop.xlane.xlu0 %3249 }
0x16c2   :  { %v3251_v57 = vrot.slane %v3250_v53, 4  ;;  %v2578_v0 = vrot.slane %v2577_v37, 2 }
0x16c4   :  { %v3252_v29 = vadd.f32 %v3251_v57, %v3250_v53 }
0x16c5   :  { %v3925_v15 = vpop.xlane.xlu0 %3924 }
0x16c6   :  { %v3253_v60 = vrot.slane %v3252_v29, 2  ;;  %v3926_v22 = vrot.slane %v3925_v15, 4 }
0x173c   :  { %v3678_v61 = vpop.f32.mrf.mxu1 }
0x173d   :  { %v3679_v26 = vadd.f32 %v5305_v9, %v3678_v61  ;;  %v3254_v61 = vadd.f32 %v3253_v60, %v3252_v29 }
0x173e   :  { %v4477_v63 = vpop.f32.mrf.mxu1 }
0x173f   :  { %v3684_v1 = vmul.f32 %v3683_v4, %v3679_v26  ;;  %v3914_v7 = vsub.f32 %v3514_v41, %v3679_v26 }
0x1740   :  { %v3901_v45 = vpop.f32.mrf.mxu1 }
0x1741   :  { %v3685_v8 = vadd.f32 %v3684_v1, %v3682_v23  ;;  %v3915_v33 = vand.u32 2147483647, %v3914_v7 }
0x1742   :  { %v4492_v11 = vpop.f32.mrf.mxu1 }
0x1743   :  { %4481 = vmatmul.mubr.msk.f32.vlgmr.msra.gmra.mxu0 %vm130_vm2, %v3685_v8  ;;  %v2584_v8 = vpop.xlane.xlu1 %2583 }
0x1744   :  { %4484 = vmatpush3.msk.msra.mxu0 %vm134_vm0, %v5314_v19  ;;  %4485 = vmatprep.mubr.msk.f32.mxu0 %vm4620_vm1, %v4619_v2  ;;  %vm3948_vm0 = vcmask 0  }
0x1747   :  { %4486 = vmatmul.mubr.msk.f32.vlgmr.msra.gmra.mxu0 %vm130_vm2, %v4067_v40 }
0x1803   :  { %v3755_v9 = vpop.f32.mrf.mxu0 }
0x1804   :  { %v3756_v14 = vadd.f32 %v5361_v36, %v3755_v9  ;;  %v1235_v9 = vrot.slane %v1234_v38, 4 }
0x1805   :  { %v4482_v12 = vpop.f32.mrf.mxu0 }
0x1806   :  { %v3916_v19 = vsub.f32 %v3514_v41, %v3756_v14  ;;  %v554_v12 = vrot.slane %v553_v46, 4 }
0x1807   :  { %v3828_v13 = vpop.f32.mrf.mxu0 }
0x1808   :  { %v3902_v17 = vadd.f32 %v3901_v45, %v3828_v13  ;;  %v3917_v31 = vand.u32 2147483647, %v3916_v19  ;;  %v3255_v45 = vrot.slane %v3254_v61, 1  ;;  %v3259_v19 = vpop.xlane.xlu1 %3258 }
0x1809   :  { %v4487_v47 = vpop.f32.mrf.mxu0 }
0x180a   :  { %v3905_v20 = vadd.f32 %v5367_v48, %v3902_v17  ;;  %v3918_v43 = vadd.f32 %v3917_v31, %v3915_v33  ;;  %v5482_v17 = vadd.f32 %v3255_v45, %v3254_v61  ;;  %v3260_v33 = vrot.slane %v3259_v19, 4 }
0x180c   :  { %v3907_v24 = vsub.f32 1.0, %v3905_v20  ;;  %v3906_v2 = vmul.f32 %v3905_v20, %v3756_v14  ;;  %v1910_v14 = vrot.slane %v1909_v59, 4  ;;  %v1236_v20 = vadd.f32 %v1235_v9, %v1234_v38 }
0x180d   :  { %vm3266_vm14 = vcmp.ne.f32.partialorder %v5482_v17, 0.0 }
0x180e   :  { %v3908_v30 = vmul.f32 %v3907_v24, %v3679_v26  ;;  %v3927_v26 = vadd.f32 %v3926_v22, %v3925_v15  ;;  %v1911_v31 = vadd.f32 %v1910_v14, %v1909_v59 }
0x1810   :  { %v3909_v32 = vadd.f32 %v3908_v30, %v3906_v2  ;;  %v3928_v11 = vrot.slane %v3927_v26, 2  ;;  %v2585_v2 = vrot.slane %v2584_v8, 4  ;;  %v555_v30 = vadd.f32 %v554_v12, %v553_v46 }
0x1812   :  { %v3910_v34 = vmul.f32 %v3909_v32, %v3683_v4  ;;  %v3919_v35 = vsub.f32 %v3514_v41, %v3909_v32  ;;  %v549_v41 = vrot.slane %v548_v58, 1  ;;  %v1905_v4 = vrot.slane %v1904_v3, 1 }
0x1813   :  { %v3929_v47 = vadd.f32 %v3928_v11, %v3927_v26 }
0x1814   :  { %v3911_v5 = vadd.f32 %v3910_v34, %v3682_v23  ;;  %v3920_v6 = vand.u32 2147483647, %v3919_v35  ;;  %v5471_v23 = vadd.f32 %v1230_v18, %v1229_v42  ;;  %v5473_v1 = vadd.f32 %v549_v41, %v548_v58 }
0x1815   :  { %v5475_v27 = vadd.f32 %v1905_v4, %v1904_v3  ;;  %v3930_v34 = vrot.slane %v3929_v47, 1 }
0x1816   :  { %4078 = vst.msk [vmem:[%s5534_s18 + $0x28] sm:$0xff] %vm130_vm2, %v3911_v5  ;;  %v3921_v36 = vadd.f32 %v3920_v6, %v3918_v43  ;;  %vm1241_vm10 = vcmp.ne.f32.partialorder %v5471_v23, 0.0  ;;  %vm560_vm11 = vcmp.ne.f32.partialorder %v5473_v1, 0.0  ;;  %v1237_v43 = vrot.slane %v1236_v20, 2  ;;  %s4624_s18 = smov [#allocation2]  }
0x1817   :  { %vm1916_vm12 = vcmp.ne.f32.partialorder %v5475_v27, 0.0  ;;  %v1242_v24 = vsel %vm1241_vm10, %v5471_v23, 1.0  ;;  %v561_v7 = vsel %vm560_vm11, %v5473_v1, 1.0  ;;  %v2586_v5 = vadd.f32 %v2585_v2, %v2584_v8  ;;  %s3958_s21 = sshll.u32 %s4624_s18, 4  ;;  %s3959_s21 = int_to_ptr.vmem [resolvable:$true] %s3958_s21 }
0x1818   :  { %v3922_v48 = vmul.f32 %v4067_v40, %v3921_v36  ;;  %v2579_v40 = vadd.f32 %v2578_v0, %v2577_v37  ;;  %v1917_v32 = vsel %vm1916_vm12, %v5475_v27, 1.0  ;;  %4563 = vrcp.f32 %v1242_v24  ;;  %s4597_s20 = scalar_lea.vmem %s3959_s21, 16  ;;  %s4601_s4 = scalar_lea.vmem %s3959_s21, 32 }
0x1819   :  { %4565 = vrcp.f32 %v561_v7  ;;  %v556_v6 = vrot.slane %v555_v30, 2  ;;  %v3267_v36 = vsel %vm3266_vm14, %v5482_v17, 1.0  ;;  %v3931_v46 = vadd.f32 %v3930_v34, %v3929_v47  ;;  %p4598_p0 = scmp.ne.s32.totalorder %s3959_s21, %s4597_s20  ;;  %p4602_p1 = scmp.lt.s32.totalorder %s3959_s21, %s3959_s21 }
0x181a   :  { %v3932_v44 = vsel %vm130_vm2, %v3922_v48, 0.0  ;;  %v2580_v63 = vrot.slane %v2579_v40, 1  ;;  %4567 = vrcp.f32 %v1917_v32  ;;  %v1912_v48 = vrot.slane %v1911_v31, 2  ;;  %p4603_p2 = scmp.lt.s32.totalorder %s4601_s4, %s4597_s20 }
0x181b   :  { %3933 = vadd.xlane.f32.xlu1 %v3932_v44  ;;  %v3261_v44 = vadd.f32 %v3260_v33, %v3259_v19  ;;  %v1238_v16 = vadd.f32 %v1237_v43, %v1236_v20  ;;  %v2587_v21 = vrot.slane %v2586_v5, 2  ;;  %v557_v25 = vadd.f32 %v556_v6, %v555_v30 }
0x181c   :  { %v5478_v13 = vadd.f32 %v2580_v63, %v2579_v40  ;;  %v1913_v50 = vadd.f32 %v1912_v48, %v1911_v31  ;;  %vm3941_vm15 = vcmp.ne.f32.partialorder %v3931_v46, 0.0  ;;  %p4604_p3 = por %p4603_p2, %p4602_p1 }
0x181d   :  { %v3262_v10 = vrot.slane %v3261_v44, 2  ;;  %v1239_v62 = vrot.slane %v1238_v16, 1  ;;  %v2588_v51 = vadd.f32 %v2587_v21, %v2586_v5  ;;  %v558_v53 = vrot.slane %v557_v25, 1 }
0x181e   :  { %vm2591_vm13 = vcmp.ne.f32.partialorder %v5478_v13, 0.0  ;;  %v3942_v56 = vsel %vm3941_vm15, %v3931_v46, 1.0  ;;  %v1914_v54 = vrot.slane %v1913_v50, 1  ;;  %p4605_p4 = pnand %p4604_p3, %p4598_p0 }
0x181f   :  { %v2592_v35 = vsel %vm2591_vm13, %v5478_v13, 1.0  ;;  %v3263_v52 = vadd.f32 %v3262_v10, %v3261_v44  ;;  %v1240_v28 = vadd.f32 %v1239_v62, %v1238_v16  ;;  %v2589_v37 = vrot.slane %v2588_v51, 1 }
0x1820   :  { %4569 = vrcp.f32 %v2592_v35  ;;  %v559_v55 = vadd.f32 %v558_v53, %v557_v25  ;;  %v1915_v29 = vadd.f32 %v1914_v54, %v1913_v50 }
0x1821   :  { %4571 = vrcp.f32 %v3267_v36  ;;  %v3264_v15 = vrot.slane %v3263_v52, 1  ;;  %v2590_v3 = vadd.f32 %v2589_v37, %v2588_v51 }
0x1822   :  { %4573 = vrcp.f32 %v3942_v56 }
0x1823   :  { %v3265_v40 = vadd.f32 %v3264_v15, %v3263_v52 }
0x1825   :  { %v4564_v49 = vpop.eup %4563 }
0x1826   :  { %v4566_v57 = vpop.eup %4565  ;;  %v1244_v42 = vmul.f32 %v4564_v49, %v1240_v28 }
0x1827   :  { %v4568_v38 = vpop.eup %4567  ;;  %v563_v60 = vmul.f32 %v4566_v57, %v559_v55 }
0x1828   :  { %v1919_v22 = vmul.f32 %v4568_v38, %v1915_v29  ;;  %v1245_v41 = vsel %vm1241_vm10, %v1244_v42, 0.0 }
0x1829   :  { %v564_v26 = vsel %vm560_vm11, %v563_v60, 0.0 }
0x182a   :  { %v1920_v63 = vsel %vm1916_vm12, %v1919_v22, 0.0  ;;  %v1485_v11 = vadd.f32 %v1245_v41, %v564_v26 }
0x182c   :  { %v2160_v14 = vadd.f32 %v1920_v63, %v1485_v11 }
0x182d   :  { %v4570_v58 = vpop.eup %4569 }
0x182e   :  { %v4572_v18 = vpop.eup %4571  ;;  %v2594_v4 = vmul.f32 %v4570_v58, %v2590_v3 }
0x182f   :  { %v3269_v45 = vmul.f32 %v4572_v18, %v3265_v40  ;;  %v4574_v20 = vpop.eup %4573 }
0x1830   :  { %v2595_v9 = vsel %vm2591_vm13, %v2594_v4, 0.0 }
0x1831   :  { %v3270_v23 = vsel %vm3266_vm14, %v3269_v45, 0.0  ;;  %v2835_v19 = vadd.f32 %v2595_v9, %v2160_v14 }
0x1833   :  { %v3510_v1 = vadd.f32 %v3270_v23, %v2835_v19 }
0x18a4   :  { %v3934_v39 = vpop.xlane.xlu1 %3933 }
0x18a5   :  { %v3935_v0 = vrot.slane %v3934_v39, 4 }
0x18a7   :  { %v3936_v59 = vadd.f32 %v3935_v0, %v3934_v39 }
0x18a9   :  { %v3937_v61 = vrot.slane %v3936_v59, 2 }
0x18ab   :  { %v3938_v8 = vadd.f32 %v3937_v61, %v3936_v59 }
0x18ad   :  { %v3939_v12 = vrot.slane %v3938_v8, 1 }
0x18af   :  { %v3940_v47 = vadd.f32 %v3939_v12, %v3938_v8 }
0x18b1   :  { %v3944_v24 = vmul.f32 %v4574_v20, %v3940_v47 }
0x18b3   :  { %v3945_v7 = vsel %vm3941_vm15, %v3944_v24, 0.0 }
0x18b4   :  { %v3946_v27 = vadd.f32 %v3945_v7, %v3510_v1 }
0x18b6   :  { %v3947_v2 = vmul.f32 0.16666667, %v3946_v27 }
0x18b8   :  { %3949 = vst.msk [vmem:[#allocation2] sm:$0x1] %vm3948_vm0, %v3947_v2 }
0x18b9   :  { %4608 = shalt.err (!%p4605_p4)
}
0x18ba   :  { %3961 = dma.vmem_to_hbm [thread:$0]  %s3959_s21, 16, %s5535_s19, [#allocation3]  }
0x18bb   :  { %4617 = dma.done.wait [#allocation3], 16  }
0x18bc   :  { %4618 = vsyncadd [#allocation3], 4294967280 }
0x18bd   :  { %3967 = vsyncpa [#allocation3], 1 }

</bundles_post_ra>
